<compile_context>
chip_gen: v7x
topology: tpu7x:2x2x1
jax: 0.10.0
libtpu: 0.0.40
codegen_flags: <defaults>
</compile_context>

<pallas_src>
import functools

import jax
import jax.numpy as jnp
from jax import lax
from jax.experimental import pallas as pl
from jax.experimental.pallas import tpu as pltpu


def _round_up(x, m):
    return ((x + m - 1) // m) * m


def bilstm_pool_kernel(x_ref, wih_f_ref, whh_f_ref, b_f_ref,
                       wih_b_ref, b_b_ref, out_ref,
                       gx_ref, h_ref, c_ref, *, mxu_dtype):
    Bt, Tc, H = x_ref.shape
    G = H // 2
    G4 = 4 * G

    t_idx = pl.program_id(1)
    n_tc = pl.num_programs(1)

    # ---- First T-chunk of this batch tile: zero the carried LSTM state.
    @pl.when(t_idx == 0)
    def _():
        h_ref[...] = jnp.zeros_like(h_ref)
        c_ref[...] = jnp.zeros_like(c_ref)

    b_f = b_f_ref[...]                                        # (1, 4G) f32
    wih_f = wih_f_ref[...].astype(mxu_dtype)                  # (H, 4G)

    # ---- Hoisted input projection for this chunk (off the serial path).
    # Computed in time sub-chunks so the live (rows, 4G) f32 dot result stays a
    # handful of vregs; each sub-chunk is stored straight into the batch-major
    # gx scratch (no per-timestep transpose loop, no giant live value).
    sub_bytes_budget = 64 * 1024
    tp = max(1, min(Tc, sub_bytes_budget // max(1, Bt * G4 * 4)))
    t0 = 0
    while t0 < Tc:
        tpc = min(tp, Tc - t0)
        xs = x_ref[:, t0:t0 + tpc, :].astype(mxu_dtype)       # (Bt, tpc, H)
        g = jnp.dot(xs.reshape(Bt * tpc, H), wih_f,
                    preferred_element_type=jnp.float32) + b_f
        gx_ref[:, t0:t0 + tpc, :] = g.reshape(Bt, tpc, G4)
        t0 += tpc

    # ---- Forward recurrence over this chunk: only h @ W_hh + elementwise gate
    # math sit on the serial path.  Gate column order is (i, f, o, g) — the
    # wrapper pre-permutes the weights — so a single sigmoid covers exactly the
    # contiguous i|f|o columns and the g columns only get tanh.
    whh_f = whh_f_ref[...].astype(mxu_dtype)                  # (G, 4G)

    def step(t, carry):
        h, c = carry
        gx_t = gx_ref[:, pl.ds(t, 1), :][:, 0, :]             # (Bt, 4G)
        gates = gx_t + jnp.dot(h.astype(mxu_dtype), whh_f,
                               preferred_element_type=jnp.float32)
        s = jax.nn.sigmoid(gates[:, :3 * G])                  # i | f | o
        i = s[:, 0:G]
        f = s[:, G:2 * G]
        o = s[:, 2 * G:3 * G]
        g = jnp.tanh(gates[:, 3 * G:])
        c_new = f * c + i * g
        h_new = o * jnp.tanh(c_new)
        return h_new, c_new

    unroll = Tc if Tc <= 16 else 8
    h_fwd, c_fwd = lax.fori_loop(0, Tc, step, (h_ref[...], c_ref[...]),
                                 unroll=unroll)
    h_ref[...] = h_fwd
    c_ref[...] = c_fwd

    # ---- Last chunk: backward direction + write both output halves directly.
    @pl.when(t_idx == n_tc - 1)
    def _():
        # Reverse direction contributes only its first step (global t = T-1)
        # from a zero state: f * c0 == 0 and h0 @ W_hh_b == 0, so W_hh_b is not
        # a kernel input at all.
        xb = x_ref[:, Tc - 1, :].astype(mxu_dtype)
        gb = jnp.dot(xb, wih_b_ref[...].astype(mxu_dtype),
                     preferred_element_type=jnp.float32) + b_b_ref[...]
        sb = jax.nn.sigmoid(gb[:, :3 * G])                    # i | f | o
        c_b = sb[:, 0:G] * jnp.tanh(gb[:, 3 * G:])            # i * g
        h_bwd = sb[:, 2 * G:3 * G] * jnp.tanh(c_b)            # o * tanh(c)
        out_ref[:, :G] = h_fwd.astype(out_ref.dtype)
        out_ref[:, G:] = h_bwd.astype(out_ref.dtype)


def bilstm_pooler(x, params, *, block_b=128, t_chunk=None,
                  mxu_dtype=jnp.bfloat16, vmem_budget_bytes=8 << 20):
    """x: (B, T, H) float32 -> (B, H) float32 (== hiddens[:, -1] of the BiLSTM)."""
    B, T, H = x.shape
    G = H // 2

    # --- Batch tiling: large tiles so each per-step h @ W_hh has a full M
    # dimension, but split so both v7x TensorCores get a tile when possible.
    Bp8 = _round_up(B, 8)
    bb = min(_round_up(block_b, 8), Bp8)
    if pl.cdiv(Bp8, bb) == 1 and bb >= 16:
        bb = _round_up((bb + 1) // 2, 8)
    n_btiles = pl.cdiv(Bp8, bb)
    Bp = n_btiles * bb
    if Bp != B:
        # Padded rows are zero-filled and sliced off below; they never escape.
        x = jnp.pad(x, ((0, Bp - B), (0, 0), (0, 0)))

    # --- Time chunking: cap the O(T) VMEM (double-buffered x chunk + gx scratch)
    # independent of T; chunk size is the largest divisor of T within budget.
    if t_chunk is None:
        per_t = bb * (2 * H * x.dtype.itemsize + 4 * G * 4)
        t_max = max(1, vmem_budget_bytes // max(per_t, 1))
        t_chunk = max(d for d in range(1, T + 1) if T % d == 0 and d <= t_max)
    assert T % t_chunk == 0, "t_chunk must divide T"
    n_tchunks = T // t_chunk

    # --- Weights: cast MXU operands once in the wrapper (halves weight traffic).
    wih_f = params["wih_f_T"].astype(mxu_dtype)
    whh_f = params["whh_f_T"].astype(mxu_dtype)
    wih_b = params["wih_b_T"].astype(mxu_dtype)
    b_f = params["b_f"].astype(jnp.float32)
    b_b = params["b_b"].astype(jnp.float32)

    # --- Explicit VMEM limit (v5e default scoped limit is only ~16 MiB).
    est = (2 * bb * t_chunk * H * x.dtype.itemsize            # x chunk, 2x buffered
           + bb * t_chunk * 4 * G * 4                         # gx scratch (f32)
           + 2 * bb * G * 4                                   # h / c carry
           + 2 * bb * H * x.dtype.itemsize                    # out tile
           + 2 * (wih_f.size + whh_f.size + wih_b.size) * wih_f.dtype.itemsize
           + 2 * (b_f.size + b_b.size) * 4)
    vmem_limit = int(min(max(2 * est + (4 << 20), 16 << 20), 64 << 20))

    kernel = functools.partial(bilstm_pool_kernel, mxu_dtype=mxu_dtype)
    out = pl.pallas_call(
        kernel,
        out_shape=jax.ShapeDtypeStruct((Bp, H), x.dtype),
        grid_spec=pltpu.PrefetchScalarGridSpec(
            num_scalar_prefetch=0,
            grid=(n_btiles, n_tchunks),
            in_specs=[
                pl.BlockSpec((bb, t_chunk, H), lambda b, t: (b, t, 0)),  # x chunk
                pl.BlockSpec((H, 4 * G), lambda b, t: (0, 0)),           # W_ih_f^T
                pl.BlockSpec((G, 4 * G), lambda b, t: (0, 0)),           # W_hh_f^T
                pl.BlockSpec((1, 4 * G), lambda b, t: (0, 0)),           # b_f
                pl.BlockSpec((H, 4 * G), lambda b, t: (0, 0)),           # W_ih_b^T
                pl.BlockSpec((1, 4 * G), lambda b, t: (0, 0)),           # b_b
            ],
            out_specs=pl.BlockSpec((bb, H), lambda b, t: (b, 0)),
            scratch_shapes=[
                pltpu.VMEM((bb, t_chunk, 4 * G), jnp.float32),   # gx (batch-major)
                pltpu.VMEM((bb, G), jnp.float32),                # h carry
                pltpu.VMEM((bb, G), jnp.float32),                # c carry
            ],
        ),
        compiler_params=pltpu.CompilerParams(
            dimension_semantics=("parallel", "arbitrary"),
            vmem_limit_bytes=vmem_limit,
        ),
    )(x, wih_f, whh_f, b_f, wih_b, b_b)
    return out[:B]


def _perm_gates_ifog(w):
    """Permute the 4G gate axis from PyTorch (i,f,g,o) to kernel order (i,f,o,g)."""
    G = w.shape[-1] // 4
    return jnp.concatenate(
        [w[..., :2 * G], w[..., 3 * G:4 * G], w[..., 2 * G:3 * G]], axis=-1)


def init_params(key, hidden_size):
    """Deterministic PyTorch-style init: U(-1/sqrt(Hh), 1/sqrt(Hh))."""
    H = hidden_size
    G = H // 2
    k = 1.0 / jnp.sqrt(jnp.float32(G))
    ks = jax.random.split(key, 8)
    u = lambda kk, shape: jax.random.uniform(kk, shape, jnp.float32, -k, k)
    raw = {
        "wih_f": u(ks[0], (4 * G, H)),   # weight_ih_l0
        "whh_f": u(ks[1], (4 * G, G)),   # weight_hh_l0
        "bih_f": u(ks[2], (4 * G,)),
        "bhh_f": u(ks[3], (4 * G,)),
        "wih_b": u(ks[4], (4 * G, H)),   # weight_ih_l0_reverse
        "whh_b": u(ks[5], (4 * G, G)),   # weight_hh_l0_reverse (unused by pooling)
        "bih_b": u(ks[6], (4 * G,)),
        "bhh_b": u(ks[7], (4 * G,)),
    }
    kernel_params = {
        # Transposed and gate-permuted to (i, f, o, g) column order.
        "wih_f_T": _perm_gates_ifog(raw["wih_f"].T),                        # (H, 4G)
        "whh_f_T": _perm_gates_ifog(raw["whh_f"].T),                        # (G, 4G)
        "b_f": _perm_gates_ifog((raw["bih_f"] + raw["bhh_f"]).reshape(1, -1)),
        "wih_b_T": _perm_gates_ifog(raw["wih_b"].T),                        # (H, 4G)
        "b_b": _perm_gates_ifog((raw["bih_b"] + raw["bhh_b"]).reshape(1, -1)),
        # W_hh_b intentionally NOT passed: it only ever multiplies a zero state.
    }
    return raw, kernel_params


def ref_bilstm_pool(x, raw):
    """Pure-JAX reference of the PyTorch BiLSTM pooler (hiddens[:, -1])."""
    B, T, H = x.shape
    G = H // 2

    def step(wih, whh, b, x_t, h, c):
        gates = x_t @ wih.T + h @ whh.T + b
        i, f, g, o = jnp.split(gates, 4, axis=-1)
        c = jax.nn.sigmoid(f) * c + jax.nn.sigmoid(i) * jnp.tanh(g)
        h = jax.nn.sigmoid(o) * jnp.tanh(c)
        return h, c

    h = jnp.zeros((B, G), jnp.float32)
    c = jnp.zeros((B, G), jnp.float32)
    for t in range(T):
        h, c = step(raw["wih_f"], raw["whh_f"], raw["bih_f"] + raw["bhh_f"],
                    x[:, t], h, c)
    h_fwd = h
    h_bwd, _ = step(raw["wih_b"], raw["whh_b"], raw["bih_b"] + raw["bhh_b"],
                    x[:, T - 1],
                    jnp.zeros((B, G), jnp.float32),
                    jnp.zeros((B, G), jnp.float32))
    return jnp.concatenate([h_fwd, h_bwd], axis=-1)


if __name__ == "__main__":
    B, T, H = 2, 8, 32  # batch, seq, hidden_size (LSTM hidden per direction = 16)
    key = jax.random.PRNGKey(0)
    k_x, k_p = jax.random.split(key)
    x = jax.random.normal(k_x, (B, T, H), jnp.float32)
    raw, kernel_params = init_params(k_p, H)
    ref = ref_bilstm_pool(x, raw)

    # 1) f32 MXU path: exact semantics check against the f32 reference.
    out_f32 = jax.block_until_ready(bilstm_pooler(x, kernel_params,
                                                  mxu_dtype=jnp.float32))
    assert out_f32.shape == (B, H)
    err = jnp.max(jnp.abs(out_f32 - ref))
    assert jnp.allclose(out_f32, ref, atol=1e-4, rtol=1e-4), f"f32 mismatch: {err}"

    # 2) Default bf16 MXU operands (f32 accumulation / gate math): loose tolerance.
    out_bf16 = jax.block_until_ready(bilstm_pooler(x, kernel_params))
    err = jnp.max(jnp.abs(out_bf16 - ref))
    assert jnp.allclose(out_bf16, ref, atol=6e-2, rtol=6e-2), f"bf16 mismatch: {err}"

    # 3) Exercise the T-chunked carry path (grid over two T-chunks).
    out_chunked = jax.block_until_ready(
        bilstm_pooler(x, kernel_params, mxu_dtype=jnp.float32, t_chunk=4))
    err = jnp.max(jnp.abs(out_chunked - ref))
    assert jnp.allclose(out_chunked, ref, atol=1e-4, rtol=1e-4), \
        f"chunked mismatch: {err}"

    print("KERNEL_OK")
</pallas_src>

<mosaic_0001>
module attributes {stable_mosaic.version = 11 : i64} {
  func.func @bilstm_pool_kernel(%arg0: i32, %arg1: i32, %arg2: memref<8x8x32xf32, #tpu.memory_space<vmem>>, %arg3: memref<32x64xf32, #tpu.memory_space<vmem>>, %arg4: memref<16x64xf32, #tpu.memory_space<vmem>>, %arg5: memref<1x64xf32, #tpu.memory_space<vmem>>, %arg6: memref<32x64xf32, #tpu.memory_space<vmem>>, %arg7: memref<1x64xf32, #tpu.memory_space<vmem>>, %arg8: memref<8x32xf32, #tpu.memory_space<vmem>>, %arg9: memref<8x8x64xf32, #tpu.memory_space<vmem>>, %arg10: memref<8x16xf32, #tpu.memory_space<vmem>>, %arg11: memref<8x16xf32, #tpu.memory_space<vmem>>) attributes {dimension_semantics = [#tpu.dimension_semantics<parallel>, #tpu.dimension_semantics<arbitrary>], iteration_bounds = array<i64: 1, 1>, scalar_prefetch = 0 : i64, scratch_operands = 3 : i64, tpu.core_type = #tpu.core_type<tc>, window_params = [{transform_indices = @transform_0, window_bounds = array<i64: 8, 8, 32>}, {pipeline_mode = #tpu.pipeline_mode<synchronous>, transform_indices = @transform_1, window_bounds = array<i64: 32, 64>}, {pipeline_mode = #tpu.pipeline_mode<synchronous>, transform_indices = @transform_2, window_bounds = array<i64: 16, 64>}, {pipeline_mode = #tpu.pipeline_mode<synchronous>, transform_indices = @transform_3, window_bounds = array<i64: 1, 64>}, {pipeline_mode = #tpu.pipeline_mode<synchronous>, transform_indices = @transform_4, window_bounds = array<i64: 32, 64>}, {pipeline_mode = #tpu.pipeline_mode<synchronous>, transform_indices = @transform_5, window_bounds = array<i64: 1, 64>}, {transform_indices = @transform_6, window_bounds = array<i64: 8, 32>}]} {
    %c0_i32 = arith.constant 0 : i32
    %0 = arith.cmpi eq, %arg1, %c0_i32 : i32
    %1 = arith.extui %0 : i1 to i32
    %c0_i32_0 = arith.constant 0 : i32
    %2 = arith.cmpi ne, %1, %c0_i32_0 : i32
    scf.if %2 {
      %cst_55 = arith.constant 0.000000e+00 : f32
      %188 = vector.broadcast %cst_55 : f32 to vector<8x16xf32>
      %c0_56 = arith.constant 0 : index
      %c0_57 = arith.constant 0 : index
      %189 = vector.load %arg10[%c0_56, %c0_57] : memref<8x16xf32, #tpu.memory_space<vmem>>, vector<8x16xf32>
      tpu.vector_store %arg10[%c0_56, %c0_57], %188 {strides = array<i32>} : memref<8x16xf32, #tpu.memory_space<vmem>>, vector<8x16xf32>,
      %cst_58 = arith.constant 0.000000e+00 : f32
      %190 = vector.broadcast %cst_58 : f32 to vector<8x16xf32>
      %c0_59 = arith.constant 0 : index
      %c0_60 = arith.constant 0 : index
      %191 = vector.load %arg11[%c0_59, %c0_60] : memref<8x16xf32, #tpu.memory_space<vmem>>, vector<8x16xf32>
      tpu.vector_store %arg11[%c0_59, %c0_60], %190 {strides = array<i32>} : memref<8x16xf32, #tpu.memory_space<vmem>>, vector<8x16xf32>,
    } else {
    }
    %c0 = arith.constant 0 : index
    %c0_1 = arith.constant 0 : index
    %3 = vector.load %arg5[%c0, %c0_1] : memref<1x64xf32, #tpu.memory_space<vmem>>, vector<1x64xf32>
    %c0_2 = arith.constant 0 : index
    %c0_3 = arith.constant 0 : index
    %4 = vector.load %arg3[%c0_2, %c0_3] : memref<32x64xf32, #tpu.memory_space<vmem>>, vector<32x64xf32>
    %c0_4 = arith.constant 0 : index
    %c0_5 = arith.constant 0 : index
    %c0_6 = arith.constant 0 : index
    %5 = vector.load %arg2[%c0_4, %c0_5, %c0_6] : memref<8x8x32xf32, #tpu.memory_space<vmem>>, vector<8x8x32xf32>
    %6 = vector.shape_cast %5 : vector<8x8x32xf32> to vector<64x32xf32>
    %cst = arith.constant dense<0.000000e+00> : vector<64x64xf32>
    %7 = tpu.matmul %6, %4, %cst {dimension_numbers = #tpu.dot_dimension_numbers<[1], [0], [0], [1], [0, 0, 1, 1], [], []>} : vector<64x32xf32>, vector<32x64xf32>, vector<64x64xf32> -> vector<64x64xf32>
    %8 = vector.broadcast %3 : vector<1x64xf32> to vector<64x64xf32>
    %9 = arith.addf %7, %8 : vector<64x64xf32>
    %10 = vector.shape_cast %9 : vector<64x64xf32> to vector<8x8x64xf32>
    %c0_7 = arith.constant 0 : index
    %c0_8 = arith.constant 0 : index
    %c0_9 = arith.constant 0 : index
    %11 = vector.load %arg9[%c0_7, %c0_8, %c0_9] : memref<8x8x64xf32, #tpu.memory_space<vmem>>, vector<8x8x64xf32>
    tpu.vector_store %arg9[%c0_7, %c0_8, %c0_9], %10 {strides = array<i32>} : memref<8x8x64xf32, #tpu.memory_space<vmem>>, vector<8x8x64xf32>,
    %c0_10 = arith.constant 0 : index
    %c0_11 = arith.constant 0 : index
    %12 = vector.load %arg4[%c0_10, %c0_11] : memref<16x64xf32, #tpu.memory_space<vmem>>, vector<16x64xf32>
    %c0_12 = arith.constant 0 : index
    %c0_13 = arith.constant 0 : index
    %13 = vector.load %arg10[%c0_12, %c0_13] : memref<8x16xf32, #tpu.memory_space<vmem>>, vector<8x16xf32>
    %c0_14 = arith.constant 0 : index
    %c0_15 = arith.constant 0 : index
    %14 = vector.load %arg11[%c0_14, %c0_15] : memref<8x16xf32, #tpu.memory_space<vmem>>, vector<8x16xf32>
    %c0_i32_16 = arith.constant 0 : i32
    %c0_17 = arith.constant 0 : index
    %15 = arith.index_cast %c0_i32_16 : i32 to index
    %c0_18 = arith.constant 0 : index
    %16 = vector.load %arg9[%c0_17, %15, %c0_18] : memref<8x8x64xf32, #tpu.memory_space<vmem>>, vector<8x1x64xf32>
    %17 = vector.shape_cast %16 : vector<8x1x64xf32> to vector<8x64xf32>
    %cst_19 = arith.constant dense<0.000000e+00> : vector<8x64xf32>
    %18 = tpu.matmul %13, %12, %cst_19 {dimension_numbers = #tpu.dot_dimension_numbers<[1], [0], [0], [1], [0, 0, 1, 1], [], []>} : vector<8x16xf32>, vector<16x64xf32>, vector<8x64xf32> -> vector<8x64xf32>
    %19 = arith.addf %17, %18 : vector<8x64xf32>
    %20 = vector.extract_strided_slice %19 {offsets = [0, 0], sizes = [8, 48], strides = [1, 1]} : vector<8x64xf32> to vector<8x48xf32>
    %21 = arith.negf %20 : vector<8x48xf32>
    %22 = math.exp %21 : vector<8x48xf32>
    %cst_20 = arith.constant 1.000000e+00 : f32
    %23 = vector.broadcast %cst_20 : f32 to vector<8x48xf32>
    %24 = arith.addf %23, %22 : vector<8x48xf32>
    %25 = arith.divf %23, %24 : vector<8x48xf32>
    %26 = vector.extract_strided_slice %25 {offsets = [0, 0], sizes = [8, 16], strides = [1, 1]} : vector<8x48xf32> to vector<8x16xf32>
    %27 = vector.extract_strided_slice %25 {offsets = [0, 16], sizes = [8, 16], strides = [1, 1]} : vector<8x48xf32> to vector<8x16xf32>
    %28 = vector.extract_strided_slice %25 {offsets = [0, 32], sizes = [8, 16], strides = [1, 1]} : vector<8x48xf32> to vector<8x16xf32>
    %29 = vector.extract_strided_slice %19 {offsets = [0, 48], sizes = [8, 16], strides = [1, 1]} : vector<8x64xf32> to vector<8x16xf32>
    %30 = math.tanh %29 : vector<8x16xf32>
    %31 = arith.mulf %27, %14 : vector<8x16xf32>
    %32 = arith.mulf %26, %30 : vector<8x16xf32>
    %33 = arith.addf %31, %32 : vector<8x16xf32>
    %34 = math.tanh %33 : vector<8x16xf32>
    %35 = arith.mulf %28, %34 : vector<8x16xf32>
    %c1_i32 = arith.constant 1 : i32
    %c0_21 = arith.constant 0 : index
    %36 = arith.index_cast %c1_i32 : i32 to index
    %c0_22 = arith.constant 0 : index
    %37 = vector.load %arg9[%c0_21, %36, %c0_22] : memref<8x8x64xf32, #tpu.memory_space<vmem>>, vector<8x1x64xf32>
    %38 = vector.shape_cast %37 : vector<8x1x64xf32> to vector<8x64xf32>
    %cst_23 = arith.constant dense<0.000000e+00> : vector<8x64xf32>
    %39 = tpu.matmul %35, %12, %cst_23 {dimension_numbers = #tpu.dot_dimension_numbers<[1], [0], [0], [1], [0, 0, 1, 1], [], []>} : vector<8x16xf32>, vector<16x64xf32>, vector<8x64xf32> -> vector<8x64xf32>
    %40 = arith.addf %38, %39 : vector<8x64xf32>
    %41 = vector.extract_strided_slice %40 {offsets = [0, 0], sizes = [8, 48], strides = [1, 1]} : vector<8x64xf32> to vector<8x48xf32>
    %42 = arith.negf %41 : vector<8x48xf32>
    %43 = math.exp %42 : vector<8x48xf32>
    %cst_24 = arith.constant 1.000000e+00 : f32
    %44 = vector.broadcast %cst_24 : f32 to vector<8x48xf32>
    %45 = arith.addf %44, %43 : vector<8x48xf32>
    %46 = arith.divf %44, %45 : vector<8x48xf32>
    %47 = vector.extract_strided_slice %46 {offsets = [0, 0], sizes = [8, 16], strides = [1, 1]} : vector<8x48xf32> to vector<8x16xf32>
    %48 = vector.extract_strided_slice %46 {offsets = [0, 16], sizes = [8, 16], strides = [1, 1]} : vector<8x48xf32> to vector<8x16xf32>
    %49 = vector.extract_strided_slice %46 {offsets = [0, 32], sizes = [8, 16], strides = [1, 1]} : vector<8x48xf32> to vector<8x16xf32>
    %50 = vector.extract_strided_slice %40 {offsets = [0, 48], sizes = [8, 16], strides = [1, 1]} : vector<8x64xf32> to vector<8x16xf32>
    %51 = math.tanh %50 : vector<8x16xf32>
    %52 = arith.mulf %48, %33 : vector<8x16xf32>
    %53 = arith.mulf %47, %51 : vector<8x16xf32>
    %54 = arith.addf %52, %53 : vector<8x16xf32>
    %55 = math.tanh %54 : vector<8x16xf32>
    %56 = arith.mulf %49, %55 : vector<8x16xf32>
    %c2_i32 = arith.constant 2 : i32
    %c0_25 = arith.constant 0 : index
    %57 = arith.index_cast %c2_i32 : i32 to index
    %c0_26 = arith.constant 0 : index
    %58 = vector.load %arg9[%c0_25, %57, %c0_26] : memref<8x8x64xf32, #tpu.memory_space<vmem>>, vector<8x1x64xf32>
    %59 = vector.shape_cast %58 : vector<8x1x64xf32> to vector<8x64xf32>
    %cst_27 = arith.constant dense<0.000000e+00> : vector<8x64xf32>
    %60 = tpu.matmul %56, %12, %cst_27 {dimension_numbers = #tpu.dot_dimension_numbers<[1], [0], [0], [1], [0, 0, 1, 1], [], []>} : vector<8x16xf32>, vector<16x64xf32>, vector<8x64xf32> -> vector<8x64xf32>
    %61 = arith.addf %59, %60 : vector<8x64xf32>
    %62 = vector.extract_strided_slice %61 {offsets = [0, 0], sizes = [8, 48], strides = [1, 1]} : vector<8x64xf32> to vector<8x48xf32>
    %63 = arith.negf %62 : vector<8x48xf32>
    %64 = math.exp %63 : vector<8x48xf32>
    %cst_28 = arith.constant 1.000000e+00 : f32
    %65 = vector.broadcast %cst_28 : f32 to vector<8x48xf32>
    %66 = arith.addf %65, %64 : vector<8x48xf32>
    %67 = arith.divf %65, %66 : vector<8x48xf32>
    %68 = vector.extract_strided_slice %67 {offsets = [0, 0], sizes = [8, 16], strides = [1, 1]} : vector<8x48xf32> to vector<8x16xf32>
    %69 = vector.extract_strided_slice %67 {offsets = [0, 16], sizes = [8, 16], strides = [1, 1]} : vector<8x48xf32> to vector<8x16xf32>
    %70 = vector.extract_strided_slice %67 {offsets = [0, 32], sizes = [8, 16], strides = [1, 1]} : vector<8x48xf32> to vector<8x16xf32>
    %71 = vector.extract_strided_slice %61 {offsets = [0, 48], sizes = [8, 16], strides = [1, 1]} : vector<8x64xf32> to vector<8x16xf32>
    %72 = math.tanh %71 : vector<8x16xf32>
    %73 = arith.mulf %69, %54 : vector<8x16xf32>
    %74 = arith.mulf %68, %72 : vector<8x16xf32>
    %75 = arith.addf %73, %74 : vector<8x16xf32>
    %76 = math.tanh %75 : vector<8x16xf32>
    %77 = arith.mulf %70, %76 : vector<8x16xf32>
    %c3_i32 = arith.constant 3 : i32
    %c0_29 = arith.constant 0 : index
    %78 = arith.index_cast %c3_i32 : i32 to index
    %c0_30 = arith.constant 0 : index
    %79 = vector.load %arg9[%c0_29, %78, %c0_30] : memref<8x8x64xf32, #tpu.memory_space<vmem>>, vector<8x1x64xf32>
    %80 = vector.shape_cast %79 : vector<8x1x64xf32> to vector<8x64xf32>
    %cst_31 = arith.constant dense<0.000000e+00> : vector<8x64xf32>
    %81 = tpu.matmul %77, %12, %cst_31 {dimension_numbers = #tpu.dot_dimension_numbers<[1], [0], [0], [1], [0, 0, 1, 1], [], []>} : vector<8x16xf32>, vector<16x64xf32>, vector<8x64xf32> -> vector<8x64xf32>
    %82 = arith.addf %80, %81 : vector<8x64xf32>
    %83 = vector.extract_strided_slice %82 {offsets = [0, 0], sizes = [8, 48], strides = [1, 1]} : vector<8x64xf32> to vector<8x48xf32>
    %84 = arith.negf %83 : vector<8x48xf32>
    %85 = math.exp %84 : vector<8x48xf32>
    %cst_32 = arith.constant 1.000000e+00 : f32
    %86 = vector.broadcast %cst_32 : f32 to vector<8x48xf32>
    %87 = arith.addf %86, %85 : vector<8x48xf32>
    %88 = arith.divf %86, %87 : vector<8x48xf32>
    %89 = vector.extract_strided_slice %88 {offsets = [0, 0], sizes = [8, 16], strides = [1, 1]} : vector<8x48xf32> to vector<8x16xf32>
    %90 = vector.extract_strided_slice %88 {offsets = [0, 16], sizes = [8, 16], strides = [1, 1]} : vector<8x48xf32> to vector<8x16xf32>
    %91 = vector.extract_strided_slice %88 {offsets = [0, 32], sizes = [8, 16], strides = [1, 1]} : vector<8x48xf32> to vector<8x16xf32>
    %92 = vector.extract_strided_slice %82 {offsets = [0, 48], sizes = [8, 16], strides = [1, 1]} : vector<8x64xf32> to vector<8x16xf32>
    %93 = math.tanh %92 : vector<8x16xf32>
    %94 = arith.mulf %90, %75 : vector<8x16xf32>
    %95 = arith.mulf %89, %93 : vector<8x16xf32>
    %96 = arith.addf %94, %95 : vector<8x16xf32>
    %97 = math.tanh %96 : vector<8x16xf32>
    %98 = arith.mulf %91, %97 : vector<8x16xf32>
    %c4_i32 = arith.constant 4 : i32
    %c0_33 = arith.constant 0 : index
    %99 = arith.index_cast %c4_i32 : i32 to index
    %c0_34 = arith.constant 0 : index
    %100 = vector.load %arg9[%c0_33, %99, %c0_34] : memref<8x8x64xf32, #tpu.memory_space<vmem>>, vector<8x1x64xf32>
    %101 = vector.shape_cast %100 : vector<8x1x64xf32> to vector<8x64xf32>
    %cst_35 = arith.constant dense<0.000000e+00> : vector<8x64xf32>
    %102 = tpu.matmul %98, %12, %cst_35 {dimension_numbers = #tpu.dot_dimension_numbers<[1], [0], [0], [1], [0, 0, 1, 1], [], []>} : vector<8x16xf32>, vector<16x64xf32>, vector<8x64xf32> -> vector<8x64xf32>
    %103 = arith.addf %101, %102 : vector<8x64xf32>
    %104 = vector.extract_strided_slice %103 {offsets = [0, 0], sizes = [8, 48], strides = [1, 1]} : vector<8x64xf32> to vector<8x48xf32>
    %105 = arith.negf %104 : vector<8x48xf32>
    %106 = math.exp %105 : vector<8x48xf32>
    %cst_36 = arith.constant 1.000000e+00 : f32
    %107 = vector.broadcast %cst_36 : f32 to vector<8x48xf32>
    %108 = arith.addf %107, %106 : vector<8x48xf32>
    %109 = arith.divf %107, %108 : vector<8x48xf32>
    %110 = vector.extract_strided_slice %109 {offsets = [0, 0], sizes = [8, 16], strides = [1, 1]} : vector<8x48xf32> to vector<8x16xf32>
    %111 = vector.extract_strided_slice %109 {offsets = [0, 16], sizes = [8, 16], strides = [1, 1]} : vector<8x48xf32> to vector<8x16xf32>
    %112 = vector.extract_strided_slice %109 {offsets = [0, 32], sizes = [8, 16], strides = [1, 1]} : vector<8x48xf32> to vector<8x16xf32>
    %113 = vector.extract_strided_slice %103 {offsets = [0, 48], sizes = [8, 16], strides = [1, 1]} : vector<8x64xf32> to vector<8x16xf32>
    %114 = math.tanh %113 : vector<8x16xf32>
    %115 = arith.mulf %111, %96 : vector<8x16xf32>
    %116 = arith.mulf %110, %114 : vector<8x16xf32>
    %117 = arith.addf %115, %116 : vector<8x16xf32>
    %118 = math.tanh %117 : vector<8x16xf32>
    %119 = arith.mulf %112, %118 : vector<8x16xf32>
    %c5_i32 = arith.constant 5 : i32
    %c0_37 = arith.constant 0 : index
    %120 = arith.index_cast %c5_i32 : i32 to index
    %c0_38 = arith.constant 0 : index
    %121 = vector.load %arg9[%c0_37, %120, %c0_38] : memref<8x8x64xf32, #tpu.memory_space<vmem>>, vector<8x1x64xf32>
    %122 = vector.shape_cast %121 : vector<8x1x64xf32> to vector<8x64xf32>
    %cst_39 = arith.constant dense<0.000000e+00> : vector<8x64xf32>
    %123 = tpu.matmul %119, %12, %cst_39 {dimension_numbers = #tpu.dot_dimension_numbers<[1], [0], [0], [1], [0, 0, 1, 1], [], []>} : vector<8x16xf32>, vector<16x64xf32>, vector<8x64xf32> -> vector<8x64xf32>
    %124 = arith.addf %122, %123 : vector<8x64xf32>
    %125 = vector.extract_strided_slice %124 {offsets = [0, 0], sizes = [8, 48], strides = [1, 1]} : vector<8x64xf32> to vector<8x48xf32>
    %126 = arith.negf %125 : vector<8x48xf32>
    %127 = math.exp %126 : vector<8x48xf32>
    %cst_40 = arith.constant 1.000000e+00 : f32
    %128 = vector.broadcast %cst_40 : f32 to vector<8x48xf32>
    %129 = arith.addf %128, %127 : vector<8x48xf32>
    %130 = arith.divf %128, %129 : vector<8x48xf32>
    %131 = vector.extract_strided_slice %130 {offsets = [0, 0], sizes = [8, 16], strides = [1, 1]} : vector<8x48xf32> to vector<8x16xf32>
    %132 = vector.extract_strided_slice %130 {offsets = [0, 16], sizes = [8, 16], strides = [1, 1]} : vector<8x48xf32> to vector<8x16xf32>
    %133 = vector.extract_strided_slice %130 {offsets = [0, 32], sizes = [8, 16], strides = [1, 1]} : vector<8x48xf32> to vector<8x16xf32>
    %134 = vector.extract_strided_slice %124 {offsets = [0, 48], sizes = [8, 16], strides = [1, 1]} : vector<8x64xf32> to vector<8x16xf32>
    %135 = math.tanh %134 : vector<8x16xf32>
    %136 = arith.mulf %132, %117 : vector<8x16xf32>
    %137 = arith.mulf %131, %135 : vector<8x16xf32>
    %138 = arith.addf %136, %137 : vector<8x16xf32>
    %139 = math.tanh %138 : vector<8x16xf32>
    %140 = arith.mulf %133, %139 : vector<8x16xf32>
    %c6_i32 = arith.constant 6 : i32
    %c0_41 = arith.constant 0 : index
    %141 = arith.index_cast %c6_i32 : i32 to index
    %c0_42 = arith.constant 0 : index
    %142 = vector.load %arg9[%c0_41, %141, %c0_42] : memref<8x8x64xf32, #tpu.memory_space<vmem>>, vector<8x1x64xf32>
    %143 = vector.shape_cast %142 : vector<8x1x64xf32> to vector<8x64xf32>
    %cst_43 = arith.constant dense<0.000000e+00> : vector<8x64xf32>
    %144 = tpu.matmul %140, %12, %cst_43 {dimension_numbers = #tpu.dot_dimension_numbers<[1], [0], [0], [1], [0, 0, 1, 1], [], []>} : vector<8x16xf32>, vector<16x64xf32>, vector<8x64xf32> -> vector<8x64xf32>
    %145 = arith.addf %143, %144 : vector<8x64xf32>
    %146 = vector.extract_strided_slice %145 {offsets = [0, 0], sizes = [8, 48], strides = [1, 1]} : vector<8x64xf32> to vector<8x48xf32>
    %147 = arith.negf %146 : vector<8x48xf32>
    %148 = math.exp %147 : vector<8x48xf32>
    %cst_44 = arith.constant 1.000000e+00 : f32
    %149 = vector.broadcast %cst_44 : f32 to vector<8x48xf32>
    %150 = arith.addf %149, %148 : vector<8x48xf32>
    %151 = arith.divf %149, %150 : vector<8x48xf32>
    %152 = vector.extract_strided_slice %151 {offsets = [0, 0], sizes = [8, 16], strides = [1, 1]} : vector<8x48xf32> to vector<8x16xf32>
    %153 = vector.extract_strided_slice %151 {offsets = [0, 16], sizes = [8, 16], strides = [1, 1]} : vector<8x48xf32> to vector<8x16xf32>
    %154 = vector.extract_strided_slice %151 {offsets = [0, 32], sizes = [8, 16], strides = [1, 1]} : vector<8x48xf32> to vector<8x16xf32>
    %155 = vector.extract_strided_slice %145 {offsets = [0, 48], sizes = [8, 16], strides = [1, 1]} : vector<8x64xf32> to vector<8x16xf32>
    %156 = math.tanh %155 : vector<8x16xf32>
    %157 = arith.mulf %153, %138 : vector<8x16xf32>
    %158 = arith.mulf %152, %156 : vector<8x16xf32>
    %159 = arith.addf %157, %158 : vector<8x16xf32>
    %160 = math.tanh %159 : vector<8x16xf32>
    %161 = arith.mulf %154, %160 : vector<8x16xf32>
    %c7_i32 = arith.constant 7 : i32
    %c0_45 = arith.constant 0 : index
    %162 = arith.index_cast %c7_i32 : i32 to index
    %c0_46 = arith.constant 0 : index
    %163 = vector.load %arg9[%c0_45, %162, %c0_46] : memref<8x8x64xf32, #tpu.memory_space<vmem>>, vector<8x1x64xf32>
    %164 = vector.shape_cast %163 : vector<8x1x64xf32> to vector<8x64xf32>
    %cst_47 = arith.constant dense<0.000000e+00> : vector<8x64xf32>
    %165 = tpu.matmul %161, %12, %cst_47 {dimension_numbers = #tpu.dot_dimension_numbers<[1], [0], [0], [1], [0, 0, 1, 1], [], []>} : vector<8x16xf32>, vector<16x64xf32>, vector<8x64xf32> -> vector<8x64xf32>
    %166 = arith.addf %164, %165 : vector<8x64xf32>
    %167 = vector.extract_strided_slice %166 {offsets = [0, 0], sizes = [8, 48], strides = [1, 1]} : vector<8x64xf32> to vector<8x48xf32>
    %168 = arith.negf %167 : vector<8x48xf32>
    %169 = math.exp %168 : vector<8x48xf32>
    %cst_48 = arith.constant 1.000000e+00 : f32
    %170 = vector.broadcast %cst_48 : f32 to vector<8x48xf32>
    %171 = arith.addf %170, %169 : vector<8x48xf32>
    %172 = arith.divf %170, %171 : vector<8x48xf32>
    %173 = vector.extract_strided_slice %172 {offsets = [0, 0], sizes = [8, 16], strides = [1, 1]} : vector<8x48xf32> to vector<8x16xf32>
    %174 = vector.extract_strided_slice %172 {offsets = [0, 16], sizes = [8, 16], strides = [1, 1]} : vector<8x48xf32> to vector<8x16xf32>
    %175 = vector.extract_strided_slice %172 {offsets = [0, 32], sizes = [8, 16], strides = [1, 1]} : vector<8x48xf32> to vector<8x16xf32>
    %176 = vector.extract_strided_slice %166 {offsets = [0, 48], sizes = [8, 16], strides = [1, 1]} : vector<8x64xf32> to vector<8x16xf32>
    %177 = math.tanh %176 : vector<8x16xf32>
    %178 = arith.mulf %174, %159 : vector<8x16xf32>
    %179 = arith.mulf %173, %177 : vector<8x16xf32>
    %180 = arith.addf %178, %179 : vector<8x16xf32>
    %181 = math.tanh %180 : vector<8x16xf32>
    %182 = arith.mulf %175, %181 : vector<8x16xf32>
    %c8_i32 = arith.constant 8 : i32
    %c0_49 = arith.constant 0 : index
    %c0_50 = arith.constant 0 : index
    %183 = vector.load %arg10[%c0_49, %c0_50] : memref<8x16xf32, #tpu.memory_space<vmem>>, vector<8x16xf32>
    tpu.vector_store %arg10[%c0_49, %c0_50], %182 {strides = array<i32>} : memref<8x16xf32, #tpu.memory_space<vmem>>, vector<8x16xf32>,
    %c0_51 = arith.constant 0 : index
    %c0_52 = arith.constant 0 : index
    %184 = vector.load %arg11[%c0_51, %c0_52] : memref<8x16xf32, #tpu.memory_space<vmem>>, vector<8x16xf32>
    tpu.vector_store %arg11[%c0_51, %c0_52], %180 {strides = array<i32>} : memref<8x16xf32, #tpu.memory_space<vmem>>, vector<8x16xf32>,
    %c0_i32_53 = arith.constant 0 : i32
    %185 = arith.cmpi eq, %arg1, %c0_i32_53 : i32
    %186 = arith.extui %185 : i1 to i32
    %c0_i32_54 = arith.constant 0 : i32
    %187 = arith.cmpi ne, %186, %c0_i32_54 : i32
    scf.if %187 {
      %c0_55 = arith.constant 0 : index
      %c7 = arith.constant 7 : index
      %c0_56 = arith.constant 0 : index
      %188 = vector.load %arg2[%c0_55, %c7, %c0_56] : memref<8x8x32xf32, #tpu.memory_space<vmem>>, vector<8x1x32xf32>
      %189 = vector.shape_cast %188 : vector<8x1x32xf32> to vector<8x32xf32>
      %c0_57 = arith.constant 0 : index
      %c0_58 = arith.constant 0 : index
      %190 = vector.load %arg6[%c0_57, %c0_58] : memref<32x64xf32, #tpu.memory_space<vmem>>, vector<32x64xf32>
      %cst_59 = arith.constant dense<0.000000e+00> : vector<8x64xf32>
      %191 = tpu.matmul %189, %190, %cst_59 {dimension_numbers = #tpu.dot_dimension_numbers<[1], [0], [0], [1], [0, 0, 1, 1], [], []>} : vector<8x32xf32>, vector<32x64xf32>, vector<8x64xf32> -> vector<8x64xf32>
      %c0_60 = arith.constant 0 : index
      %c0_61 = arith.constant 0 : index
      %192 = vector.load %arg7[%c0_60, %c0_61] : memref<1x64xf32, #tpu.memory_space<vmem>>, vector<1x64xf32>
      %193 = vector.broadcast %192 : vector<1x64xf32> to vector<8x64xf32>
      %194 = arith.addf %191, %193 : vector<8x64xf32>
      %195 = vector.extract_strided_slice %194 {offsets = [0, 0], sizes = [8, 48], strides = [1, 1]} : vector<8x64xf32> to vector<8x48xf32>
      %196 = arith.negf %195 : vector<8x48xf32>
      %197 = math.exp %196 : vector<8x48xf32>
      %cst_62 = arith.constant 1.000000e+00 : f32
      %198 = vector.broadcast %cst_62 : f32 to vector<8x48xf32>
      %199 = arith.addf %198, %197 : vector<8x48xf32>
      %200 = arith.divf %198, %199 : vector<8x48xf32>
      %201 = vector.extract_strided_slice %200 {offsets = [0, 0], sizes = [8, 16], strides = [1, 1]} : vector<8x48xf32> to vector<8x16xf32>
      %202 = vector.extract_strided_slice %194 {offsets = [0, 48], sizes = [8, 16], strides = [1, 1]} : vector<8x64xf32> to vector<8x16xf32>
      %203 = math.tanh %202 : vector<8x16xf32>
      %204 = arith.mulf %201, %203 : vector<8x16xf32>
      %205 = vector.extract_strided_slice %200 {offsets = [0, 32], sizes = [8, 16], strides = [1, 1]} : vector<8x48xf32> to vector<8x16xf32>
      %206 = math.tanh %204 : vector<8x16xf32>
      %207 = arith.mulf %205, %206 : vector<8x16xf32>
      %c0_63 = arith.constant 0 : index
      %c0_64 = arith.constant 0 : index
      %208 = vector.load %arg8[%c0_63, %c0_64] : memref<8x32xf32, #tpu.memory_space<vmem>>, vector<8x16xf32>
      tpu.vector_store %arg8[%c0_63, %c0_64], %182 {strides = array<i32>} : memref<8x32xf32, #tpu.memory_space<vmem>>, vector<8x16xf32>,
      %c0_65 = arith.constant 0 : index
      %c16 = arith.constant 16 : index
      %209 = vector.load %arg8[%c0_65, %c16] : memref<8x32xf32, #tpu.memory_space<vmem>>, vector<8x16xf32>
      tpu.vector_store %arg8[%c0_65, %c16], %207 {strides = array<i32>} : memref<8x32xf32, #tpu.memory_space<vmem>>, vector<8x16xf32>,
    } else {
    }
    return
  }
  func.func @transform_0(%arg0: i32, %arg1: i32) -> (i32, i32, i32) {
    %c0_i32 = arith.constant 0 : i32
    %c0_i32_0 = arith.constant 0 : i32
    return %arg0, %arg1, %c0_i32 : i32, i32, i32
  }
  func.func @transform_1(%arg0: i32, %arg1: i32) -> (i32, i32) {
    %c0_i32 = arith.constant 0 : i32
    %c0_i32_0 = arith.constant 0 : i32
    %c0_i32_1 = arith.constant 0 : i32
    return %c0_i32, %c0_i32_0 : i32, i32
  }
  func.func @transform_2(%arg0: i32, %arg1: i32) -> (i32, i32) {
    %c0_i32 = arith.constant 0 : i32
    %c0_i32_0 = arith.constant 0 : i32
    %c0_i32_1 = arith.constant 0 : i32
    return %c0_i32, %c0_i32_0 : i32, i32
  }
  func.func @transform_3(%arg0: i32, %arg1: i32) -> (i32, i32) {
    %c0_i32 = arith.constant 0 : i32
    %c0_i32_0 = arith.constant 0 : i32
    %c0_i32_1 = arith.constant 0 : i32
    return %c0_i32, %c0_i32_0 : i32, i32
  }
  func.func @transform_4(%arg0: i32, %arg1: i32) -> (i32, i32) {
    %c0_i32 = arith.constant 0 : i32
    %c0_i32_0 = arith.constant 0 : i32
    %c0_i32_1 = arith.constant 0 : i32
    return %c0_i32, %c0_i32_0 : i32, i32
  }
  func.func @transform_5(%arg0: i32, %arg1: i32) -> (i32, i32) {
    %c0_i32 = arith.constant 0 : i32
    %c0_i32_0 = arith.constant 0 : i32
    %c0_i32_1 = arith.constant 0 : i32
    return %c0_i32, %c0_i32_0 : i32, i32
  }
  func.func @transform_6(%arg0: i32, %arg1: i32) -> (i32, i32) {
    %c0_i32 = arith.constant 0 : i32
    %c0_i32_0 = arith.constant 0 : i32
    return %arg0, %c0_i32 : i32, i32
  }
}

</mosaic_0001>

<bundles_post_ra>
// kernel: tpu_custom_call.1
= control target key start
LH: loop header
LB: loop body
LE: loop exit
PB: predicated region body
PF: predicated region fallthrough
CT: control target
= control target key end

     0   :  { %11 = vsyncpa [#allocation6], 0  ;;  %s4984_s0 = inlined_call_operand.hbm [shape: f32[8,8,32], index: 0, kind: input, shape index: {}]   ;;  %s4985_s1 = inlined_call_operand.hbm [shape: f32[32,64], index: 1, kind: input, shape index: {}]   ;;  %s4986_s2 = inlined_call_operand.hbm [shape: f32[16,64], index: 2, kind: input, shape index: {}]   ;;  %s4987_s3 = inlined_call_operand.vmem [shape: f32[1,64], index: 3, kind: input, shape index: {}]   ;;  %s4988_s4 = inlined_call_operand.hbm [shape: f32[32,64], index: 4, kind: input, shape index: {}]   ;;  %s4989_s5 = inlined_call_operand.vmem [shape: f32[1,64], index: 5, kind: input, shape index: {}]   ;;  %s4990_s6 = inlined_call_operand.hbm [shape: f32[8,32], index: 6, kind: output, shape index: {}]  }
   0x1   :  { %12 = vsyncpa [#allocation9], 0 }
   0x2   :  { %13 = vsyncpa [#allocation12], 0 }
   0x3   :  { %14 = vsyncpa [#allocation7], 0  ;;  %s3938_s21 = smov [#allocation8]   ;;  %s3939_s23 = smov [#allocation5]  }
   0x4   :  { %s32_s22 = sshll.u32 %s3938_s21, 4  ;;  %s20_s24 = sshll.u32 %s3939_s23, 4  ;;  %s33_s22 = int_to_ptr.vmem [resolvable:$true] %s32_s22  ;;  %s3988_s24 = int_to_ptr.vmem [resolvable:$true] %s20_s24 }
   0x5   :  { %s3820_s27 = scalar_lea.hbm %s4985_s1, 512 }
   0x6   :  { %p3821_p0 = scmp.ne.s32.totalorder %s4985_s1, %s3820_s27  ;;  %p3824_p1 = scmp.lt.u32.totalorder %s3820_s27, %s4985_s1 }
   0x8   :  { %p3826_p2 = pnand %p3824_p1, %p3821_p0 }
   0xa   :  { %3829 = shalt.err (!%p3826_p2)
}
   0xb   :  { %s3830_s8 = scalar_lea.vmem %s33_s22, 512  ;;  %p3835_p4 = scmp.lt.s32.totalorder %s33_s22, %s33_s22 }
   0xc   :  { %p3831_p3 = scmp.ne.s32.totalorder %s33_s22, %s3830_s8  ;;  %p3836_p5 = scmp.lt.s32.totalorder %s3830_s8, %s3830_s8 }
   0xe   :  { %p3837_p6 = por %p3836_p5, %p3835_p4 }
  0x10   :  { %p3838_p7 = pnand %p3837_p6, %p3831_p3 }
  0x12   :  { %3841 = shalt.err (!%p3838_p7)
}
  0x13   :  { %s3940_s9 = smov 128   ;;  %s3941_s10 = smov 8  }
  0x14   :  { %38 = dma.hbm_to_vmem [thread:$0]  %s4985_s1, 512, %s33_s22, [#allocation9], %s3940_s9, %s3940_s9, %s3941_s10  }
  0x15   :  { %s3842_s15 = scalar_lea.hbm %s4984_s0, 1024 }
  0x16   :  { %p3843_p8 = scmp.ne.s32.totalorder %s4984_s0, %s3842_s15  ;;  %p3846_p9 = scmp.lt.u32.totalorder %s3842_s15, %s4984_s0 }
  0x18   :  { %p3848_p10 = pnand %p3846_p9, %p3843_p8 }
  0x1a   :  { %3851 = shalt.err (!%p3848_p10)
}
  0x1b   :  { %s3852_s20 = scalar_lea.vmem %s3988_s24, 1024  ;;  %p3857_p12 = scmp.lt.s32.totalorder %s3988_s24, %s3988_s24 }
  0x1c   :  { %p3853_p11 = scmp.ne.s32.totalorder %s3988_s24, %s3852_s20  ;;  %p3858_p13 = scmp.lt.s32.totalorder %s3852_s20, %s3852_s20 }
  0x1e   :  { %p3859_p0 = por %p3858_p13, %p3857_p12 }
  0x20   :  { %p3860_p1 = pnand %p3859_p0, %p3853_p11 }
  0x22   :  { %3863 = shalt.err (!%p3860_p1)
}
  0x23   :  { %26 = dma.hbm_to_vmem [thread:$0]  %s4984_s0, 1024, %s3988_s24, [#allocation6], %s3940_s9, %s3940_s9, %s3941_s10  }
  0x24   :  { %s3942_s22 = smov [#allocation10]   ;;  %s3943_s25 = smov [#allocation11]  }
  0x25   :  { %s44_s23 = sshll.u32 %s3942_s22, 4  ;;  %s58_s26 = sshll.u32 %s3943_s25, 4  ;;  %s45_s23 = int_to_ptr.vmem [resolvable:$true] %s44_s23  ;;  %s4025_s26 = int_to_ptr.vmem [resolvable:$true] %s58_s26 }
  0x26   :  { %s3864_s29 = scalar_lea.hbm %s4986_s2, 256 }
  0x27   :  { %p3865_p2 = scmp.ne.s32.totalorder %s4986_s2, %s3864_s29  ;;  %p3868_p3 = scmp.lt.u32.totalorder %s3864_s29, %s4986_s2 }
  0x29   :  { %p3870_p4 = pnand %p3868_p3, %p3865_p2 }
  0x2b   :  { %3873 = shalt.err (!%p3870_p4)
}
  0x2c   :  { %s3874_s0 = scalar_lea.vmem %s45_s23, 256  ;;  %p3879_p6 = scmp.lt.s32.totalorder %s45_s23, %s45_s23 }
  0x2d   :  { %p3875_p5 = scmp.ne.s32.totalorder %s45_s23, %s3874_s0  ;;  %p3880_p7 = scmp.lt.s32.totalorder %s3874_s0, %s3874_s0 }
  0x2f   :  { %p3881_p8 = por %p3880_p7, %p3879_p6 }
  0x31   :  { %p3882_p9 = pnand %p3881_p8, %p3875_p5 }
  0x33   :  { %3885 = shalt.err (!%p3882_p9)
}
  0x34   :  { %50 = dma.hbm_to_vmem [thread:$0]  %s4986_s2, 256, %s45_s23, [#allocation9], %s3940_s9, %s3940_s9, %s3941_s10  }
  0x35   :  { %s3886_s15 = scalar_lea.hbm %s4988_s4, 512 }
  0x36   :  { %p3887_p10 = scmp.ne.s32.totalorder %s4988_s4, %s3886_s15  ;;  %p3890_p11 = scmp.lt.u32.totalorder %s3886_s15, %s4988_s4 }
  0x38   :  { %p3892_p12 = pnand %p3890_p11, %p3887_p10 }
  0x3a   :  { %3895 = shalt.err (!%p3892_p12)
}
  0x3b   :  { %s3896_s20 = scalar_lea.vmem %s4025_s26, 512  ;;  %p3901_p0 = scmp.lt.s32.totalorder %s4025_s26, %s4025_s26 }
  0x3c   :  { %p3897_p13 = scmp.ne.s32.totalorder %s4025_s26, %s3896_s20  ;;  %p3902_p1 = scmp.lt.s32.totalorder %s3896_s20, %s3896_s20 }
  0x3e   :  { %p3903_p2 = por %p3902_p1, %p3901_p0 }
  0x40   :  { %p3904_p3 = pnand %p3903_p2, %p3897_p13 }
  0x42   :  { %3907 = shalt.err (!%p3904_p3)
}
  0x43   :  { %64 = dma.hbm_to_vmem [thread:$0]  %s4988_s4, 512, %s4025_s26, [#allocation12], %s3940_s9, %s3940_s9, %s3941_s10  }
  0x44   :  { %3930 = dma.done.wait [#allocation6], 1024  }
  0x45   :  { %3931 = vsyncadd [#allocation6], 4294966272 }
  0x46   :  { %3932 = dma.done.wait [#allocation9], 768  }
  0x47   :  { %3933 = vsyncadd [#allocation9], 4294966528 }
  0x48   :  { %3934 = dma.done.wait [#allocation12], 512  }
  0x49   :  { %3935 = vsyncadd [#allocation12], 4294966784  ;;  %v3944_v0 = vmov 0.0|0.0   ;;  %vm3945_vm0 = vmmov 0   ;;  %v3946_v1 = vmov 0.0   ;;  %vm83_vm1 = vcmask 130048  }
  0x4a   :  { %3255 = vmatprep.subr.bf16.mxu1 %v3944_v0  ;;  %3184 = vmatprep.mubr.msk.f32.mxu1 %vm3945_vm0, %v3946_v1  ;;  %84 = vst.msk [vmem:[#allocation3] sm:$0xff] %vm83_vm1, %v3946_v1  ;;  %85 = vst.msk [vmem:[#allocation4] sm:$0xff] %vm83_vm1, %v3946_v1  ;;  %vm105_vm2 = vcmask 261120   ;;  %v87_v2 = vld [vmem:[#allocation8] sm:$0xff]  ;;  %v88_v3 = vld [vmem:[#allocation8 + $0x8] sm:$0xff]  ;;  %vm235_vm3 = vcmask 523264  }
  0x4b   :  { %v89_v4 = vld [vmem:[#allocation8 + $0x10] sm:$0xff]  ;;  %v3247_v5 = vpack.c.bf16 %v88_v3, %v87_v2  ;;  %v90_v6 = vld [vmem:[#allocation8 + $0x18] sm:$0xff]  ;;  %v91_v7 = vld [vmem:[#allocation5] sm:$0xff]  ;;  %s3948_s10 = smov 16   ;;  %vm595_vm4 = vcmask 1041409   ;;  %vm598_vm5 = vcmask 1042434  }
  0x4c   :  { %v3251_v8 = vpack.c.bf16 %v90_v6, %v89_v4  ;;  %3168 = vmatprep.mubr.msk.f32.mxu0 %vm105_vm2, %v91_v7  ;;  %v244_v9 = vld [vmem:[#allocation10] sm:$0xff]  ;;  %v245_v10 = vld [vmem:[#allocation10 + $0x8] sm:$0xff]  ;;  %v93_v14 = vld [vmem:[#allocation5 + $0x10] sm:$0xff]  ;;  %vm601_vm6 = vcmask 1043459   ;;  %vm604_vm7 = vcmask 1044484   ;;  %vm607_vm8 = vcmask 1045509  }
  0x4d   :  { %3248 = vmatprep.subr.bf16.mxu0 %v3247_v5  ;;  %v4070_v11 = vpack.c.bf16 %v245_v10, %v244_v9  ;;  %v92_v13 = vld [vmem:[#allocation5 + $0x8] sm:$0xff]  ;;  %v94_v15 = vld [vmem:[#allocation5 + $0x18] sm:$0xff]  ;;  %v95_v16 = vld [vmem:[#allocation5 + $0x20] sm:$0xff]  ;;  %vm610_vm9 = vcmask 1046534   ;;  %vm613_vm10 = vcmask 1047559   ;;  %s3949_s21 = smov 96  }
  0x4e   :  { %3250 = vmatpush3.bf16.msra.mxu0 %v3247_v5  ;;  %v96_v17 = vld [vmem:[#allocation5 + $0x28] sm:$0xff]  ;;  %v97_v18 = vld [vmem:[#allocation5 + $0x30] sm:$0xff]  ;;  %v98_v19 = vld [vmem:[#allocation5 + $0x38] sm:$0xff]  ;;  %s3951_s25 = smov 112   ;;  %s3952_s26 = smov [#allocation13]   ;;  %vm3016_vm11 = vcmask 261248  }
  0x4f   :  { %3252 = vmatprep.subr.bf16.mxu0 %v3251_v8  ;;  %3257 = vmatpush3.bf16.msra.mxu1 %v4070_v11  ;;  %v3035_v20 = vld [vmem:[%s4987_s3] ss:$0 sm:$0xff]  ;;  %s3947_s3 = smov 80   ;;  %s3024_s27 = sshll.u32 %s3952_s26, 4  ;;  %s3025_s27 = int_to_ptr.vmem [resolvable:$true] %s3024_s27 }
  0x50   :  { %3258 = vmatprep.subr.bf16.mxu1 %v3944_v0  ;;  %s3908_s28 = scalar_lea.vmem %s3025_s27, 128  ;;  %p3913_p5 = scmp.lt.s32.totalorder %s3025_s27, %s3025_s27 }
  0x51   :  { %v246_v12 = vld [vmem:[#allocation3] sm:$0xff]  ;;  %v247_v6 = vld [vmem:[#allocation4] sm:$0xff]  ;;  %p3909_p4 = scmp.ne.s32.totalorder %s3025_s27, %s3908_s28  ;;  %p3914_p6 = scmp.lt.s32.totalorder %s3908_s28, %s3908_s28 }
  0x52   :  { %3254 = vmatpush3.bf16.msra.mxu0 %v3251_v8  ;;  %3185 = vmatmul.mubr.msk.f32.vlgmr.msra.gmra.mrb[0].mxu1 %vm83_vm1, %v246_v12  ;;  %v412_v9 = vrot.slane %v247_v6, 2  ;;  %v411_v10 = vrot.slane %v247_v6, 1  ;;  %v413_v12 = vrot.slane %v247_v6, 3 }
  0x53   :  { %3270 = vmatprep.subr.bf16.mxu0 %v3944_v0  ;;  %3260 = vmatpush3.bf16.msra.mxu1 %v4070_v11  ;;  %p3915_p7 = por %p3914_p6, %p3913_p5 }
  0x54   :  { %3191 = vmatprep.mubr.msk.f32.mxu1 %vm3945_vm0, %v3946_v1  ;;  %3261 = vmatprep.subr.bf16.mxu1 %v3944_v0 }
  0x55   :  { %3169 = vmatmul.mubr.msk.f32.vlgmr.msra.gmra.mrb[0].mxu0 %vm105_vm2, %v92_v13  ;;  %v414_v13 = vrot.slane %v247_v6, 4  ;;  %p3916_p8 = pnand %p3915_p7, %p3909_p4 }
  0x56   :  { %3171 = vmatprep.mubr.msk.f32.mxu0 %vm105_vm2, %v93_v14  ;;  %3272 = vmatpush3.bf16.msra.mxu0 %v4070_v11  ;;  %v416_v14 = vrot.slane %v247_v6, 6 }
  0x57   :  { %3276 = vmatprep.subr.bf16.mxu0 %v3944_v0 }
  0x59   :  { %3172 = vmatmul.mubr.msk.f32.gmra.mrb[2].mxu0 %vm105_vm2, %v94_v15  ;;  %v415_v15 = vrot.slane %v247_v6, 5 }
  0x5a   :  { %3174 = vmatprep.mubr.msk.f32.mxu0 %vm105_vm2, %v95_v16  ;;  %v417_v16 = vrot.slane %v247_v6, 7 }
  0x5d   :  { %3175 = vmatmul.mubr.msk.f32.gmra.mrb[4].mxu0 %vm105_vm2, %v96_v17 }
  0x5e   :  { %3177 = vmatprep.mubr.msk.f32.mxu0 %vm105_vm2, %v97_v18 }
  0x61   :  { %3178 = vmatmul.mubr.msk.f32.gmra.mrb[6].mxu0 %vm105_vm2, %v98_v19 }
  0x62   :  { %3219 = vmatprep.mubr.msk.f32.mxu0 %vm3945_vm0, %v3946_v1 }
 0x125   :  { %v326_v21 = vpop.f32.mrb[0].mxu1 }
 0x126   :  { %v3186_v22 = vpop.f32.mrb[1].mxu1  ;;  %v331_v31 = vrot.slane %v326_v21, 1  ;;  %v333_v41 = vrot.slane %v326_v21, 3  ;;  %v332_v45 = vrot.slane %v326_v21, 2  ;;  %v335_v50 = vrot.slane %v326_v21, 5 }
 0x127   :  { %v334_v52 = vrot.slane %v326_v21, 4  ;;  %v337_v56 = vrot.slane %v326_v21, 7  ;;  %v336_v57 = vrot.slane %v326_v21, 6 }
 0x128   :  { %v3170_v23 = vpop.f32.mrb[0].mxu0 }
 0x129   :  { %v202_v24 = vadd.f32 %v3170_v23, %v3035_v20  ;;  %v196_v25 = vpop.f32.mrb[1].mxu0 }
 0x12a   :  { %v197_v26 = vadd.f32 %v3035_v20, %v196_v25 }
 0x12b   :  { %237 = vst.msk [vmem:[#allocation2 + $0x8] sm:$0xff] %vm235_vm3, %v202_v24 }
 0x12c   :  { %236 = vst.msk [vmem:[#allocation2] sm:$0xff] %vm235_vm3, %v197_v26  ;;  %v3173_v27 = vpop.f32.mrb[2].mxu0 }
 0x12d   :  { %v212_v28 = vadd.f32 %v3173_v27, %v3035_v20  ;;  %v206_v29 = vpop.f32.mrb[3].mxu0 }
 0x12e   :  { %v207_v30 = vadd.f32 %v3035_v20, %v206_v29 }
 0x12f   :  { %239 = vst.msk [vmem:[#allocation2 + $0x18] sm:$0xff] %vm235_vm3, %v212_v28 }
 0x130   :  { %238 = vst.msk [vmem:[#allocation2 + $0x10] sm:$0xff] %vm235_vm3, %v207_v30  ;;  %v3176_v32 = vpop.f32.mrb[4].mxu0 }
 0x131   :  { %v222_v33 = vadd.f32 %v3176_v32, %v3035_v20  ;;  %v216_v34 = vpop.f32.mrb[5].mxu0 }
 0x132   :  { %v217_v35 = vadd.f32 %v3035_v20, %v216_v34  ;;  %v249_v36 = vld [vmem:[#allocation2 + $0x8] sm:$0x1] }
 0x133   :  { %241 = vst.msk [vmem:[#allocation2 + $0x28] sm:$0xff] %vm235_vm3, %v222_v33  ;;  %v4099_v37 = vadd.f32 %v331_v31, %v249_v36  ;;  %v248_v38 = vld [vmem:[#allocation2] sm:$0x1] }
 0x134   :  { %240 = vst.msk [vmem:[#allocation2 + $0x20] sm:$0xff] %vm235_vm3, %v217_v35  ;;  %v3179_v39 = vpop.f32.mrb[6].mxu0  ;;  %v4102_v40 = vadd.f32 %v326_v21, %v248_v38 }
 0x135   :  { %v232_v42 = vadd.f32 %v3179_v39, %v3035_v20  ;;  %v226_v43 = vpop.f32.mrb[7].mxu0  ;;  %3300 = vtanh.f32 %v4099_v37  ;;  %v3046_v17 = vmul.f32 -1.442695, %v4099_v37 }
 0x136   :  { %v251_v44 = vld [vmem:[#allocation2 + $0x18] sm:$0x1]  ;;  %v227_v46 = vadd.f32 %v3035_v20, %v226_v43  ;;  %3302 = vtanh.f32 %v4102_v40  ;;  %v3045_v18 = vmul.f32 -1.442695, %v4102_v40 }
 0x137   :  { %v250_v47 = vld [vmem:[#allocation2 + $0x10] sm:$0x1]  ;;  %v349_v48 = vadd.f32 %v333_v41, %v251_v44  ;;  %243 = vst.msk [vmem:[#allocation2 + $0x38] sm:$0xff] %vm235_vm3, %v232_v42 }
 0x138   :  { %v348_v49 = vadd.f32 %v332_v45, %v250_v47  ;;  %242 = vst.msk [vmem:[#allocation2 + $0x30] sm:$0xff] %vm235_vm3, %v227_v46 }
 0x139   :  { %3304 = vtanh.f32 %v349_v48  ;;  %v3048_v19 = vmul.f32 -1.442695, %v349_v48 }
 0x13a   :  { %v253_v51 = vld [vmem:[#allocation2 + $0x28] sm:$0x1]  ;;  %3306 = vtanh.f32 %v348_v49  ;;  %v3047_v20 = vmul.f32 -1.442695, %v348_v49 }
 0x13b   :  { %v351_v53 = vadd.f32 %v335_v50, %v253_v51  ;;  %v252_v54 = vld [vmem:[#allocation2 + $0x20] sm:$0x1] }
 0x13c   :  { %v350_v55 = vadd.f32 %v334_v52, %v252_v54 }
 0x13d   :  { %3308 = vtanh.f32 %v351_v53  ;;  %v3050_v21 = vmul.f32 -1.442695, %v351_v53 }
 0x13e   :  { %3310 = vtanh.f32 %v350_v55  ;;  %v255_v58 = vld [vmem:[#allocation2 + $0x38] sm:$0x1]  ;;  %v3049_v22 = vmul.f32 -1.442695, %v350_v55 }
 0x13f   :  { %v3301_v59 = vpop.eup %3300  ;;  %v353_v60 = vadd.f32 %v337_v56, %v255_v58  ;;  %v254_v61 = vld [vmem:[#allocation2 + $0x30] sm:$0x1] }
 0x140   :  { %v3303_v62 = vpop.eup %3302  ;;  %460 = vrot.lane.b32.xlu0 %v3301_v59, %s3947_s3  ;;  %v352_v63 = vadd.f32 %v336_v57, %v254_v61 }
 0x141   :  { %458 = vrot.lane.b32.xlu1 %v3303_v62, %s3947_s3  ;;  %3312 = vtanh.f32 %v353_v60  ;;  %v3052_v25 = vmul.f32 -1.442695, %v353_v60 }
 0x142   :  { %3314 = vtanh.f32 %v352_v63  ;;  %v3051_v23 = vmul.f32 -1.442695, %v352_v63 }
 0x143   :  { %v3305_v2 = vpop.eup %3304  ;;  %3316 = vpow2.f32 %v3046_v17 }
 0x144   :  { %v3307_v3 = vpop.eup %3306  ;;  %3318 = vpow2.f32 %v3045_v18 }
 0x145   :  { %464 = vrot.lane.b32.xlu1 %v3305_v2, %s3947_s3  ;;  %462 = vrot.lane.b32.xlu0 %v3307_v3, %s3947_s3  ;;  %3320 = vpow2.f32 %v3048_v19 }
 0x146   :  { %3322 = vpow2.f32 %v3047_v20 }
 0x147   :  { %v3309_v4 = vpop.eup %3308  ;;  %3324 = vpow2.f32 %v3050_v21 }
 0x148   :  { %v3311_v5 = vpop.eup %3310  ;;  %3326 = vpow2.f32 %v3049_v22 }
 0x149   :  { %468 = vrot.lane.b32.xlu1 %v3309_v4, %s3947_s3  ;;  %466 = vrot.lane.b32.xlu0 %v3311_v5, %s3947_s3  ;;  %3328 = vpow2.f32 %v3051_v23 }
 0x14a   :  { %3330 = vpow2.f32 %v3052_v25 }
 0x14b   :  { %v3313_v7 = vpop.eup %3312 }
 0x14c   :  { %v3315_v8 = vpop.eup %3314 }
 0x14d   :  { %472 = vrot.lane.b32.xlu1 %v3313_v7, %s3947_s3  ;;  %470 = vrot.lane.b32.xlu0 %v3315_v8, %s3947_s3  ;;  %v3317_v24 = vpop.eup %3316 }
 0x14e   :  { %v379_v26 = vadd.f32 1.0, %v3317_v24  ;;  %v3319_v27 = vpop.eup %3318 }
 0x14f   :  { %v3321_v28 = vpop.eup %3320  ;;  %v378_v29 = vadd.f32 1.0, %v3319_v27 }
 0x150   :  { %3332 = vrcp.f32 %v379_v26  ;;  %v3323_v30 = vpop.eup %3322  ;;  %v381_v31 = vadd.f32 1.0, %v3321_v28 }
 0x151   :  { %422 = vrot.lane.b32.xlu1 %v412_v9, %s3948_s10  ;;  %420 = vrot.lane.b32.xlu0 %v411_v10, %s3948_s10  ;;  %v3325_v32 = vpop.eup %3324  ;;  %3334 = vrcp.f32 %v378_v29  ;;  %v380_v33 = vadd.f32 1.0, %v3323_v30 }
 0x152   :  { %v3327_v34 = vpop.eup %3326  ;;  %3336 = vrcp.f32 %v381_v31  ;;  %v383_v35 = vadd.f32 1.0, %v3325_v32 }
 0x153   :  { %v3329_v36 = vpop.eup %3328  ;;  %3338 = vrcp.f32 %v380_v33  ;;  %v382_v37 = vadd.f32 1.0, %v3327_v34 }
 0x154   :  { %v3331_v38 = vpop.eup %3330  ;;  %3340 = vrcp.f32 %v383_v35  ;;  %v384_v39 = vadd.f32 1.0, %v3329_v36 }
 0x155   :  { %424 = vrot.lane.b32.xlu1 %v413_v12, %s3948_s10  ;;  %418 = vrot.lane.b32.xlu0 %v247_v6, %s3948_s10  ;;  %3342 = vrcp.f32 %v382_v37  ;;  %v385_v44 = vadd.f32 1.0, %v3331_v38 }
 0x156   :  { %3344 = vrcp.f32 %v384_v39 }
 0x157   :  { %3346 = vrcp.f32 %v385_v44 }
 0x159   :  { %426 = vrot.lane.b32.xlu1 %v414_v13, %s3948_s10  ;;  %430 = vrot.lane.b32.xlu0 %v416_v14, %s3948_s10 }
 0x15a   :  { %v4126_v40 = vpop.eup %3332 }
 0x15b   :  { %v4130_v45 = vpop.eup %3334 }
 0x15c   :  { %v4132_v46 = vpop.eup %3336 }
 0x15d   :  { %428 = vrot.lane.b32.xlu1 %v415_v15, %s3948_s10  ;;  %432 = vrot.lane.b32.xlu0 %v417_v16, %s3948_s10  ;;  %v4137_v51 = vpop.eup %3338 }
 0x15e   :  { %v4140_v52 = vpop.eup %3340 }
 0x15f   :  { %v4145_v57 = vpop.eup %3342 }
 0x160   :  { %v4148_v58 = vpop.eup %3344 }
 0x161   :  { %v4154_v63 = vpop.eup %3346 }
 0x1b2   :  { %v461_v41 = vpop.permute.xlu0 %460 }
 0x1b3   :  { %v483_v42 = vmul.f32 %v4126_v40, %v461_v41  ;;  %v459_v43 = vpop.permute.xlu1 %458 }
 0x1b4   :  { %v482_v47 = vmul.f32 %v4130_v45, %v459_v43 }
 0x1b5   :  { %500 = vrot.lane.b32.xlu0 %v483_v42, %s3948_s10 }
 0x1b7   :  { %v465_v48 = vpop.permute.xlu1 %464  ;;  %v463_v49 = vpop.permute.xlu0 %462 }
 0x1b8   :  { %v485_v50 = vmul.f32 %v4132_v46, %v465_v48  ;;  %v484_v53 = vmul.f32 %v4137_v51, %v463_v49 }
 0x1b9   :  { %498 = vrot.lane.b32.xlu0 %v482_v47, %s3948_s10 }
 0x1ba   :  { %504 = vrot.lane.b32.xlu1 %v485_v50, %s3948_s10 }
 0x1bb   :  { %v469_v54 = vpop.permute.xlu1 %468  ;;  %v467_v55 = vpop.permute.xlu0 %466 }
 0x1bc   :  { %v487_v56 = vmul.f32 %v4140_v52, %v469_v54  ;;  %v486_v60 = vmul.f32 %v4145_v57, %v467_v55 }
 0x1bd   :  { %502 = vrot.lane.b32.xlu0 %v484_v53, %s3948_s10 }
 0x1be   :  { %508 = vrot.lane.b32.xlu1 %v487_v56, %s3948_s10 }
 0x1bf   :  { %v471_v59 = vpop.permute.xlu0 %470  ;;  %v473_v62 = vpop.permute.xlu1 %472 }
 0x1c0   :  { %v488_v61 = vmul.f32 %v4148_v58, %v471_v59  ;;  %v489_v2 = vmul.f32 %v4154_v63, %v473_v62 }
 0x1c2   :  { %506 = vrot.lane.b32.xlu1 %v486_v60, %s3948_s10  ;;  %510 = vrot.lane.b32.xlu0 %v488_v61, %s3948_s10 }
 0x1c3   :  { %v421_v3 = vpop.permute.xlu0 %420  ;;  %v423_v4 = vpop.permute.xlu1 %422 }
 0x1c4   :  { %v443_v10 = vmul.f32 %v4126_v40, %v421_v3  ;;  %v444_v21 = vmul.f32 %v4137_v51, %v423_v4 }
 0x1c6   :  { %512 = vrot.lane.b32.xlu1 %v489_v2, %s3948_s10 }
 0x1c7   :  { %v419_v5 = vpop.permute.xlu0 %418  ;;  %v425_v6 = vpop.permute.xlu1 %424 }
 0x1c8   :  { %v442_v15 = vmul.f32 %v4130_v45, %v419_v5  ;;  %v445_v16 = vmul.f32 %v4132_v46, %v425_v6 }
 0x1cb   :  { %v431_v7 = vpop.permute.xlu0 %430  ;;  %v427_v8 = vpop.permute.xlu1 %426 }
 0x1cc   :  { %v446_v27 = vmul.f32 %v4145_v57, %v427_v8  ;;  %v448_v29 = vmul.f32 %v4148_v58, %v431_v7 }
 0x1cf   :  { %v433_v9 = vpop.permute.xlu0 %432  ;;  %v429_v13 = vpop.permute.xlu1 %428 }
 0x1d0   :  { %v447_v23 = vmul.f32 %v4140_v52, %v429_v13  ;;  %v449_v34 = vmul.f32 %v4154_v63, %v433_v9 }
 0x227   :  { %v501_v12 = vpop.permute.xlu0 %500 }
 0x228   :  { %v4159_v14 = vadd.f32 %v501_v12, %v443_v10 }
 0x22a   :  { %3348 = vtanh.f32 %v4159_v14 }
 0x22b   :  { %v499_v17 = vpop.permute.xlu0 %498 }
 0x22c   :  { %v4164_v18 = vadd.f32 %v499_v17, %v442_v15  ;;  %v505_v19 = vpop.permute.xlu1 %504 }
 0x22d   :  { %v4166_v20 = vadd.f32 %v505_v19, %v445_v16 }
 0x22e   :  { %3350 = vtanh.f32 %v4164_v18 }
 0x22f   :  { %3352 = vtanh.f32 %v4166_v20  ;;  %v503_v22 = vpop.permute.xlu0 %502 }
 0x230   :  { %v4172_v24 = vadd.f32 %v503_v22, %v444_v21  ;;  %v509_v25 = vpop.permute.xlu1 %508 }
 0x231   :  { %v4175_v26 = vadd.f32 %v509_v25, %v447_v23  ;;  %v579_v23 = vld [vmem:[#allocation2 + $0x9] sm:$0x1]  ;;  %v580_v25 = vld [vmem:[#allocation2 + $0x11] sm:$0x1] }
 0x232   :  { %3354 = vtanh.f32 %v4172_v24 }
 0x233   :  { %3356 = vtanh.f32 %v4175_v26 }
 0x234   :  { %v3349_v28 = vpop.eup %3348  ;;  %v507_v30 = vpop.permute.xlu1 %506 }
 0x235   :  { %v511_v31 = vpop.permute.xlu0 %510  ;;  %v4179_v32 = vadd.f32 %v507_v30, %v446_v27  ;;  %548 = vrot.lane.b32.xlu0 %v3349_v28, %s3948_s10 }
 0x236   :  { %v4183_v33 = vadd.f32 %v511_v31, %v448_v29  ;;  %v582_v31 = vld [vmem:[#allocation2 + $0x21] sm:$0x1] }
 0x237   :  { %3358 = vtanh.f32 %v4179_v32 }
 0x238   :  { %v3351_v35 = vpop.eup %3350  ;;  %v513_v36 = vpop.permute.xlu1 %512  ;;  %3360 = vtanh.f32 %v4183_v33 }
 0x239   :  { %v3353_v37 = vpop.eup %3352  ;;  %v4187_v38 = vadd.f32 %v513_v36, %v449_v34  ;;  %546 = vrot.lane.b32.xlu0 %v3351_v35, %s3948_s10  ;;  %v581_v34 = vld [vmem:[#allocation2 + $0x19] sm:$0x1] }
 0x23a   :  { %552 = vrot.lane.b32.xlu1 %v3353_v37, %s3948_s10 }
 0x23b   :  { %3362 = vtanh.f32 %v4187_v38 }
 0x23c   :  { %v3355_v39 = vpop.eup %3354 }
 0x23d   :  { %v3357_v41 = vpop.eup %3356 }
 0x23e   :  { %550 = vrot.lane.b32.xlu1 %v3355_v39, %s3948_s10 }
 0x241   :  { %v3359_v42 = vpop.eup %3358 }
 0x242   :  { %556 = vrot.lane.b32.xlu1 %v3357_v41, %s3948_s10  ;;  %554 = vrot.lane.b32.xlu0 %v3359_v42, %s3948_s10  ;;  %v3361_v43 = vpop.eup %3360  ;;  %v584_v42 = vld [vmem:[#allocation2 + $0x31] sm:$0x1] }
 0x245   :  { %v3363_v44 = vpop.eup %3362 }
 0x246   :  { %560 = vrot.lane.b32.xlu1 %v3363_v44, %s3948_s10  ;;  %558 = vrot.lane.b32.xlu0 %v3361_v43, %s3948_s10  ;;  %v583_v43 = vld [vmem:[#allocation2 + $0x29] sm:$0x1] }
 0x2a7   :  { %v549_v47 = vpop.permute.xlu0 %548 }
 0x2a8   :  { %v571_v50 = vmul.f32 %v4126_v40, %v549_v47 }
 0x2aa   :  { %v594_v56 = vrot.slane %v571_v50, 7 }
 0x2ab   :  { %v547_v49 = vpop.permute.xlu0 %546 }
 0x2ac   :  { %v553_v48 = vpop.permute.xlu1 %552  ;;  %v570_v53 = vmul.f32 %v4130_v45, %v547_v49  ;;  %v585_v49 = vld [vmem:[#allocation2 + $0x39] sm:$0x1] }
 0x2ad   :  { %v573_v59 = vmul.f32 %v4132_v46, %v553_v48 }
 0x2ae   :  { %v596_v61 = vsel %vm595_vm4, %v594_v56, %v570_v53 }
 0x2af   :  { %v600_v45 = vrot.slane %v573_v59, 5 }
 0x2b0   :  { %v551_v54 = vpop.permute.xlu1 %550 }
 0x2b1   :  { %v572_v55 = vmul.f32 %v4137_v51, %v551_v54 }
 0x2b3   :  { %v597_v60 = vrot.slane %v572_v55, 6 }
 0x2b4   :  { %v557_v62 = vpop.permute.xlu1 %556  ;;  %v555_v2 = vpop.permute.xlu0 %554 }
 0x2b5   :  { %v599_v3 = vsel %vm598_vm5, %v597_v60, %v596_v61  ;;  %v575_v4 = vmul.f32 %v4140_v52, %v557_v62  ;;  %v574_v40 = vmul.f32 %v4145_v57, %v555_v2 }
 0x2b6   :  { %v602_v6 = vsel %vm601_vm6, %v600_v45, %v599_v3 }
 0x2b7   :  { %v603_v5 = vrot.slane %v574_v40, 4  ;;  %v606_v51 = vrot.slane %v575_v4, 3 }
 0x2b8   :  { %v561_v46 = vpop.permute.xlu1 %560  ;;  %v559_v7 = vpop.permute.xlu0 %558 }
 0x2b9   :  { %v605_v8 = vsel %vm604_vm7, %v603_v5, %v602_v6  ;;  %v577_v9 = vmul.f32 %v4154_v63, %v561_v46  ;;  %v576_v10 = vmul.f32 %v4148_v58, %v559_v7  ;;  %v578_v63 = vld [vmem:[#allocation2 + $0x1] sm:$0x1] }
 0x2ba   :  { %v608_v57 = vsel %vm607_vm8, %v606_v51, %v605_v8 }
 0x2bb   :  { %v612_v52 = vrot.slane %v577_v9, 1  ;;  %v609_v12 = vrot.slane %v576_v10, 2 }
 0x2bd   :  { %v611_v13 = vsel %vm610_vm9, %v609_v12, %v608_v57 }
 0x2be   :  { %v614_v15 = vsel %vm613_vm10, %v612_v52, %v611_v13 }
 0x2bf   :  { %615 = vrot.lane.b32.xlu0 %v614_v15, %s3949_s21 }
 0x331   :  { %v616_v16 = vpop.permute.xlu0 %615 }
 0x332   :  { %3192 = vmatmul.mubr.msk.f32.vlgmr.msra.gmra.mrb[2].mxu1 %vm83_vm1, %v616_v16 }
 0x333   :  { %3263 = vmatpush3.bf16.msra.mxu1 %v4070_v11  ;;  %3198 = vmatprep.mubr.msk.f32.mxu1 %vm3945_vm0, %v3946_v1 }
 0x334   :  { %3264 = vmatprep.subr.bf16.mxu1 %v3944_v0 }
 0x405   :  { %v685_v58 = vpop.f32.mrb[2].mxu1 }
 0x406   :  { %v3193_v17 = vpop.f32.mrb[3].mxu1  ;;  %v705_v19 = vadd.f32 %v685_v58, %v578_v63  ;;  %v690_v21 = vrot.slane %v685_v58, 1  ;;  %v691_v22 = vrot.slane %v685_v58, 2  ;;  %v693_v27 = vrot.slane %v685_v58, 4 }
 0x407   :  { %v692_v29 = vrot.slane %v685_v58, 3  ;;  %v695_v35 = vrot.slane %v685_v58, 6  ;;  %v694_v39 = vrot.slane %v685_v58, 5  ;;  %v696_v47 = vrot.slane %v685_v58, 7 }
 0x408   :  { %3364 = vtanh.f32 %v705_v19  ;;  %v706_v28 = vadd.f32 %v690_v21, %v579_v23  ;;  %v707_v30 = vadd.f32 %v691_v22, %v580_v25  ;;  %v709_v36 = vadd.f32 %v693_v27, %v582_v31 }
 0x409   :  { %v708_v41 = vadd.f32 %v692_v29, %v581_v34  ;;  %v711_v44 = vadd.f32 %v695_v35, %v584_v42  ;;  %v710_v48 = vadd.f32 %v694_v39, %v583_v43  ;;  %v712_v50 = vadd.f32 %v696_v47, %v585_v49 }
 0x40a   :  { %3366 = vtanh.f32 %v706_v28  ;;  %v3054_v62 = vmul.f32 -1.442695, %v705_v19  ;;  %v3055_v2 = vmul.f32 -1.442695, %v706_v28  ;;  %v3056_v3 = vmul.f32 -1.442695, %v707_v30 }
 0x40b   :  { %3368 = vtanh.f32 %v707_v30  ;;  %v3058_v4 = vmul.f32 -1.442695, %v709_v36  ;;  %v3057_v45 = vmul.f32 -1.442695, %v708_v41  ;;  %v3060_v5 = vmul.f32 -1.442695, %v711_v44 }
 0x40c   :  { %3370 = vtanh.f32 %v709_v36  ;;  %v3059_v6 = vmul.f32 -1.442695, %v710_v48  ;;  %v3061_v46 = vmul.f32 -1.442695, %v712_v50 }
 0x40d   :  { %3372 = vtanh.f32 %v708_v41 }
 0x40e   :  { %3374 = vtanh.f32 %v711_v44 }
 0x40f   :  { %3376 = vtanh.f32 %v710_v48 }
 0x410   :  { %3378 = vtanh.f32 %v712_v50 }
 0x411   :  { %3380 = vpow2.f32 %v3054_v62 }
 0x412   :  { %v3365_v37 = vpop.eup %3364  ;;  %3382 = vpow2.f32 %v3055_v2 }
 0x413   :  { %785 = vrot.lane.b32.xlu1 %v3365_v37, %s3947_s3  ;;  %3384 = vpow2.f32 %v3056_v3 }
 0x414   :  { %v3367_v53 = vpop.eup %3366  ;;  %3386 = vpow2.f32 %v3058_v4 }
 0x415   :  { %v3369_v54 = vpop.eup %3368  ;;  %3388 = vpow2.f32 %v3057_v45 }
 0x416   :  { %789 = vrot.lane.b32.xlu0 %v3369_v54, %s3947_s3  ;;  %v3371_v55 = vpop.eup %3370  ;;  %3390 = vpow2.f32 %v3060_v5 }
 0x417   :  { %787 = vrot.lane.b32.xlu1 %v3367_v53, %s3947_s3  ;;  %v3373_v56 = vpop.eup %3372 }
 0x418   :  { %v3375_v59 = vpop.eup %3374 }
 0x419   :  { %v3377_v60 = vpop.eup %3376 }
 0x41a   :  { %791 = vrot.lane.b32.xlu0 %v3373_v56, %s3947_s3  ;;  %v3379_v61 = vpop.eup %3378 }
 0x41b   :  { %793 = vrot.lane.b32.xlu1 %v3371_v55, %s3947_s3  ;;  %v3381_v40 = vpop.eup %3380 }
 0x41c   :  { %v737_v51 = vadd.f32 1.0, %v3381_v40  ;;  %v3383_v7 = vpop.eup %3382 }
 0x41d   :  { %v3385_v8 = vpop.eup %3384  ;;  %v738_v9 = vadd.f32 1.0, %v3383_v7 }
 0x41e   :  { %795 = vrot.lane.b32.xlu0 %v3377_v60, %s3947_s3  ;;  %3392 = vrcp.f32 %v737_v51  ;;  %v3387_v10 = vpop.eup %3386  ;;  %v739_v52 = vadd.f32 1.0, %v3385_v8 }
 0x41f   :  { %797 = vrot.lane.b32.xlu1 %v3375_v59, %s3947_s3  ;;  %3394 = vpow2.f32 %v3059_v6  ;;  %v3389_v12 = vpop.eup %3388  ;;  %v741_v13 = vadd.f32 1.0, %v3387_v10 }
 0x420   :  { %3396 = vpow2.f32 %v3061_v46  ;;  %v3391_v57 = vpop.eup %3390  ;;  %v740_v58 = vadd.f32 1.0, %v3389_v12 }
 0x421   :  { %3398 = vrcp.f32 %v738_v9  ;;  %v743_v19 = vadd.f32 1.0, %v3391_v57 }
 0x422   :  { %799 = vrot.lane.b32.xlu0 %v3379_v61, %s3947_s3  ;;  %3400 = vrcp.f32 %v739_v52 }
 0x423   :  { %3402 = vrcp.f32 %v741_v13 }
 0x424   :  { %3404 = vrcp.f32 %v740_v58 }
 0x425   :  { %3406 = vrcp.f32 %v743_v19 }
 0x428   :  { %v4227_v15 = vpop.eup %3392 }
 0x429   :  { %v3395_v63 = vpop.eup %3394  ;;  %v769_v55 = vmul.f32 %v4227_v15, %v4164_v18 }
 0x42a   :  { %v742_v21 = vadd.f32 1.0, %v3395_v63  ;;  %v3397_v22 = vpop.eup %3396 }
 0x42b   :  { %v744_v23 = vadd.f32 1.0, %v3397_v22  ;;  %v4231_v25 = vpop.eup %3398 }
 0x42c   :  { %3408 = vrcp.f32 %v742_v21  ;;  %v4233_v28 = vpop.eup %3400  ;;  %v770_v60 = vmul.f32 %v4231_v25, %v4159_v14 }
 0x42d   :  { %3410 = vrcp.f32 %v744_v23  ;;  %v4238_v34 = vpop.eup %3402  ;;  %v771_v61 = vmul.f32 %v4233_v28, %v4172_v24 }
 0x42e   :  { %v4241_v36 = vpop.eup %3404  ;;  %v773_v18 = vmul.f32 %v4238_v34, %v4179_v32 }
 0x42f   :  { %v4246_v42 = vpop.eup %3406  ;;  %v772_v14 = vmul.f32 %v4241_v36, %v4166_v20 }
 0x430   :  { %v775_v6 = vmul.f32 %v4246_v42, %v4183_v33 }
 0x436   :  { %v4249_v44 = vpop.eup %3408 }
 0x437   :  { %v4255_v50 = vpop.eup %3410  ;;  %v774_v32 = vmul.f32 %v4249_v44, %v4175_v26 }
 0x438   :  { %v776_v9 = vmul.f32 %v4255_v50, %v4187_v38 }
 0x485   :  { %v786_v16 = vpop.permute.xlu1 %785 }
 0x486   :  { %v809_v17 = vmul.f32 %v4227_v15, %v786_v16 }
 0x488   :  { %825 = vrot.lane.b32.xlu1 %v809_v17, %s3948_s10  ;;  %v790_v29 = vpop.permute.xlu0 %789 }
 0x489   :  { %v788_v27 = vpop.permute.xlu1 %787  ;;  %v811_v31 = vmul.f32 %v4233_v28, %v790_v29 }
 0x48a   :  { %v810_v30 = vmul.f32 %v4231_v25, %v788_v27 }
 0x48b   :  { %829 = vrot.lane.b32.xlu0 %v811_v31, %s3948_s10 }
 0x48c   :  { %827 = vrot.lane.b32.xlu1 %v810_v30, %s3948_s10  ;;  %v792_v37 = vpop.permute.xlu0 %791 }
 0x48d   :  { %v794_v35 = vpop.permute.xlu1 %793  ;;  %v812_v41 = vmul.f32 %v4241_v36, %v792_v37 }
 0x48e   :  { %v813_v39 = vmul.f32 %v4238_v34, %v794_v35 }
 0x48f   :  { %831 = vrot.lane.b32.xlu0 %v812_v41, %s3948_s10 }
 0x490   :  { %833 = vrot.lane.b32.xlu1 %v813_v39, %s3948_s10  ;;  %v796_v47 = vpop.permute.xlu0 %795 }
 0x491   :  { %v798_v43 = vpop.permute.xlu1 %797  ;;  %v814_v49 = vmul.f32 %v4249_v44, %v796_v47 }
 0x492   :  { %v815_v48 = vmul.f32 %v4246_v42, %v798_v43 }
 0x493   :  { %835 = vrot.lane.b32.xlu0 %v814_v49, %s3948_s10 }
 0x494   :  { %837 = vrot.lane.b32.xlu1 %v815_v48, %s3948_s10  ;;  %v800_v53 = vpop.permute.xlu0 %799 }
 0x495   :  { %v816_v54 = vmul.f32 %v4255_v50, %v800_v53 }
 0x497   :  { %839 = vrot.lane.b32.xlu0 %v816_v54, %s3948_s10 }
 0x4fa   :  { %v826_v56 = vpop.permute.xlu1 %825 }
 0x4fb   :  { %v4261_v59 = vadd.f32 %v826_v56, %v769_v55 }
 0x4fd   :  { %3412 = vtanh.f32 %v4261_v59  ;;  %v830_v2 = vpop.permute.xlu0 %829 }
 0x4fe   :  { %v828_v62 = vpop.permute.xlu1 %827  ;;  %v4270_v4 = vadd.f32 %v830_v2, %v771_v61 }
 0x4ff   :  { %v4268_v3 = vadd.f32 %v828_v62, %v770_v60 }
 0x501   :  { %3414 = vtanh.f32 %v4268_v3  ;;  %v832_v5 = vpop.permute.xlu0 %831 }
 0x502   :  { %3416 = vtanh.f32 %v4270_v4  ;;  %v834_v45 = vpop.permute.xlu1 %833  ;;  %v4281_v51 = vadd.f32 %v832_v5, %v772_v14  ;;  %v906_v14 = vld [vmem:[#allocation2 + $0xa] sm:$0x1] }
 0x503   :  { %v4278_v24 = vadd.f32 %v834_v45, %v773_v18  ;;  %v907_v45 = vld [vmem:[#allocation2 + $0x12] sm:$0x1] }
 0x505   :  { %3418 = vtanh.f32 %v4278_v24  ;;  %v836_v20 = vpop.permute.xlu0 %835 }
 0x506   :  { %3420 = vtanh.f32 %v4281_v51  ;;  %v838_v46 = vpop.permute.xlu1 %837  ;;  %v4291_v8 = vadd.f32 %v836_v20, %v774_v32  ;;  %v909_v20 = vld [vmem:[#allocation2 + $0x22] sm:$0x1] }
 0x507   :  { %v3413_v40 = vpop.eup %3412  ;;  %v4289_v7 = vadd.f32 %v838_v46, %v775_v6 }
 0x508   :  { %873 = vrot.lane.b32.xlu1 %v3413_v40, %s3948_s10 }
 0x509   :  { %3422 = vtanh.f32 %v4289_v7  ;;  %v840_v33 = vpop.permute.xlu0 %839 }
 0x50a   :  { %3424 = vtanh.f32 %v4291_v8  ;;  %v4297_v12 = vadd.f32 %v840_v33, %v776_v9  ;;  %v908_v9 = vld [vmem:[#allocation2 + $0x1a] sm:$0x1] }
 0x50b   :  { %v3415_v10 = vpop.eup %3414 }
 0x50c   :  { %v3417_v52 = vpop.eup %3416  ;;  %875 = vrot.lane.b32.xlu1 %v3415_v10, %s3948_s10  ;;  %3426 = vtanh.f32 %v4297_v12 }
 0x50d   :  { %877 = vrot.lane.b32.xlu0 %v3417_v52, %s3948_s10 }
 0x50f   :  { %v3419_v26 = vpop.eup %3418 }
 0x510   :  { %v3421_v57 = vpop.eup %3420  ;;  %881 = vrot.lane.b32.xlu1 %v3419_v26, %s3948_s10 }
 0x511   :  { %879 = vrot.lane.b32.xlu0 %v3421_v57, %s3948_s10 }
 0x513   :  { %v3423_v13 = vpop.eup %3422 }
 0x514   :  { %v3425_v16 = vpop.eup %3424  ;;  %885 = vrot.lane.b32.xlu1 %v3423_v13, %s3948_s10  ;;  %v911_v13 = vld [vmem:[#allocation2 + $0x32] sm:$0x1] }
 0x515   :  { %883 = vrot.lane.b32.xlu0 %v3425_v16, %s3948_s10  ;;  %v910_v16 = vld [vmem:[#allocation2 + $0x2a] sm:$0x1] }
 0x516   :  { %v3427_v38 = vpop.eup %3426 }
 0x519   :  { %887 = vrot.lane.b32.xlu0 %v3427_v38, %s3948_s10 }
 0x57a   :  { %v874_v58 = vpop.permute.xlu1 %873 }
 0x57b   :  { %v897_v22 = vmul.f32 %v4227_v15, %v874_v58 }
 0x57e   :  { %v876_v63 = vpop.permute.xlu1 %875 }
 0x57f   :  { %v878_v17 = vpop.permute.xlu0 %877  ;;  %v898_v19 = vmul.f32 %v4231_v25, %v876_v63 }
 0x580   :  { %v899_v21 = vmul.f32 %v4233_v28, %v878_v17  ;;  %v912_v17 = vld [vmem:[#allocation2 + $0x3a] sm:$0x1] }
 0x581   :  { %v921_v23 = vrot.slane %v898_v19, 7 }
 0x582   :  { %v882_v27 = vpop.permute.xlu1 %881  ;;  %v923_v29 = vrot.slane %v899_v21, 6 }
 0x583   :  { %v922_v30 = vsel %vm595_vm4, %v921_v23, %v897_v22  ;;  %v880_v31 = vpop.permute.xlu0 %879  ;;  %v901_v35 = vmul.f32 %v4238_v34, %v882_v27 }
 0x584   :  { %v900_v37 = vmul.f32 %v4241_v36, %v880_v31  ;;  %v924_v39 = vsel %vm598_vm5, %v923_v29, %v922_v30 }
 0x585   :  { %v927_v41 = vrot.slane %v901_v35, 4 }
 0x586   :  { %v925_v43 = vrot.slane %v900_v37, 5  ;;  %v886_v47 = vpop.permute.xlu1 %885 }
 0x587   :  { %v884_v25 = vpop.permute.xlu0 %883  ;;  %v903_v28 = vmul.f32 %v4246_v42, %v886_v47 }
 0x588   :  { %v926_v15 = vsel %vm601_vm6, %v925_v43, %v924_v39  ;;  %v902_v48 = vmul.f32 %v4249_v44, %v884_v25 }
 0x589   :  { %v928_v49 = vsel %vm604_vm7, %v927_v41, %v926_v15  ;;  %v931_v53 = vrot.slane %v903_v28, 2 }
 0x58a   :  { %v929_v54 = vrot.slane %v902_v48, 3 }
 0x58b   :  { %v888_v55 = vpop.permute.xlu0 %887 }
 0x58c   :  { %v904_v34 = vmul.f32 %v4255_v50, %v888_v55  ;;  %v930_v36 = vsel %vm607_vm8, %v929_v54, %v928_v49  ;;  %v905_v50 = vld [vmem:[#allocation2 + $0x2] sm:$0x1] }
 0x58d   :  { %v932_v56 = vsel %vm610_vm9, %v931_v53, %v930_v36 }
 0x58e   :  { %v933_v60 = vrot.slane %v904_v34, 1 }
 0x590   :  { %v934_v61 = vsel %vm613_vm10, %v933_v60, %v932_v56 }
 0x591   :  { %935 = vrot.lane.b32.xlu1 %v934_v61, %s3949_s21 }
 0x603   :  { %v936_v42 = vpop.permute.xlu1 %935 }
 0x604   :  { %3199 = vmatmul.mubr.msk.f32.vlgmr.msra.gmra.mrb[4].mxu1 %vm83_vm1, %v936_v42 }
 0x605   :  { %3266 = vmatpush3.bf16.msra.mxu1 %v4070_v11  ;;  %3205 = vmatprep.mubr.msk.f32.mxu1 %vm3945_vm0, %v3946_v1 }
 0x606   :  { %3267 = vmatprep.subr.bf16.mxu1 %v3944_v0 }
 0x6d7   :  { %v1005_v44 = vpop.f32.mrb[4].mxu1 }
 0x6d8   :  { %v3200_v62 = vpop.f32.mrb[5].mxu1  ;;  %v1025_v2 = vadd.f32 %v1005_v44, %v905_v50  ;;  %v1010_v18 = vrot.slane %v1005_v44, 1  ;;  %v1011_v40 = vrot.slane %v1005_v44, 2  ;;  %v1013_v5 = vrot.slane %v1005_v44, 4 }
 0x6d9   :  { %v1012_v32 = vrot.slane %v1005_v44, 3  ;;  %v1015_v10 = vrot.slane %v1005_v44, 6  ;;  %v1014_v26 = vrot.slane %v1005_v44, 5  ;;  %v1016_v58 = vrot.slane %v1005_v44, 7 }
 0x6da   :  { %3428 = vtanh.f32 %v1025_v2  ;;  %v1026_v6 = vadd.f32 %v1010_v18, %v906_v14  ;;  %v1027_v46 = vadd.f32 %v1011_v40, %v907_v45  ;;  %v1029_v33 = vadd.f32 %v1013_v5, %v909_v20 }
 0x6db   :  { %v1028_v57 = vadd.f32 %v1012_v32, %v908_v9  ;;  %v1031_v38 = vadd.f32 %v1015_v10, %v911_v13  ;;  %v1030_v63 = vadd.f32 %v1014_v26, %v910_v16  ;;  %v1032_v19 = vadd.f32 %v1016_v58, %v912_v17 }
 0x6dc   :  { %3430 = vtanh.f32 %v1026_v6  ;;  %v3063_v35 = vmul.f32 -1.442695, %v1025_v2  ;;  %v3064_v37 = vmul.f32 -1.442695, %v1026_v6  ;;  %v3065_v39 = vmul.f32 -1.442695, %v1027_v46 }
 0x6dd   :  { %3432 = vtanh.f32 %v1027_v46  ;;  %v3067_v41 = vmul.f32 -1.442695, %v1029_v33  ;;  %v3066_v47 = vmul.f32 -1.442695, %v1028_v57  ;;  %v3069_v25 = vmul.f32 -1.442695, %v1031_v38 }
 0x6de   :  { %3434 = vtanh.f32 %v1029_v33  ;;  %v3068_v15 = vmul.f32 -1.442695, %v1030_v63  ;;  %v3070_v48 = vmul.f32 -1.442695, %v1032_v19 }
 0x6df   :  { %3436 = vtanh.f32 %v1028_v57 }
 0x6e0   :  { %3438 = vtanh.f32 %v1031_v38 }
 0x6e1   :  { %3440 = vtanh.f32 %v1030_v63 }
 0x6e2   :  { %3442 = vtanh.f32 %v1032_v19 }
 0x6e3   :  { %3444 = vpow2.f32 %v3063_v35 }
 0x6e4   :  { %v3429_v52 = vpop.eup %3428  ;;  %3446 = vpow2.f32 %v3064_v37 }
 0x6e5   :  { %1105 = vrot.lane.b32.xlu0 %v3429_v52, %s3947_s3  ;;  %3448 = vpow2.f32 %v3065_v39 }
 0x6e6   :  { %v3431_v21 = vpop.eup %3430  ;;  %3450 = vpow2.f32 %v3067_v41 }
 0x6e7   :  { %v3433_v22 = vpop.eup %3432  ;;  %3452 = vpow2.f32 %v3066_v47 }
 0x6e8   :  { %1109 = vrot.lane.b32.xlu1 %v3433_v22, %s3947_s3  ;;  %v3435_v23 = vpop.eup %3434  ;;  %3454 = vpow2.f32 %v3069_v25 }
 0x6e9   :  { %1107 = vrot.lane.b32.xlu0 %v3431_v21, %s3947_s3  ;;  %v3437_v27 = vpop.eup %3436 }
 0x6ea   :  { %v3439_v29 = vpop.eup %3438 }
 0x6eb   :  { %v3441_v30 = vpop.eup %3440 }
 0x6ec   :  { %1111 = vrot.lane.b32.xlu1 %v3437_v27, %s3947_s3  ;;  %v3443_v31 = vpop.eup %3442 }
 0x6ed   :  { %1113 = vrot.lane.b32.xlu0 %v3435_v23, %s3947_s3  ;;  %v3445_v43 = vpop.eup %3444 }
 0x6ee   :  { %v1057_v28 = vadd.f32 1.0, %v3445_v43  ;;  %v3447_v49 = vpop.eup %3446 }
 0x6ef   :  { %v3449_v53 = vpop.eup %3448  ;;  %v1058_v54 = vadd.f32 1.0, %v3447_v49 }
 0x6f0   :  { %1115 = vrot.lane.b32.xlu1 %v3441_v30, %s3947_s3  ;;  %3456 = vrcp.f32 %v1057_v28  ;;  %v3451_v55 = vpop.eup %3450  ;;  %v1059_v34 = vadd.f32 1.0, %v3449_v53 }
 0x6f1   :  { %1117 = vrot.lane.b32.xlu0 %v3439_v29, %s3947_s3  ;;  %3458 = vpow2.f32 %v3068_v15  ;;  %v3453_v36 = vpop.eup %3452  ;;  %v1061_v60 = vadd.f32 1.0, %v3451_v55 }
 0x6f2   :  { %3460 = vpow2.f32 %v3070_v48  ;;  %v3455_v56 = vpop.eup %3454  ;;  %v1060_v44 = vadd.f32 1.0, %v3453_v36 }
 0x6f3   :  { %3462 = vrcp.f32 %v1058_v54  ;;  %v1063_v2 = vadd.f32 1.0, %v3455_v56 }
 0x6f4   :  { %1119 = vrot.lane.b32.xlu1 %v3443_v31, %s3947_s3  ;;  %3464 = vrcp.f32 %v1059_v34 }
 0x6f5   :  { %3466 = vrcp.f32 %v1061_v60 }
 0x6f6   :  { %3468 = vrcp.f32 %v1060_v44 }
 0x6f7   :  { %3470 = vrcp.f32 %v1063_v2 }
 0x6fa   :  { %v4336_v61 = vpop.eup %3456 }
 0x6fb   :  { %v3459_v50 = vpop.eup %3458  ;;  %v1089_v23 = vmul.f32 %v4336_v61, %v4261_v59 }
 0x6fc   :  { %v1062_v18 = vadd.f32 1.0, %v3459_v50  ;;  %v3461_v40 = vpop.eup %3460 }
 0x6fd   :  { %v1064_v14 = vadd.f32 1.0, %v3461_v40  ;;  %v4340_v45 = vpop.eup %3462 }
 0x6fe   :  { %3472 = vrcp.f32 %v1062_v18  ;;  %v4342_v6 = vpop.eup %3464  ;;  %v1090_v30 = vmul.f32 %v4340_v45, %v4268_v3 }
 0x6ff   :  { %3474 = vrcp.f32 %v1064_v14  ;;  %v4347_v9 = vpop.eup %3466  ;;  %v1091_v31 = vmul.f32 %v4342_v6, %v4270_v4 }
 0x700   :  { %v4350_v33 = vpop.eup %3468  ;;  %v1093_v59 = vmul.f32 %v4347_v9, %v4278_v24 }
 0x701   :  { %v4355_v13 = vpop.eup %3470  ;;  %v1092_v3 = vmul.f32 %v4350_v33, %v4281_v51 }
 0x702   :  { %v1095_v15 = vmul.f32 %v4355_v13, %v4289_v7 }
 0x708   :  { %v4358_v38 = vpop.eup %3472 }
 0x709   :  { %v4364_v19 = vpop.eup %3474  ;;  %v1094_v24 = vmul.f32 %v4358_v38, %v4291_v8 }
 0x70a   :  { %v1096_v54 = vmul.f32 %v4364_v19, %v4297_v12 }
 0x757   :  { %v1106_v42 = vpop.permute.xlu0 %1105 }
 0x758   :  { %v1129_v62 = vmul.f32 %v4336_v61, %v1106_v42 }
 0x75a   :  { %1145 = vrot.lane.b32.xlu0 %v1129_v62, %s3948_s10  ;;  %v1110_v32 = vpop.permute.xlu1 %1109 }
 0x75b   :  { %v1108_v5 = vpop.permute.xlu0 %1107  ;;  %v1131_v20 = vmul.f32 %v4342_v6, %v1110_v32 }
 0x75c   :  { %v1130_v46 = vmul.f32 %v4340_v45, %v1108_v5 }
 0x75d   :  { %1149 = vrot.lane.b32.xlu1 %v1131_v20, %s3948_s10 }
 0x75e   :  { %1147 = vrot.lane.b32.xlu0 %v1130_v46, %s3948_s10  ;;  %v1112_v52 = vpop.permute.xlu1 %1111 }
 0x75f   :  { %v1114_v10 = vpop.permute.xlu0 %1113  ;;  %v1132_v57 = vmul.f32 %v4350_v33, %v1112_v52 }
 0x760   :  { %v1133_v26 = vmul.f32 %v4347_v9, %v1114_v10 }
 0x761   :  { %1151 = vrot.lane.b32.xlu1 %v1132_v57, %s3948_s10 }
 0x762   :  { %1153 = vrot.lane.b32.xlu0 %v1133_v26, %s3948_s10  ;;  %v1116_v58 = vpop.permute.xlu1 %1115 }
 0x763   :  { %v1118_v16 = vpop.permute.xlu0 %1117  ;;  %v1134_v17 = vmul.f32 %v4358_v38, %v1116_v58 }
 0x764   :  { %v1135_v63 = vmul.f32 %v4355_v13, %v1118_v16 }
 0x765   :  { %1155 = vrot.lane.b32.xlu1 %v1134_v17, %s3948_s10 }
 0x766   :  { %1157 = vrot.lane.b32.xlu0 %v1135_v63, %s3948_s10  ;;  %v1120_v21 = vpop.permute.xlu1 %1119 }
 0x767   :  { %v1136_v22 = vmul.f32 %v4364_v19, %v1120_v21 }
 0x769   :  { %1159 = vrot.lane.b32.xlu1 %v1136_v22, %s3948_s10 }
 0x7cc   :  { %v1146_v27 = vpop.permute.xlu0 %1145 }
 0x7cd   :  { %v4370_v29 = vadd.f32 %v1146_v27, %v1089_v23 }
 0x7cf   :  { %3476 = vtanh.f32 %v4370_v29  ;;  %v1150_v37 = vpop.permute.xlu1 %1149 }
 0x7d0   :  { %v1148_v35 = vpop.permute.xlu0 %1147  ;;  %v4379_v41 = vadd.f32 %v1150_v37, %v1091_v31 }
 0x7d1   :  { %v4377_v39 = vadd.f32 %v1148_v35, %v1090_v30 }
 0x7d3   :  { %3478 = vtanh.f32 %v4377_v39  ;;  %v1152_v25 = vpop.permute.xlu1 %1151 }
 0x7d4   :  { %3480 = vtanh.f32 %v4379_v41  ;;  %v1154_v47 = vpop.permute.xlu0 %1153  ;;  %v4390_v28 = vadd.f32 %v1152_v25, %v1092_v3  ;;  %v1226_v3 = vld [vmem:[#allocation2 + $0xb] sm:$0x1] }
 0x7d5   :  { %v4387_v4 = vadd.f32 %v1154_v47, %v1093_v59  ;;  %v1227_v47 = vld [vmem:[#allocation2 + $0x13] sm:$0x1] }
 0x7d7   :  { %3482 = vtanh.f32 %v4387_v4  ;;  %v1156_v51 = vpop.permute.xlu1 %1155 }
 0x7d8   :  { %3484 = vtanh.f32 %v4390_v28  ;;  %v1158_v48 = vpop.permute.xlu0 %1157  ;;  %v4400_v53 = vadd.f32 %v1156_v51, %v1094_v24  ;;  %v1229_v51 = vld [vmem:[#allocation2 + $0x23] sm:$0x1] }
 0x7d9   :  { %v3477_v43 = vpop.eup %3476  ;;  %v4398_v49 = vadd.f32 %v1158_v48, %v1095_v15 }
 0x7da   :  { %1193 = vrot.lane.b32.xlu0 %v3477_v43, %s3948_s10 }
 0x7db   :  { %3486 = vtanh.f32 %v4398_v49  ;;  %v1160_v7 = vpop.permute.xlu1 %1159 }
 0x7dc   :  { %3488 = vtanh.f32 %v4400_v53  ;;  %v4406_v36 = vadd.f32 %v1160_v7, %v1096_v54  ;;  %v1228_v54 = vld [vmem:[#allocation2 + $0x1b] sm:$0x1] }
 0x7dd   :  { %v3479_v55 = vpop.eup %3478 }
 0x7de   :  { %v3481_v34 = vpop.eup %3480  ;;  %1195 = vrot.lane.b32.xlu0 %v3479_v55, %s3948_s10  ;;  %3490 = vtanh.f32 %v4406_v36 }
 0x7df   :  { %1197 = vrot.lane.b32.xlu1 %v3481_v34, %s3948_s10 }
 0x7e1   :  { %v3483_v8 = vpop.eup %3482 }
 0x7e2   :  { %v3485_v56 = vpop.eup %3484  ;;  %1201 = vrot.lane.b32.xlu0 %v3483_v8, %s3948_s10 }
 0x7e3   :  { %1199 = vrot.lane.b32.xlu1 %v3485_v56, %s3948_s10 }
 0x7e5   :  { %v3487_v60 = vpop.eup %3486 }
 0x7e6   :  { %v3489_v42 = vpop.eup %3488  ;;  %1205 = vrot.lane.b32.xlu0 %v3487_v60, %s3948_s10  ;;  %v1231_v60 = vld [vmem:[#allocation2 + $0x33] sm:$0x1] }
 0x7e7   :  { %1203 = vrot.lane.b32.xlu1 %v3489_v42, %s3948_s10  ;;  %v1230_v42 = vld [vmem:[#allocation2 + $0x2b] sm:$0x1] }
 0x7e8   :  { %v3491_v12 = vpop.eup %3490 }
 0x7eb   :  { %1207 = vrot.lane.b32.xlu1 %v3491_v12, %s3948_s10 }
 0x84c   :  { %v1194_v44 = vpop.permute.xlu0 %1193 }
 0x84d   :  { %v1217_v40 = vmul.f32 %v4336_v61, %v1194_v44 }
 0x850   :  { %v1196_v50 = vpop.permute.xlu0 %1195 }
 0x851   :  { %v1198_v62 = vpop.permute.xlu1 %1197  ;;  %v1218_v2 = vmul.f32 %v4340_v45, %v1196_v50 }
 0x852   :  { %v1219_v18 = vmul.f32 %v4342_v6, %v1198_v62  ;;  %v1232_v62 = vld [vmem:[#allocation2 + $0x3b] sm:$0x1] }
 0x853   :  { %v1241_v14 = vrot.slane %v1218_v2, 7 }
 0x854   :  { %v1202_v5 = vpop.permute.xlu0 %1201  ;;  %v1243_v32 = vrot.slane %v1219_v18, 6 }
 0x855   :  { %v1242_v46 = vsel %vm595_vm4, %v1241_v14, %v1217_v40  ;;  %v1200_v20 = vpop.permute.xlu1 %1199  ;;  %v1221_v10 = vmul.f32 %v4347_v9, %v1202_v5 }
 0x856   :  { %v1220_v52 = vmul.f32 %v4350_v33, %v1200_v20  ;;  %v1244_v26 = vsel %vm598_vm5, %v1243_v32, %v1242_v46 }
 0x857   :  { %v1247_v57 = vrot.slane %v1221_v10, 4 }
 0x858   :  { %v1245_v16 = vrot.slane %v1220_v52, 5  ;;  %v1206_v58 = vpop.permute.xlu0 %1205 }
 0x859   :  { %v1204_v45 = vpop.permute.xlu1 %1203  ;;  %v1223_v6 = vmul.f32 %v4355_v13, %v1206_v58 }
 0x85a   :  { %v1246_v61 = vsel %vm601_vm6, %v1245_v16, %v1244_v26  ;;  %v1222_v63 = vmul.f32 %v4358_v38, %v1204_v45 }
 0x85b   :  { %v1248_v17 = vsel %vm604_vm7, %v1247_v57, %v1246_v61  ;;  %v1251_v21 = vrot.slane %v1223_v6, 2 }
 0x85c   :  { %v1249_v22 = vrot.slane %v1222_v63, 3 }
 0x85d   :  { %v1208_v23 = vpop.permute.xlu1 %1207 }
 0x85e   :  { %v1224_v9 = vmul.f32 %v4364_v19, %v1208_v23  ;;  %v1250_v33 = vsel %vm607_vm8, %v1249_v22, %v1248_v17  ;;  %v1225_v19 = vld [vmem:[#allocation2 + $0x3] sm:$0x1] }
 0x85f   :  { %v1252_v27 = vsel %vm610_vm9, %v1251_v21, %v1250_v33 }
 0x860   :  { %v1253_v30 = vrot.slane %v1224_v9, 1 }
 0x862   :  { %v1254_v31 = vsel %vm613_vm10, %v1253_v30, %v1252_v27 }
 0x863   :  { %1255 = vrot.lane.b32.xlu0 %v1254_v31, %s3949_s21 }
 0x8d5   :  { %v1256_v13 = vpop.permute.xlu0 %1255 }
 0x8d6   :  { %3206 = vmatmul.mubr.msk.f32.vlgmr.msra.gmra.mrb[6].mxu1 %vm83_vm1, %v1256_v13 }
 0x8d7   :  { %3269 = vmatpush3.bf16.msra.mxu1 %v4070_v11  ;;  %3212 = vmatprep.mubr.msk.f32.mxu1 %vm3945_vm0, %v3946_v1 }
 0x8d8   :  { %3273 = vmatprep.subr.bf16.mxu1 %v3944_v0 }
 0x9a9   :  { %v1325_v38 = vpop.f32.mrb[6].mxu1 }
 0x9aa   :  { %v3207_v35 = vpop.f32.mrb[7].mxu1  ;;  %v1345_v37 = vadd.f32 %v1325_v38, %v1225_v19  ;;  %v1330_v59 = vrot.slane %v1325_v38, 1  ;;  %v1331_v43 = vrot.slane %v1325_v38, 2  ;;  %v1333_v25 = vrot.slane %v1325_v38, 4 }
 0x9ab   :  { %v1332_v24 = vrot.slane %v1325_v38, 3  ;;  %v1335_v55 = vrot.slane %v1325_v38, 6  ;;  %v1334_v8 = vrot.slane %v1325_v38, 5  ;;  %v1336_v44 = vrot.slane %v1325_v38, 7 }
 0x9ac   :  { %3492 = vtanh.f32 %v1345_v37  ;;  %v1346_v15 = vadd.f32 %v1330_v59, %v1226_v3  ;;  %v1347_v48 = vadd.f32 %v1331_v43, %v1227_v47  ;;  %v1349_v7 = vadd.f32 %v1333_v25, %v1229_v51 }
 0x9ad   :  { %v1348_v56 = vadd.f32 %v1332_v24, %v1228_v54  ;;  %v1351_v12 = vadd.f32 %v1335_v55, %v1231_v60  ;;  %v1350_v50 = vadd.f32 %v1334_v8, %v1230_v42  ;;  %v1352_v2 = vadd.f32 %v1336_v44, %v1232_v62 }
 0x9ae   :  { %3494 = vtanh.f32 %v1346_v15  ;;  %v3072_v10 = vmul.f32 -1.442695, %v1345_v37  ;;  %v3073_v52 = vmul.f32 -1.442695, %v1346_v15  ;;  %v3074_v26 = vmul.f32 -1.442695, %v1347_v48 }
 0x9af   :  { %3496 = vtanh.f32 %v1347_v48  ;;  %v3076_v57 = vmul.f32 -1.442695, %v1349_v7  ;;  %v3075_v58 = vmul.f32 -1.442695, %v1348_v56  ;;  %v3078_v45 = vmul.f32 -1.442695, %v1351_v12 }
 0x9b0   :  { %3498 = vtanh.f32 %v1349_v7  ;;  %v3077_v61 = vmul.f32 -1.442695, %v1350_v50  ;;  %v3079_v63 = vmul.f32 -1.442695, %v1352_v2 }
 0x9b1   :  { %3500 = vtanh.f32 %v1348_v56 }
 0x9b2   :  { %3502 = vtanh.f32 %v1351_v12 }
 0x9b3   :  { %3504 = vtanh.f32 %v1350_v50 }
 0x9b4   :  { %3506 = vtanh.f32 %v1352_v2 }
 0x9b5   :  { %3508 = vpow2.f32 %v3072_v10 }
 0x9b6   :  { %v3493_v34 = vpop.eup %3492  ;;  %3510 = vpow2.f32 %v3073_v52 }
 0x9b7   :  { %1425 = vrot.lane.b32.xlu1 %v3493_v34, %s3947_s3  ;;  %3512 = vpow2.f32 %v3074_v26 }
 0x9b8   :  { %v3495_v18 = vpop.eup %3494  ;;  %3514 = vpow2.f32 %v3076_v57 }
 0x9b9   :  { %v3497_v40 = vpop.eup %3496  ;;  %3516 = vpow2.f32 %v3075_v58 }
 0x9ba   :  { %1429 = vrot.lane.b32.xlu0 %v3497_v40, %s3947_s3  ;;  %v3499_v14 = vpop.eup %3498  ;;  %3518 = vpow2.f32 %v3078_v45 }
 0x9bb   :  { %1427 = vrot.lane.b32.xlu1 %v3495_v18, %s3947_s3  ;;  %v3501_v5 = vpop.eup %3500 }
 0x9bc   :  { %v3503_v32 = vpop.eup %3502 }
 0x9bd   :  { %v3505_v46 = vpop.eup %3504 }
 0x9be   :  { %1431 = vrot.lane.b32.xlu0 %v3501_v5, %s3947_s3  ;;  %v3507_v20 = vpop.eup %3506 }
 0x9bf   :  { %1433 = vrot.lane.b32.xlu1 %v3499_v14, %s3947_s3  ;;  %v3509_v16 = vpop.eup %3508 }
 0x9c0   :  { %v1377_v6 = vadd.f32 1.0, %v3509_v16  ;;  %v3511_v17 = vpop.eup %3510 }
 0x9c1   :  { %v3513_v21 = vpop.eup %3512  ;;  %v1378_v22 = vadd.f32 1.0, %v3511_v17 }
 0x9c2   :  { %1435 = vrot.lane.b32.xlu0 %v3505_v46, %s3947_s3  ;;  %3520 = vrcp.f32 %v1377_v6  ;;  %v3515_v23 = vpop.eup %3514  ;;  %v1379_v9 = vadd.f32 1.0, %v3513_v21 }
 0x9c3   :  { %1437 = vrot.lane.b32.xlu1 %v3503_v32, %s3947_s3  ;;  %3522 = vpow2.f32 %v3077_v61  ;;  %v3517_v33 = vpop.eup %3516  ;;  %v1381_v30 = vadd.f32 1.0, %v3515_v23 }
 0x9c4   :  { %3524 = vpow2.f32 %v3079_v63  ;;  %v3519_v27 = vpop.eup %3518  ;;  %v1380_v38 = vadd.f32 1.0, %v3517_v33 }
 0x9c5   :  { %3526 = vrcp.f32 %v1378_v22  ;;  %v1383_v37 = vadd.f32 1.0, %v3519_v27 }
 0x9c6   :  { %1439 = vrot.lane.b32.xlu0 %v3507_v20, %s3947_s3  ;;  %3528 = vrcp.f32 %v1379_v9 }
 0x9c7   :  { %3530 = vrcp.f32 %v1381_v30 }
 0x9c8   :  { %3532 = vrcp.f32 %v1380_v38 }
 0x9c9   :  { %3534 = vrcp.f32 %v1383_v37 }
 0x9cc   :  { %v4445_v31 = vpop.eup %3520 }
 0x9cd   :  { %v3523_v19 = vpop.eup %3522  ;;  %v1409_v14 = vmul.f32 %v4445_v31, %v4370_v29 }
 0x9ce   :  { %v1382_v59 = vadd.f32 1.0, %v3523_v19  ;;  %v3525_v43 = vpop.eup %3524 }
 0x9cf   :  { %v1384_v3 = vadd.f32 1.0, %v3525_v43  ;;  %v4449_v47 = vpop.eup %3526 }
 0x9d0   :  { %3536 = vrcp.f32 %v1382_v59  ;;  %v4451_v15 = vpop.eup %3528  ;;  %v1410_v46 = vmul.f32 %v4449_v47, %v4377_v39 }
 0x9d1   :  { %3538 = vrcp.f32 %v1384_v3  ;;  %v4456_v54 = vpop.eup %3530  ;;  %v1411_v20 = vmul.f32 %v4451_v15, %v4379_v41 }
 0x9d2   :  { %v4459_v7 = vpop.eup %3532  ;;  %v1413_v29 = vmul.f32 %v4456_v54, %v4387_v4 }
 0x9d3   :  { %v4464_v60 = vpop.eup %3534  ;;  %v1412_v39 = vmul.f32 %v4459_v7, %v4390_v28 }
 0x9d4   :  { %v1415_v61 = vmul.f32 %v4464_v60, %v4398_v49 }
 0x9da   :  { %v4467_v12 = vpop.eup %3536 }
 0x9db   :  { %v4473_v2 = vpop.eup %3538  ;;  %v1414_v4 = vmul.f32 %v4467_v12, %v4400_v53 }
 0x9dc   :  { %v1416_v22 = vmul.f32 %v4473_v2, %v4406_v36 }
 0xa29   :  { %v1426_v13 = vpop.permute.xlu1 %1425 }
 0xa2a   :  { %v1449_v35 = vmul.f32 %v4445_v31, %v1426_v13 }
 0xa2c   :  { %1465 = vrot.lane.b32.xlu1 %v1449_v35, %s3948_s10  ;;  %v1430_v24 = vpop.permute.xlu0 %1429 }
 0xa2d   :  { %v1428_v25 = vpop.permute.xlu1 %1427  ;;  %v1451_v51 = vmul.f32 %v4451_v15, %v1430_v24 }
 0xa2e   :  { %v1450_v48 = vmul.f32 %v4449_v47, %v1428_v25 }
 0xa2f   :  { %1469 = vrot.lane.b32.xlu0 %v1451_v51, %s3948_s10 }
 0xa30   :  { %1467 = vrot.lane.b32.xlu1 %v1450_v48, %s3948_s10  ;;  %v1432_v34 = vpop.permute.xlu0 %1431 }
 0xa31   :  { %v1434_v55 = vpop.permute.xlu1 %1433  ;;  %v1452_v56 = vmul.f32 %v4459_v7, %v1432_v34 }
 0xa32   :  { %v1453_v8 = vmul.f32 %v4456_v54, %v1434_v55 }
 0xa33   :  { %1471 = vrot.lane.b32.xlu0 %v1452_v56, %s3948_s10 }
 0xa34   :  { %1473 = vrot.lane.b32.xlu1 %v1453_v8, %s3948_s10  ;;  %v1436_v44 = vpop.permute.xlu0 %1435 }
 0xa35   :  { %v1438_v42 = vpop.permute.xlu1 %1437  ;;  %v1454_v62 = vmul.f32 %v4467_v12, %v1436_v44 }
 0xa36   :  { %v1455_v50 = vmul.f32 %v4464_v60, %v1438_v42 }
 0xa37   :  { %1475 = vrot.lane.b32.xlu0 %v1454_v62, %s3948_s10 }
 0xa38   :  { %1477 = vrot.lane.b32.xlu1 %v1455_v50, %s3948_s10  ;;  %v1440_v18 = vpop.permute.xlu0 %1439 }
 0xa39   :  { %v1456_v40 = vmul.f32 %v4473_v2, %v1440_v18 }
 0xa3b   :  { %1479 = vrot.lane.b32.xlu0 %v1456_v40, %s3948_s10 }
 0xa9e   :  { %v1466_v5 = vpop.permute.xlu1 %1465 }
 0xa9f   :  { %v4479_v32 = vadd.f32 %v1466_v5, %v1409_v14 }
 0xaa1   :  { %3540 = vtanh.f32 %v4479_v32  ;;  %v1470_v52 = vpop.permute.xlu0 %1469 }
 0xaa2   :  { %v1468_v10 = vpop.permute.xlu1 %1467  ;;  %v4488_v57 = vadd.f32 %v1470_v52, %v1411_v20 }
 0xaa3   :  { %v4486_v26 = vadd.f32 %v1468_v10, %v1410_v46  ;;  %v1545_v10 = vld [vmem:[#allocation2 + $0x4] sm:$0x1] }
 0xaa5   :  { %3542 = vtanh.f32 %v4486_v26  ;;  %v1472_v45 = vpop.permute.xlu0 %1471 }
 0xaa6   :  { %3544 = vtanh.f32 %v4488_v57  ;;  %v1474_v58 = vpop.permute.xlu1 %1473  ;;  %v4499_v6 = vadd.f32 %v1472_v45, %v1412_v39  ;;  %v1546_v39 = vld [vmem:[#allocation2 + $0xc] sm:$0x1] }
 0xaa7   :  { %v4496_v41 = vadd.f32 %v1474_v58, %v1413_v29  ;;  %v1547_v58 = vld [vmem:[#allocation2 + $0x14] sm:$0x1] }
 0xaa9   :  { %3546 = vtanh.f32 %v4496_v41  ;;  %v1476_v28 = vpop.permute.xlu0 %1475 }
 0xaaa   :  { %3548 = vtanh.f32 %v4499_v6  ;;  %v1478_v63 = vpop.permute.xlu1 %1477  ;;  %v4509_v21 = vadd.f32 %v1476_v28, %v1414_v4  ;;  %v1549_v28 = vld [vmem:[#allocation2 + $0x24] sm:$0x1] }
 0xaab   :  { %v3541_v16 = vpop.eup %3540  ;;  %v4507_v17 = vadd.f32 %v1478_v63, %v1415_v61 }
 0xaac   :  { %1513 = vrot.lane.b32.xlu1 %v3541_v16, %s3948_s10 }
 0xaad   :  { %3550 = vtanh.f32 %v4507_v17  ;;  %v1480_v49 = vpop.permute.xlu0 %1479 }
 0xaae   :  { %3552 = vtanh.f32 %v4509_v21  ;;  %v4515_v33 = vadd.f32 %v1480_v49, %v1416_v22  ;;  %v1548_v22 = vld [vmem:[#allocation2 + $0x1c] sm:$0x1] }
 0xaaf   :  { %v3543_v23 = vpop.eup %3542 }
 0xab0   :  { %v3545_v9 = vpop.eup %3544  ;;  %1515 = vrot.lane.b32.xlu1 %v3543_v23, %s3948_s10  ;;  %3554 = vtanh.f32 %v4515_v33 }
 0xab1   :  { %1517 = vrot.lane.b32.xlu0 %v3545_v9, %s3948_s10 }
 0xab3   :  { %v3547_v53 = vpop.eup %3546 }
 0xab4   :  { %v3549_v27 = vpop.eup %3548  ;;  %1521 = vrot.lane.b32.xlu1 %v3547_v53, %s3948_s10 }
 0xab5   :  { %1519 = vrot.lane.b32.xlu0 %v3549_v27, %s3948_s10 }
 0xab7   :  { %v3551_v30 = vpop.eup %3550 }
 0xab8   :  { %v3553_v13 = vpop.eup %3552  ;;  %1525 = vrot.lane.b32.xlu1 %v3551_v30, %s3948_s10  ;;  %v1551_v30 = vld [vmem:[#allocation2 + $0x34] sm:$0x1] }
 0xab9   :  { %1523 = vrot.lane.b32.xlu0 %v3553_v13, %s3948_s10  ;;  %v1550_v13 = vld [vmem:[#allocation2 + $0x2c] sm:$0x1] }
 0xaba   :  { %v3555_v36 = vpop.eup %3554 }
 0xabd   :  { %1527 = vrot.lane.b32.xlu0 %v3555_v36, %s3948_s10 }
 0xb1e   :  { %v1514_v38 = vpop.permute.xlu1 %1513 }
 0xb1f   :  { %v1537_v43 = vmul.f32 %v4445_v31, %v1514_v38 }
 0xb22   :  { %v1516_v19 = vpop.permute.xlu1 %1515 }
 0xb23   :  { %v1518_v35 = vpop.permute.xlu0 %1517  ;;  %v1538_v37 = vmul.f32 %v4449_v47, %v1516_v19 }
 0xb24   :  { %v1539_v59 = vmul.f32 %v4451_v15, %v1518_v35  ;;  %v1552_v35 = vld [vmem:[#allocation2 + $0x3c] sm:$0x1] }
 0xb25   :  { %v1561_v3 = vrot.slane %v1538_v37, 7 }
 0xb26   :  { %v1522_v25 = vpop.permute.xlu1 %1521  ;;  %v1563_v24 = vrot.slane %v1539_v59, 6 }
 0xb27   :  { %v1562_v48 = vsel %vm595_vm4, %v1561_v3, %v1537_v43  ;;  %v1520_v51 = vpop.permute.xlu0 %1519  ;;  %v1541_v55 = vmul.f32 %v4456_v54, %v1522_v25 }
 0xb28   :  { %v1540_v34 = vmul.f32 %v4459_v7, %v1520_v51  ;;  %v1564_v8 = vsel %vm598_vm5, %v1563_v24, %v1562_v48 }
 0xb29   :  { %v1567_v56 = vrot.slane %v1541_v55, 4 }
 0xb2a   :  { %v1565_v42 = vrot.slane %v1540_v34, 5  ;;  %v1526_v44 = vpop.permute.xlu1 %1525 }
 0xb2b   :  { %v1524_v47 = vpop.permute.xlu0 %1523  ;;  %v1543_v15 = vmul.f32 %v4464_v60, %v1526_v44 }
 0xb2c   :  { %v1566_v31 = vsel %vm601_vm6, %v1565_v42, %v1564_v8  ;;  %v1542_v50 = vmul.f32 %v4467_v12, %v1524_v47 }
 0xb2d   :  { %v1568_v62 = vsel %vm604_vm7, %v1567_v56, %v1566_v31  ;;  %v1571_v18 = vrot.slane %v1543_v15, 2 }
 0xb2e   :  { %v1569_v40 = vrot.slane %v1542_v50, 3 }
 0xb2f   :  { %v1528_v14 = vpop.permute.xlu0 %1527 }
 0xb30   :  { %v1570_v54 = vsel %vm607_vm8, %v1569_v40, %v1568_v62  ;;  %v1544_v7 = vmul.f32 %v4473_v2, %v1528_v14 }
 0xb31   :  { %v1572_v5 = vsel %vm610_vm9, %v1571_v18, %v1570_v54 }
 0xb32   :  { %v1573_v46 = vrot.slane %v1544_v7, 1 }
 0xb34   :  { %v1574_v20 = vsel %vm613_vm10, %v1573_v46, %v1572_v5 }
 0xb35   :  { %1575 = vrot.lane.b32.xlu1 %v1574_v20, %s3949_s21 }
 0xba7   :  { %v1576_v60 = vpop.permute.xlu1 %1575 }
 0xba8   :  { %3213 = vmatmul.mubr.msk.f32.vlgmr.msra.gmra.mrb[8].mxu1 %vm83_vm1, %v1576_v60 }
 0xba9   :  { %3275 = vmatpush3.bf16.msra.mxu1 %v4070_v11  ;;  %3226 = vmatprep.mubr.msk.f32.mxu1 %vm3945_vm0, %v3946_v1 }
 0xbaa   :  { %3279 = vmatprep.subr.bf16.mxu1 %v3944_v0 }
 0xc7b   :  { %v1645_v12 = vpop.f32.mrb[8].mxu1 }
 0xc7c   :  { %v3214_v2 = vpop.f32.mrb[9].mxu1  ;;  %v1665_v52 = vadd.f32 %v1645_v12, %v1545_v10  ;;  %v1650_v29 = vrot.slane %v1645_v12, 1  ;;  %v1651_v16 = vrot.slane %v1645_v12, 2  ;;  %v1653_v45 = vrot.slane %v1645_v12, 4 }
 0xc7d   :  { %v1652_v4 = vrot.slane %v1645_v12, 3  ;;  %v1655_v23 = vrot.slane %v1645_v12, 6  ;;  %v1654_v53 = vrot.slane %v1645_v12, 5  ;;  %v1656_v38 = vrot.slane %v1645_v12, 7 }
 0xc7e   :  { %3556 = vtanh.f32 %v1665_v52  ;;  %v1666_v61 = vadd.f32 %v1650_v29, %v1546_v39  ;;  %v1667_v63 = vadd.f32 %v1651_v16, %v1547_v58  ;;  %v1669_v49 = vadd.f32 %v1653_v45, %v1549_v28 }
 0xc7f   :  { %v1668_v27 = vadd.f32 %v1652_v4, %v1548_v22  ;;  %v1671_v36 = vadd.f32 %v1655_v23, %v1551_v30  ;;  %v1670_v19 = vadd.f32 %v1654_v53, %v1550_v13  ;;  %v1672_v37 = vadd.f32 %v1656_v38, %v1552_v35 }
 0xc80   :  { %3558 = vtanh.f32 %v1666_v61  ;;  %v3081_v55 = vmul.f32 -1.442695, %v1665_v52  ;;  %v3082_v34 = vmul.f32 -1.442695, %v1666_v61  ;;  %v3083_v8 = vmul.f32 -1.442695, %v1667_v63 }
 0xc81   :  { %3560 = vtanh.f32 %v1667_v63  ;;  %v3085_v56 = vmul.f32 -1.442695, %v1669_v49  ;;  %v3084_v44 = vmul.f32 -1.442695, %v1668_v27  ;;  %v3087_v47 = vmul.f32 -1.442695, %v1671_v36 }
 0xc82   :  { %3562 = vtanh.f32 %v1669_v49  ;;  %v3086_v31 = vmul.f32 -1.442695, %v1670_v19  ;;  %v3088_v50 = vmul.f32 -1.442695, %v1672_v37 }
 0xc83   :  { %3564 = vtanh.f32 %v1668_v27 }
 0xc84   :  { %3566 = vtanh.f32 %v1671_v36 }
 0xc85   :  { %3568 = vtanh.f32 %v1670_v19 }
 0xc86   :  { %3570 = vtanh.f32 %v1672_v37 }
 0xc87   :  { %3572 = vpow2.f32 %v3081_v55 }
 0xc88   :  { %v3557_v9 = vpop.eup %3556  ;;  %3574 = vpow2.f32 %v3082_v34 }
 0xc89   :  { %1745 = vrot.lane.b32.xlu0 %v3557_v9, %s3947_s3  ;;  %3576 = vpow2.f32 %v3083_v8 }
 0xc8a   :  { %v3559_v59 = vpop.eup %3558  ;;  %3578 = vpow2.f32 %v3085_v56 }
 0xc8b   :  { %v3561_v43 = vpop.eup %3560  ;;  %3580 = vpow2.f32 %v3084_v44 }
 0xc8c   :  { %1749 = vrot.lane.b32.xlu1 %v3561_v43, %s3947_s3  ;;  %v3563_v3 = vpop.eup %3562  ;;  %3582 = vpow2.f32 %v3087_v47 }
 0xc8d   :  { %1747 = vrot.lane.b32.xlu0 %v3559_v59, %s3947_s3  ;;  %v3565_v25 = vpop.eup %3564 }
 0xc8e   :  { %v3567_v24 = vpop.eup %3566 }
 0xc8f   :  { %v3569_v48 = vpop.eup %3568 }
 0xc90   :  { %1751 = vrot.lane.b32.xlu1 %v3565_v25, %s3947_s3  ;;  %v3571_v51 = vpop.eup %3570 }
 0xc91   :  { %1753 = vrot.lane.b32.xlu0 %v3563_v3, %s3947_s3  ;;  %v3573_v42 = vpop.eup %3572 }
 0xc92   :  { %v1697_v15 = vadd.f32 1.0, %v3573_v42  ;;  %v3575_v62 = vpop.eup %3574 }
 0xc93   :  { %v3577_v18 = vpop.eup %3576  ;;  %v1698_v40 = vadd.f32 1.0, %v3575_v62 }
 0xc94   :  { %1755 = vrot.lane.b32.xlu1 %v3569_v48, %s3947_s3  ;;  %3584 = vrcp.f32 %v1697_v15  ;;  %v3579_v14 = vpop.eup %3578  ;;  %v1699_v54 = vadd.f32 1.0, %v3577_v18 }
 0xc95   :  { %1757 = vrot.lane.b32.xlu0 %v3567_v24, %s3947_s3  ;;  %3586 = vpow2.f32 %v3086_v31  ;;  %v3581_v7 = vpop.eup %3580  ;;  %v1701_v46 = vadd.f32 1.0, %v3579_v14 }
 0xc96   :  { %3588 = vpow2.f32 %v3088_v50  ;;  %v3583_v5 = vpop.eup %3582  ;;  %v1700_v12 = vadd.f32 1.0, %v3581_v7 }
 0xc97   :  { %3590 = vrcp.f32 %v1698_v40  ;;  %v1703_v52 = vadd.f32 1.0, %v3583_v5 }
 0xc98   :  { %1759 = vrot.lane.b32.xlu1 %v3571_v51, %s3947_s3  ;;  %3592 = vrcp.f32 %v1699_v54 }
 0xc99   :  { %3594 = vrcp.f32 %v1701_v46 }
 0xc9a   :  { %3596 = vrcp.f32 %v1700_v12 }
 0xc9b   :  { %3598 = vrcp.f32 %v1703_v52 }
 0xc9e   :  { %v4554_v20 = vpop.eup %3584 }
 0xc9f   :  { %v3587_v10 = vpop.eup %3586  ;;  %v1729_v3 = vmul.f32 %v4554_v20, %v4479_v32 }
 0xca0   :  { %v1702_v29 = vadd.f32 1.0, %v3587_v10  ;;  %v3589_v16 = vpop.eup %3588 }
 0xca1   :  { %v1704_v39 = vadd.f32 1.0, %v3589_v16  ;;  %v4558_v58 = vpop.eup %3590 }
 0xca2   :  { %3600 = vrcp.f32 %v1702_v29  ;;  %v4560_v61 = vpop.eup %3592  ;;  %v1730_v48 = vmul.f32 %v4558_v58, %v4486_v26 }
 0xca3   :  { %3602 = vrcp.f32 %v1704_v39  ;;  %v4565_v22 = vpop.eup %3594  ;;  %v1731_v51 = vmul.f32 %v4560_v61, %v4488_v57 }
 0xca4   :  { %v4568_v49 = vpop.eup %3596  ;;  %v1733_v32 = vmul.f32 %v4565_v22, %v4496_v41 }
 0xca5   :  { %v4573_v30 = vpop.eup %3598  ;;  %v1732_v26 = vmul.f32 %v4568_v49, %v4499_v6 }
 0xca6   :  { %v1735_v31 = vmul.f32 %v4573_v30, %v4507_v17 }
 0xcac   :  { %v4576_v36 = vpop.eup %3600 }
 0xcad   :  { %v4582_v37 = vpop.eup %3602  ;;  %v1734_v41 = vmul.f32 %v4576_v36, %v4509_v21 }
 0xcae   :  { %v1736_v40 = vmul.f32 %v4582_v37, %v4515_v33 }
 0xcfb   :  { %v1746_v60 = vpop.permute.xlu0 %1745 }
 0xcfc   :  { %v1769_v2 = vmul.f32 %v4554_v20, %v1746_v60 }
 0xcfe   :  { %1785 = vrot.lane.b32.xlu0 %v1769_v2, %s3948_s10  ;;  %v1750_v4 = vpop.permute.xlu1 %1749 }
 0xcff   :  { %v1748_v45 = vpop.permute.xlu0 %1747  ;;  %v1771_v28 = vmul.f32 %v4560_v61, %v1750_v4 }
 0xd00   :  { %v1770_v63 = vmul.f32 %v4558_v58, %v1748_v45 }
 0xd01   :  { %1789 = vrot.lane.b32.xlu1 %v1771_v28, %s3948_s10 }
 0xd02   :  { %1787 = vrot.lane.b32.xlu0 %v1770_v63, %s3948_s10  ;;  %v1752_v9 = vpop.permute.xlu1 %1751 }
 0xd03   :  { %v1754_v23 = vpop.permute.xlu0 %1753  ;;  %v1772_v27 = vmul.f32 %v4568_v49, %v1752_v9 }
 0xd04   :  { %v1773_v53 = vmul.f32 %v4565_v22, %v1754_v23 }
 0xd05   :  { %1791 = vrot.lane.b32.xlu1 %v1772_v27, %s3948_s10 }
 0xd06   :  { %1793 = vrot.lane.b32.xlu0 %v1773_v53, %s3948_s10  ;;  %v1756_v38 = vpop.permute.xlu1 %1755 }
 0xd07   :  { %v1758_v13 = vpop.permute.xlu0 %1757  ;;  %v1774_v35 = vmul.f32 %v4576_v36, %v1756_v38 }
 0xd08   :  { %v1775_v19 = vmul.f32 %v4573_v30, %v1758_v13 }
 0xd09   :  { %1795 = vrot.lane.b32.xlu1 %v1774_v35, %s3948_s10 }
 0xd0a   :  { %1797 = vrot.lane.b32.xlu0 %v1775_v19, %s3948_s10  ;;  %v1760_v59 = vpop.permute.xlu1 %1759 }
 0xd0b   :  { %v1776_v43 = vmul.f32 %v4582_v37, %v1760_v59 }
 0xd0d   :  { %1799 = vrot.lane.b32.xlu1 %v1776_v43, %s3948_s10 }
 0xd70   :  { %v1786_v25 = vpop.permute.xlu0 %1785 }
 0xd71   :  { %v4588_v24 = vadd.f32 %v1786_v25, %v1729_v3 }
 0xd73   :  { %3604 = vtanh.f32 %v4588_v24  ;;  %v1790_v34 = vpop.permute.xlu1 %1789 }
 0xd74   :  { %v1788_v55 = vpop.permute.xlu0 %1787  ;;  %v4597_v56 = vadd.f32 %v1790_v34, %v1731_v51 }
 0xd75   :  { %v4595_v8 = vadd.f32 %v1788_v55, %v1730_v48  ;;  %v1865_v55 = vld [vmem:[#allocation2 + $0x5] sm:$0x1] }
 0xd77   :  { %3606 = vtanh.f32 %v4595_v8  ;;  %v1792_v47 = vpop.permute.xlu1 %1791 }
 0xd78   :  { %3608 = vtanh.f32 %v4597_v56  ;;  %v1794_v44 = vpop.permute.xlu0 %1793  ;;  %v4608_v15 = vadd.f32 %v1792_v47, %v1732_v26  ;;  %v1866_v26 = vld [vmem:[#allocation2 + $0xd] sm:$0x1] }
 0xd79   :  { %v4605_v57 = vadd.f32 %v1794_v44, %v1733_v32  ;;  %v1867_v44 = vld [vmem:[#allocation2 + $0x15] sm:$0x1] }
 0xd7b   :  { %3610 = vtanh.f32 %v4605_v57  ;;  %v1796_v6 = vpop.permute.xlu1 %1795 }
 0xd7c   :  { %3612 = vtanh.f32 %v4608_v15  ;;  %v1798_v50 = vpop.permute.xlu0 %1797  ;;  %v4618_v18 = vadd.f32 %v1796_v6, %v1734_v41  ;;  %v1869_v6 = vld [vmem:[#allocation2 + $0x25] sm:$0x1] }
 0xd7d   :  { %v3605_v42 = vpop.eup %3604  ;;  %v4616_v62 = vadd.f32 %v1798_v50, %v1735_v31 }
 0xd7e   :  { %1833 = vrot.lane.b32.xlu0 %v3605_v42, %s3948_s10 }
 0xd7f   :  { %3614 = vtanh.f32 %v4616_v62  ;;  %v1800_v17 = vpop.permute.xlu1 %1799 }
 0xd80   :  { %3616 = vtanh.f32 %v4618_v18  ;;  %v4624_v7 = vadd.f32 %v1800_v17, %v1736_v40  ;;  %v1868_v40 = vld [vmem:[#allocation2 + $0x1d] sm:$0x1] }
 0xd81   :  { %v3607_v14 = vpop.eup %3606 }
 0xd82   :  { %v3609_v54 = vpop.eup %3608  ;;  %1835 = vrot.lane.b32.xlu0 %v3607_v14, %s3948_s10  ;;  %3618 = vtanh.f32 %v4624_v7 }
 0xd83   :  { %1837 = vrot.lane.b32.xlu1 %v3609_v54, %s3948_s10 }
 0xd85   :  { %v3611_v21 = vpop.eup %3610 }
 0xd86   :  { %v3613_v5 = vpop.eup %3612  ;;  %1841 = vrot.lane.b32.xlu0 %v3611_v21, %s3948_s10 }
 0xd87   :  { %1839 = vrot.lane.b32.xlu1 %v3613_v5, %s3948_s10  ;;  %v1871_v5 = vld [vmem:[#allocation2 + $0x35] sm:$0x1] }
 0xd89   :  { %v3615_v46 = vpop.eup %3614 }
 0xd8a   :  { %v3617_v60 = vpop.eup %3616  ;;  %1845 = vrot.lane.b32.xlu0 %v3615_v46, %s3948_s10  ;;  %v1870_v46 = vld [vmem:[#allocation2 + $0x2d] sm:$0x1] }
 0xd8b   :  { %1843 = vrot.lane.b32.xlu1 %v3617_v60, %s3948_s10 }
 0xd8c   :  { %v3619_v33 = vpop.eup %3618 }
 0xd8f   :  { %1847 = vrot.lane.b32.xlu1 %v3619_v33, %s3948_s10 }
 0xdf0   :  { %v1834_v12 = vpop.permute.xlu0 %1833 }
 0xdf1   :  { %v1857_v16 = vmul.f32 %v4554_v20, %v1834_v12 }
 0xdf4   :  { %v1836_v10 = vpop.permute.xlu0 %1835 }
 0xdf5   :  { %v1838_v2 = vpop.permute.xlu1 %1837  ;;  %v1858_v52 = vmul.f32 %v4558_v58, %v1836_v10  ;;  %v1872_v10 = vld [vmem:[#allocation2 + $0x3d] sm:$0x1] }
 0xdf6   :  { %v1859_v29 = vmul.f32 %v4560_v61, %v1838_v2 }
 0xdf7   :  { %v1881_v39 = vrot.slane %v1858_v52, 7 }
 0xdf8   :  { %v1842_v45 = vpop.permute.xlu0 %1841  ;;  %v1883_v4 = vrot.slane %v1859_v29, 6 }
 0xdf9   :  { %v1882_v63 = vsel %vm595_vm4, %v1881_v39, %v1857_v16  ;;  %v1840_v28 = vpop.permute.xlu1 %1839  ;;  %v1861_v23 = vmul.f32 %v4565_v22, %v1842_v45 }
 0xdfa   :  { %v1860_v9 = vmul.f32 %v4568_v49, %v1840_v28  ;;  %v1884_v53 = vsel %vm598_vm5, %v1883_v4, %v1882_v63 }
 0xdfb   :  { %v1887_v27 = vrot.slane %v1861_v23, 4 }
 0xdfc   :  { %v1885_v13 = vrot.slane %v1860_v9, 5  ;;  %v1846_v38 = vpop.permute.xlu0 %1845 }
 0xdfd   :  { %v1844_v58 = vpop.permute.xlu1 %1843  ;;  %v1863_v61 = vmul.f32 %v4573_v30, %v1846_v38 }
 0xdfe   :  { %v1886_v20 = vsel %vm601_vm6, %v1885_v13, %v1884_v53  ;;  %v1862_v19 = vmul.f32 %v4576_v36, %v1844_v58 }
 0xdff   :  { %v1888_v35 = vsel %vm604_vm7, %v1887_v27, %v1886_v20  ;;  %v1891_v59 = vrot.slane %v1863_v61, 2 }
 0xe00   :  { %v1889_v43 = vrot.slane %v1862_v19, 3 }
 0xe01   :  { %v1848_v3 = vpop.permute.xlu1 %1847 }
 0xe02   :  { %v1890_v22 = vsel %vm607_vm8, %v1889_v43, %v1888_v35  ;;  %v1864_v49 = vmul.f32 %v4582_v37, %v1848_v3 }
 0xe03   :  { %v1892_v25 = vsel %vm610_vm9, %v1891_v59, %v1890_v22 }
 0xe04   :  { %v1893_v48 = vrot.slane %v1864_v49, 1 }
 0xe06   :  { %v1894_v51 = vsel %vm613_vm10, %v1893_v48, %v1892_v25 }
 0xe07   :  { %1895 = vrot.lane.b32.xlu0 %v1894_v51, %s3949_s21 }
 0xe79   :  { %v1896_v30 = vpop.permute.xlu0 %1895 }
 0xe7a   :  { %3220 = vmatmul.mubr.msk.f32.vlgmr.msra.gmra.mrb[8].mxu0 %vm83_vm1, %v1896_v30 }
 0xe7b   :  { %3278 = vmatpush3.bf16.msra.mxu0 %v4070_v11  ;;  %3233 = vmatprep.mubr.msk.f32.mxu0 %vm3945_vm0, %v3946_v1 }
 0xf4d   :  { %v1965_v36 = vpop.f32.mrb[8].mxu0 }
 0xf4e   :  { %v3221_v34 = vpop.f32.mrb[9].mxu0  ;;  %v1985_v32 = vadd.f32 %v1965_v36, %v1865_v55  ;;  %v1970_v37 = vrot.slane %v1965_v36, 1  ;;  %v1971_v42 = vrot.slane %v1965_v36, 2  ;;  %v1973_v47 = vrot.slane %v1965_v36, 4 }
 0xf4f   :  { %v1972_v41 = vrot.slane %v1965_v36, 3  ;;  %v1975_v14 = vrot.slane %v1965_v36, 6  ;;  %v1974_v54 = vrot.slane %v1965_v36, 5  ;;  %v1976_v33 = vrot.slane %v1965_v36, 7 }
 0xf50   :  { %3620 = vtanh.f32 %v1985_v32  ;;  %v1986_v31 = vadd.f32 %v1970_v37, %v1866_v26  ;;  %v1987_v50 = vadd.f32 %v1971_v42, %v1867_v44  ;;  %v1989_v11 = vadd.f32 %v1973_v47, %v1869_v6 }
 0xf51   :  { %v1988_v21 = vadd.f32 %v1972_v41, %v1868_v40  ;;  %v1991_v60 = vadd.f32 %v1975_v14, %v1871_v5  ;;  %v1990_v12 = vadd.f32 %v1974_v54, %v1870_v46  ;;  %v1992_v2 = vadd.f32 %v1976_v33, %v1872_v10 }
 0xf52   :  { %3622 = vtanh.f32 %v1986_v31  ;;  %v3090_v28 = vmul.f32 -1.442695, %v1985_v32  ;;  %v3091_v23 = vmul.f32 -1.442695, %v1986_v31  ;;  %v3092_v9 = vmul.f32 -1.442695, %v1987_v50 }
 0xf53   :  { %3624 = vtanh.f32 %v1987_v50  ;;  %v3094_v53 = vmul.f32 -1.442695, %v1989_v11  ;;  %v3093_v13 = vmul.f32 -1.442695, %v1988_v21  ;;  %v3096_v38 = vmul.f32 -1.442695, %v1991_v60 }
 0xf54   :  { %3626 = vtanh.f32 %v1989_v11  ;;  %v3095_v61 = vmul.f32 -1.442695, %v1990_v12  ;;  %v3097_v20 = vmul.f32 -1.442695, %v1992_v2 }
 0xf55   :  { %3628 = vtanh.f32 %v1988_v21 }
 0xf56   :  { %3630 = vtanh.f32 %v1991_v60 }
 0xf57   :  { %3632 = vtanh.f32 %v1990_v12 }
 0xf58   :  { %3634 = vtanh.f32 %v1992_v2 }
 0xf59   :  { %3636 = vpow2.f32 %v3090_v28 }
 0xf5a   :  { %v3621_v17 = vpop.eup %3620  ;;  %3638 = vpow2.f32 %v3091_v23 }
 0xf5b   :  { %2065 = vrot.lane.b32.xlu1 %v3621_v17, %s3947_s3  ;;  %3640 = vpow2.f32 %v3092_v9 }
 0xf5c   :  { %v3623_v52 = vpop.eup %3622  ;;  %3642 = vpow2.f32 %v3094_v53 }
 0xf5d   :  { %v3625_v29 = vpop.eup %3624  ;;  %3644 = vpow2.f32 %v3093_v13 }
 0xf5e   :  { %2069 = vrot.lane.b32.xlu0 %v3625_v29, %s3947_s3  ;;  %v3627_v16 = vpop.eup %3626  ;;  %3646 = vpow2.f32 %v3096_v38 }
 0xf5f   :  { %2067 = vrot.lane.b32.xlu1 %v3623_v52, %s3947_s3  ;;  %v3629_v39 = vpop.eup %3628 }
 0xf60   :  { %v3631_v45 = vpop.eup %3630 }
 0xf61   :  { %v3633_v4 = vpop.eup %3632 }
 0xf62   :  { %2071 = vrot.lane.b32.xlu0 %v3629_v39, %s3947_s3  ;;  %v3635_v63 = vpop.eup %3634 }
 0xf63   :  { %2073 = vrot.lane.b32.xlu1 %v3627_v16, %s3947_s3  ;;  %v3637_v27 = vpop.eup %3636 }
 0xf64   :  { %v2017_v58 = vadd.f32 1.0, %v3637_v27  ;;  %v3639_v19 = vpop.eup %3638 }
 0xf65   :  { %v3641_v35 = vpop.eup %3640  ;;  %v2018_v59 = vadd.f32 1.0, %v3639_v19 }
 0xf66   :  { %2075 = vrot.lane.b32.xlu0 %v3633_v4, %s3947_s3  ;;  %3648 = vrcp.f32 %v2017_v58  ;;  %v3643_v43 = vpop.eup %3642  ;;  %v2019_v3 = vadd.f32 1.0, %v3641_v35 }
 0xf67   :  { %2077 = vrot.lane.b32.xlu1 %v3631_v45, %s3947_s3  ;;  %3650 = vpow2.f32 %v3095_v61  ;;  %v3645_v22 = vpop.eup %3644  ;;  %v2021_v25 = vadd.f32 1.0, %v3643_v43 }
 0xf68   :  { %3652 = vpow2.f32 %v3097_v20  ;;  %v3647_v49 = vpop.eup %3646  ;;  %v2020_v30 = vadd.f32 1.0, %v3645_v22 }
 0xf69   :  { %3654 = vrcp.f32 %v2018_v59  ;;  %v2023_v34 = vadd.f32 1.0, %v3647_v49 }
 0xf6a   :  { %2079 = vrot.lane.b32.xlu0 %v3635_v63, %s3947_s3  ;;  %3656 = vrcp.f32 %v2019_v3 }
 0xf6b   :  { %3658 = vrcp.f32 %v2021_v25 }
 0xf6c   :  { %3660 = vrcp.f32 %v2020_v30 }
 0xf6d   :  { %3662 = vrcp.f32 %v2023_v34 }
 0xf70   :  { %v4662_v48 = vpop.eup %3648 }
 0xf71   :  { %v3651_v36 = vpop.eup %3650  ;;  %v2049_v29 = vmul.f32 %v4662_v48, %v4588_v24 }
 0xf72   :  { %v2022_v32 = vadd.f32 1.0, %v3651_v36  ;;  %v3653_v37 = vpop.eup %3652 }
 0xf73   :  { %v2024_v42 = vadd.f32 1.0, %v3653_v37  ;;  %v4666_v26 = vpop.eup %3654 }
 0xf74   :  { %3664 = vrcp.f32 %v2022_v32  ;;  %v4668_v47 = vpop.eup %3656  ;;  %v2050_v45 = vmul.f32 %v4666_v26, %v4595_v8 }
 0xf75   :  { %3666 = vrcp.f32 %v2024_v42  ;;  %v4673_v6 = vpop.eup %3658  ;;  %v2051_v4 = vmul.f32 %v4668_v47, %v4597_v56 }
 0xf76   :  { %v4676_v14 = vpop.eup %3660  ;;  %v2053_v24 = vmul.f32 %v4673_v6, %v4605_v57 }
 0xf77   :  { %v4681_v21 = vpop.eup %3662  ;;  %v2052_v8 = vmul.f32 %v4676_v14, %v4608_v15 }
 0xf78   :  { %v2055_v58 = vmul.f32 %v4681_v21, %v4616_v62 }
 0xf7e   :  { %v4684_v46 = vpop.eup %3664 }
 0xf7f   :  { %v4690_v10 = vpop.eup %3666  ;;  %v2054_v57 = vmul.f32 %v4684_v46, %v4618_v18 }
 0xf80   :  { %v2056_v35 = vmul.f32 %v4690_v10, %v4624_v7 }
 0xfcd   :  { %v2066_v51 = vpop.permute.xlu1 %2065 }
 0xfce   :  { %v2089_v55 = vmul.f32 %v4662_v48, %v2066_v51 }
 0xfd0   :  { %2105 = vrot.lane.b32.xlu1 %v2089_v55, %s3948_s10  ;;  %v2070_v31 = vpop.permute.xlu0 %2069 }
 0xfd1   :  { %v2068_v44 = vpop.permute.xlu1 %2067  ;;  %v2091_v50 = vmul.f32 %v4668_v47, %v2070_v31 }
 0xfd2   :  { %v2090_v41 = vmul.f32 %v4666_v26, %v2068_v44 }
 0xfd3   :  { %2109 = vrot.lane.b32.xlu0 %v2091_v50, %s3948_s10 }
 0xfd4   :  { %2107 = vrot.lane.b32.xlu1 %v2090_v41, %s3948_s10  ;;  %v2072_v11 = vpop.permute.xlu0 %2071 }
 0xfd5   :  { %v2074_v40 = vpop.permute.xlu1 %2073  ;;  %v2092_v54 = vmul.f32 %v4676_v14, %v2072_v11 }
 0xfd6   :  { %v2093_v17 = vmul.f32 %v4673_v6, %v2074_v40 }
 0xfd7   :  { %2111 = vrot.lane.b32.xlu0 %v2092_v54, %s3948_s10 }
 0xfd8   :  { %2113 = vrot.lane.b32.xlu1 %v2093_v17, %s3948_s10  ;;  %v2076_v60 = vpop.permute.xlu0 %2075 }
 0xfd9   :  { %v2078_v5 = vpop.permute.xlu1 %2077  ;;  %v2094_v12 = vmul.f32 %v4684_v46, %v2076_v60 }
 0xfda   :  { %v2095_v33 = vmul.f32 %v4681_v21, %v2078_v5 }
 0xfdb   :  { %2115 = vrot.lane.b32.xlu0 %v2094_v12, %s3948_s10 }
 0xfdc   :  { %2117 = vrot.lane.b32.xlu1 %v2095_v33, %s3948_s10  ;;  %v2080_v2 = vpop.permute.xlu0 %2079 }
 0xfdd   :  { %v2096_v52 = vmul.f32 %v4690_v10, %v2080_v2 }
 0xfdf   :  { %2119 = vrot.lane.b32.xlu0 %v2096_v52, %s3948_s10 }
0x1042   :  { %v2106_v16 = vpop.permute.xlu1 %2105 }
0x1043   :  { %v4696_v39 = vadd.f32 %v2106_v16, %v2049_v29 }
0x1045   :  { %3668 = vtanh.f32 %v4696_v39  ;;  %v2110_v28 = vpop.permute.xlu0 %2109 }
0x1046   :  { %v2108_v63 = vpop.permute.xlu1 %2107  ;;  %v4705_v9 = vadd.f32 %v2110_v28, %v2051_v4  ;;  %v2185_v4 = vld [vmem:[#allocation2 + $0x6] sm:$0x1] }
0x1047   :  { %v4703_v23 = vadd.f32 %v2108_v63, %v2050_v45 }
0x1049   :  { %3670 = vtanh.f32 %v4703_v23  ;;  %v2112_v13 = vpop.permute.xlu0 %2111 }
0x104a   :  { %3672 = vtanh.f32 %v4705_v9  ;;  %v2114_v27 = vpop.permute.xlu1 %2113  ;;  %v4716_v38 = vadd.f32 %v2112_v13, %v2052_v8  ;;  %v2187_v8 = vld [vmem:[#allocation2 + $0x16] sm:$0x1] }
0x104b   :  { %v4713_v56 = vadd.f32 %v2114_v27, %v2053_v24 }
0x104d   :  { %3674 = vtanh.f32 %v4713_v56  ;;  %v2116_v15 = vpop.permute.xlu0 %2115 }
0x104e   :  { %3676 = vtanh.f32 %v4716_v38  ;;  %v2118_v61 = vpop.permute.xlu1 %2117  ;;  %v4726_v19 = vadd.f32 %v2116_v15, %v2054_v57  ;;  %v2188_v15 = vld [vmem:[#allocation2 + $0x1e] sm:$0x1] }
0x104f   :  { %v3669_v53 = vpop.eup %3668  ;;  %v4724_v20 = vadd.f32 %v2118_v61, %v2055_v58  ;;  %v2189_v61 = vld [vmem:[#allocation2 + $0x26] sm:$0x1] }
0x1050   :  { %2153 = vrot.lane.b32.xlu1 %v3669_v53, %s3948_s10  ;;  %v2186_v53 = vld [vmem:[#allocation2 + $0xe] sm:$0x1] }
0x1051   :  { %3678 = vtanh.f32 %v4724_v20  ;;  %v2120_v62 = vpop.permute.xlu0 %2119 }
0x1052   :  { %3680 = vtanh.f32 %v4726_v19  ;;  %v4732_v3 = vadd.f32 %v2120_v62, %v2056_v35 }
0x1053   :  { %v3671_v59 = vpop.eup %3670 }
0x1054   :  { %v3673_v43 = vpop.eup %3672  ;;  %2155 = vrot.lane.b32.xlu1 %v3671_v59, %s3948_s10  ;;  %3682 = vtanh.f32 %v4732_v3 }
0x1055   :  { %2157 = vrot.lane.b32.xlu0 %v3673_v43, %s3948_s10 }
0x1057   :  { %v3675_v18 = vpop.eup %3674 }
0x1058   :  { %v3677_v22 = vpop.eup %3676  ;;  %2161 = vrot.lane.b32.xlu1 %v3675_v18, %s3948_s10  ;;  %v2191_v18 = vld [vmem:[#allocation2 + $0x36] sm:$0x1] }
0x1059   :  { %2159 = vrot.lane.b32.xlu0 %v3677_v22, %s3948_s10  ;;  %v2190_v22 = vld [vmem:[#allocation2 + $0x2e] sm:$0x1] }
0x105b   :  { %v3679_v49 = vpop.eup %3678 }
0x105c   :  { %v3681_v25 = vpop.eup %3680  ;;  %2165 = vrot.lane.b32.xlu1 %v3679_v49, %s3948_s10 }
0x105d   :  { %2163 = vrot.lane.b32.xlu0 %v3681_v25, %s3948_s10 }
0x105e   :  { %v3683_v7 = vpop.eup %3682 }
0x1061   :  { %2167 = vrot.lane.b32.xlu0 %v3683_v7, %s3948_s10 }
0x10c2   :  { %v2154_v51 = vpop.permute.xlu1 %2153 }
0x10c3   :  { %v2177_v32 = vmul.f32 %v4662_v48, %v2154_v51  ;;  %v2192_v51 = vld [vmem:[#allocation2 + $0x3e] sm:$0x1] }
0x10c6   :  { %v2156_v30 = vpop.permute.xlu1 %2155 }
0x10c7   :  { %v2158_v36 = vpop.permute.xlu0 %2157  ;;  %v2178_v55 = vmul.f32 %v4666_v26, %v2156_v30 }
0x10c8   :  { %v2179_v34 = vmul.f32 %v4668_v47, %v2158_v36 }
0x10c9   :  { %v2201_v37 = vrot.slane %v2178_v55, 7 }
0x10ca   :  { %v2162_v42 = vpop.permute.xlu1 %2161  ;;  %v2203_v44 = vrot.slane %v2179_v34, 6 }
0x10cb   :  { %v2202_v31 = vsel %vm595_vm4, %v2201_v37, %v2177_v32  ;;  %v2160_v41 = vpop.permute.xlu0 %2159  ;;  %v2181_v50 = vmul.f32 %v4673_v6, %v2162_v42 }
0x10cc   :  { %v2180_v40 = vmul.f32 %v4676_v14, %v2160_v41  ;;  %v2204_v11 = vsel %vm598_vm5, %v2203_v44, %v2202_v31 }
0x10cd   :  { %v2207_v17 = vrot.slane %v2181_v50, 4 }
0x10ce   :  { %v2205_v54 = vrot.slane %v2180_v40, 5  ;;  %v2166_v5 = vpop.permute.xlu1 %2165 }
0x10cf   :  { %v2164_v26 = vpop.permute.xlu0 %2163  ;;  %v2183_v47 = vmul.f32 %v4681_v21, %v2166_v5 }
0x10d0   :  { %v2206_v48 = vsel %vm601_vm6, %v2205_v54, %v2204_v11  ;;  %v2182_v60 = vmul.f32 %v4684_v46, %v2164_v26 }
0x10d1   :  { %v2208_v33 = vsel %vm604_vm7, %v2207_v17, %v2206_v48  ;;  %v2211_v12 = vrot.slane %v2183_v47, 2 }
0x10d2   :  { %v2209_v2 = vrot.slane %v2182_v60, 3 }
0x10d3   :  { %v2168_v52 = vpop.permute.xlu0 %2167 }
0x10d4   :  { %v2210_v6 = vsel %vm607_vm8, %v2209_v2, %v2208_v33  ;;  %v2184_v14 = vmul.f32 %v4690_v10, %v2168_v52 }
0x10d5   :  { %v2212_v29 = vsel %vm610_vm9, %v2211_v12, %v2210_v6 }
0x10d6   :  { %v2213_v16 = vrot.slane %v2184_v14, 1 }
0x10d8   :  { %v2214_v45 = vsel %vm613_vm10, %v2213_v16, %v2212_v29 }
0x10d9   :  { %2215 = vrot.lane.b32.xlu1 %v2214_v45, %s3949_s21 }
0x114b   :  { %v2216_v21 = vpop.permute.xlu1 %2215 }
0x114c   :  { %3227 = vmatmul.mubr.msk.f32.vlgmr.msra.gmra.mrb[10].mxu1 %vm83_vm1, %v2216_v21 }
0x114d   :  { %3244 = vmatprep.mubr.msk.f32.mxu1 %vm3945_vm0, %v3946_v1 }
0x121f   :  { %v2285_v46 = vpop.f32.mrb[10].mxu1 }
0x1220   :  { %v3228_v63 = vpop.f32.mrb[11].mxu1  ;;  %v2305_v28 = vadd.f32 %v2285_v46, %v2185_v4  ;;  %v2290_v24 = vrot.slane %v2285_v46, 1  ;;  %v2291_v10 = vrot.slane %v2285_v46, 2  ;;  %v2293_v27 = vrot.slane %v2285_v46, 4 }
0x1221   :  { %v2292_v58 = vrot.slane %v2285_v46, 3  ;;  %v2295_v35 = vrot.slane %v2285_v46, 6  ;;  %v2294_v1 = vrot.slane %v2285_v46, 5  ;;  %v2296_v25 = vrot.slane %v2285_v46, 7 }
0x1222   :  { %3684 = vtanh.f32 %v2305_v28  ;;  %v2306_v13 = vadd.f32 %v2290_v24, %v2186_v53  ;;  %v2307_v57 = vadd.f32 %v2291_v10, %v2187_v8  ;;  %v2309_v59 = vadd.f32 %v2293_v27, %v2189_v61 }
0x1223   :  { %v2308_v43 = vadd.f32 %v2292_v58, %v2188_v15  ;;  %v2311_v49 = vadd.f32 %v2295_v35, %v2191_v18  ;;  %v2310_v7 = vadd.f32 %v2294_v1, %v2190_v22  ;;  %v2312_v30 = vadd.f32 %v2296_v25, %v2192_v51 }
0x1224   :  { %3686 = vtanh.f32 %v2306_v13  ;;  %v3099_v31 = vmul.f32 -1.442695, %v2305_v28  ;;  %v3100_v41 = vmul.f32 -1.442695, %v2306_v13  ;;  %v3101_v50 = vmul.f32 -1.442695, %v2307_v57 }
0x1225   :  { %3688 = vtanh.f32 %v2307_v57  ;;  %v3103_v40 = vmul.f32 -1.442695, %v2309_v59  ;;  %v3102_v17 = vmul.f32 -1.442695, %v2308_v43  ;;  %v3105_v54 = vmul.f32 -1.442695, %v2311_v49 }
0x1226   :  { %3690 = vtanh.f32 %v2309_v59  ;;  %v3104_v26 = vmul.f32 -1.442695, %v2310_v7  ;;  %v3106_v47 = vmul.f32 -1.442695, %v2312_v30 }
0x1227   :  { %3692 = vtanh.f32 %v2308_v43 }
0x1228   :  { %3694 = vtanh.f32 %v2311_v49 }
0x1229   :  { %3696 = vtanh.f32 %v2310_v7 }
0x122a   :  { %3698 = vtanh.f32 %v2312_v30 }
0x122b   :  { %3700 = vpow2.f32 %v3099_v31 }
0x122c   :  { %v3685_v62 = vpop.eup %3684  ;;  %3702 = vpow2.f32 %v3100_v41 }
0x122d   :  { %2385 = vrot.lane.b32.xlu0 %v3685_v62, %s3947_s3  ;;  %3704 = vpow2.f32 %v3101_v50 }
0x122e   :  { %v3687_v36 = vpop.eup %3686  ;;  %3706 = vpow2.f32 %v3103_v40 }
0x122f   :  { %v3689_v55 = vpop.eup %3688  ;;  %3708 = vpow2.f32 %v3102_v17 }
0x1230   :  { %2389 = vrot.lane.b32.xlu1 %v3689_v55, %s3947_s3  ;;  %v3691_v34 = vpop.eup %3690  ;;  %3710 = vpow2.f32 %v3105_v54 }
0x1231   :  { %2387 = vrot.lane.b32.xlu0 %v3687_v36, %s3947_s3  ;;  %v3693_v32 = vpop.eup %3692 }
0x1232   :  { %v3695_v37 = vpop.eup %3694 }
0x1233   :  { %v3697_v42 = vpop.eup %3696 }
0x1234   :  { %2391 = vrot.lane.b32.xlu1 %v3693_v32, %s3947_s3  ;;  %v3699_v44 = vpop.eup %3698 }
0x1235   :  { %2393 = vrot.lane.b32.xlu0 %v3691_v34, %s3947_s3  ;;  %v3701_v11 = vpop.eup %3700 }
0x1236   :  { %v2337_v5 = vadd.f32 1.0, %v3701_v11  ;;  %v3703_v48 = vpop.eup %3702 }
0x1237   :  { %v3705_v60 = vpop.eup %3704  ;;  %v2338_v33 = vadd.f32 1.0, %v3703_v48 }
0x1238   :  { %2395 = vrot.lane.b32.xlu1 %v3697_v42, %s3947_s3  ;;  %3712 = vrcp.f32 %v2337_v5  ;;  %v3707_v12 = vpop.eup %3706  ;;  %v2339_v2 = vadd.f32 1.0, %v3705_v60 }
0x1239   :  { %2397 = vrot.lane.b32.xlu0 %v3695_v37, %s3947_s3  ;;  %3714 = vpow2.f32 %v3104_v26  ;;  %v3709_v52 = vpop.eup %3708  ;;  %v2341_v14 = vadd.f32 1.0, %v3707_v12 }
0x123a   :  { %3716 = vpow2.f32 %v3106_v47  ;;  %v3711_v6 = vpop.eup %3710  ;;  %v2340_v45 = vadd.f32 1.0, %v3709_v52 }
0x123b   :  { %3718 = vrcp.f32 %v2338_v33  ;;  %v2343_v4 = vadd.f32 1.0, %v3711_v6 }
0x123c   :  { %2399 = vrot.lane.b32.xlu1 %v3699_v44, %s3947_s3  ;;  %3720 = vrcp.f32 %v2339_v2 }
0x123d   :  { %3722 = vrcp.f32 %v2341_v14 }
0x123e   :  { %3724 = vrcp.f32 %v2340_v45 }
0x123f   :  { %3726 = vrcp.f32 %v2343_v4 }
0x1242   :  { %v4769_v29 = vpop.eup %3712 }
0x1243   :  { %v3715_v21 = vpop.eup %3714  ;;  %v2369_v36 = vmul.f32 %v4769_v29, %v4696_v39 }
0x1244   :  { %v2342_v63 = vadd.f32 1.0, %v3715_v21  ;;  %v3717_v28 = vpop.eup %3716 }
0x1245   :  { %v2344_v24 = vadd.f32 1.0, %v3717_v28  ;;  %v4773_v10 = vpop.eup %3718 }
0x1246   :  { %3728 = vrcp.f32 %v2342_v63  ;;  %v4775_v8 = vpop.eup %3720  ;;  %v2370_v32 = vmul.f32 %v4773_v10, %v4703_v23 }
0x1247   :  { %3730 = vrcp.f32 %v2344_v24  ;;  %v4780_v57 = vpop.eup %3722  ;;  %v2371_v37 = vmul.f32 %v4775_v8, %v4705_v9 }
0x1248   :  { %v4783_v15 = vpop.eup %3724  ;;  %v2373_v39 = vmul.f32 %v4780_v57, %v4713_v56 }
0x1249   :  { %v4788_v1 = vpop.eup %3726  ;;  %v2372_v23 = vmul.f32 %v4783_v15, %v4716_v38 }
0x124a   :  { %v2375_v54 = vmul.f32 %v4788_v1, %v4724_v20 }
0x1250   :  { %v4791_v18 = vpop.eup %3728 }
0x1251   :  { %v4797_v7 = vpop.eup %3730  ;;  %v2374_v56 = vmul.f32 %v4791_v18, %v4726_v19 }
0x1252   :  { %v2376_v48 = vmul.f32 %v4797_v7, %v4732_v3 }
0x129f   :  { %v2386_v16 = vpop.permute.xlu0 %2385 }
0x12a0   :  { %v2409_v46 = vmul.f32 %v4769_v29, %v2386_v16 }
0x12a2   :  { %2425 = vrot.lane.b32.xlu0 %v2409_v46, %s3948_s10  ;;  %v2390_v27 = vpop.permute.xlu1 %2389 }
0x12a3   :  { %v2388_v53 = vpop.permute.xlu0 %2387  ;;  %v2411_v58 = vmul.f32 %v4775_v8, %v2390_v27 }
0x12a4   :  { %v2410_v13 = vmul.f32 %v4773_v10, %v2388_v53 }
0x12a5   :  { %2429 = vrot.lane.b32.xlu1 %v2411_v58, %s3948_s10 }
0x12a6   :  { %2427 = vrot.lane.b32.xlu0 %v2410_v13, %s3948_s10  ;;  %v2392_v35 = vpop.permute.xlu1 %2391 }
0x12a7   :  { %v2394_v61 = vpop.permute.xlu0 %2393  ;;  %v2412_v62 = vmul.f32 %v4783_v15, %v2392_v35  ;;  %v2889_v35 = vld [vmem:[#allocation11 + $0x8] sm:$0xff] }
0x12a8   :  { %v2413_v59 = vmul.f32 %v4780_v57, %v2394_v61  ;;  %v2888_v61 = vld [vmem:[#allocation11] sm:$0xff] }
0x12a9   :  { %2431 = vrot.lane.b32.xlu1 %v2412_v62, %s3948_s10 }
0x12aa   :  { %2433 = vrot.lane.b32.xlu0 %v2413_v59, %s3948_s10  ;;  %v2396_v22 = vpop.permute.xlu1 %2395  ;;  %v2890_v59 = vld [vmem:[#allocation11 + $0x10] sm:$0xff] }
0x12ab   :  { %v2398_v43 = vpop.permute.xlu0 %2397  ;;  %v2414_v25 = vmul.f32 %v4791_v18, %v2396_v22  ;;  %v2880_v22 = vld [vmem:[#allocation5 + $0x7] sm:$0x1] }
0x12ac   :  { %v2415_v49 = vmul.f32 %v4788_v1, %v2398_v43  ;;  %v3280_v43 = vpack.c.bf16 %v2889_v35, %v2888_v61 }
0x12ad   :  { %2435 = vrot.lane.b32.xlu1 %v2414_v25, %s3948_s10 }
0x12ae   :  { %2437 = vrot.lane.b32.xlu0 %v2415_v49, %s3948_s10  ;;  %v2400_v51 = vpop.permute.xlu1 %2399  ;;  %3281 = vmatpush3.bf16.msra.mxu1 %v3280_v43 }
0x12af   :  { %v2416_v30 = vmul.f32 %v4797_v7, %v2400_v51  ;;  %v2882_v51 = vld [vmem:[#allocation5 + $0x17] sm:$0x1]  ;;  %3282 = vmatprep.subr.bf16.mxu1 %v3944_v0 }
0x12b1   :  { %2439 = vrot.lane.b32.xlu1 %v2416_v30, %s3948_s10  ;;  %v2883_v30 = vld [vmem:[#allocation5 + $0x1f] sm:$0x1] }
0x1314   :  { %v2426_v55 = vpop.permute.xlu0 %2425 }
0x1315   :  { %v4803_v34 = vadd.f32 %v2426_v55, %v2369_v36 }
0x1317   :  { %3732 = vtanh.f32 %v4803_v34  ;;  %v2430_v44 = vpop.permute.xlu1 %2429 }
0x1318   :  { %v2428_v42 = vpop.permute.xlu0 %2427  ;;  %v4812_v41 = vadd.f32 %v2430_v44, %v2371_v37  ;;  %v2885_v37 = vld [vmem:[#allocation5 + $0x2f] sm:$0x1] }
0x1319   :  { %v4810_v31 = vadd.f32 %v2428_v42, %v2370_v32  ;;  %v2884_v32 = vld [vmem:[#allocation5 + $0x27] sm:$0x1]  ;;  %v2886_v42 = vld [vmem:[#allocation5 + $0x37] sm:$0x1] }
0x131b   :  { %3734 = vtanh.f32 %v4810_v31  ;;  %v2432_v11 = vpop.permute.xlu1 %2431 }
0x131c   :  { %3736 = vtanh.f32 %v4812_v41  ;;  %v2434_v40 = vpop.permute.xlu0 %2433  ;;  %v4823_v17 = vadd.f32 %v2432_v11, %v2372_v23 }
0x131d   :  { %v4820_v9 = vadd.f32 %v2434_v40, %v2373_v39  ;;  %v2909_v40 = vrot.slane %v2882_v51, 6  ;;  %v2511_v51 = vld [vmem:[#allocation2 + $0x37] sm:$0x1] }
0x131f   :  { %3738 = vtanh.f32 %v4820_v9  ;;  %v2436_v38 = vpop.permute.xlu1 %2435 }
0x1320   :  { %3740 = vtanh.f32 %v4823_v17  ;;  %v2438_v5 = vpop.permute.xlu0 %2437  ;;  %v4833_v47 = vadd.f32 %v2436_v38, %v2374_v56  ;;  %v2911_v56 = vrot.slane %v2883_v30, 5  ;;  %v2510_v30 = vld [vmem:[#allocation2 + $0x2f] sm:$0x1] }
0x1321   :  { %v3733_v50 = vpop.eup %3732  ;;  %v4831_v26 = vadd.f32 %v2438_v5, %v2375_v54 }
0x1322   :  { %2473 = vrot.lane.b32.xlu0 %v3733_v50, %s3948_s10  ;;  %v2887_v50 = vld [vmem:[#allocation5 + $0x3f] sm:$0x1] }
0x1323   :  { %3742 = vtanh.f32 %v4831_v26  ;;  %v2440_v20 = vpop.permute.xlu1 %2439 }
0x1324   :  { %3744 = vtanh.f32 %v4833_v47  ;;  %v4839_v12 = vadd.f32 %v2440_v20, %v2376_v48  ;;  %v2915_v48 = vrot.slane %v2885_v37, 3 }
0x1325   :  { %v3735_v60 = vpop.eup %3734 }
0x1326   :  { %v3737_v33 = vpop.eup %3736  ;;  %2475 = vrot.lane.b32.xlu0 %v3735_v60, %s3948_s10  ;;  %3746 = vtanh.f32 %v4839_v12  ;;  %v2917_v60 = vrot.slane %v2886_v42, 2 }
0x1327   :  { %2477 = vrot.lane.b32.xlu1 %v3737_v33, %s3948_s10  ;;  %v2919_v33 = vrot.slane %v2887_v50, 1 }
0x1329   :  { %v3739_v19 = vpop.eup %3738 }
0x132a   :  { %v3741_v2 = vpop.eup %3740  ;;  %2481 = vrot.lane.b32.xlu0 %v3739_v19, %s3948_s10 }
0x132b   :  { %2479 = vrot.lane.b32.xlu1 %v3741_v2, %s3948_s10 }
0x132d   :  { %v3743_v52 = vpop.eup %3742 }
0x132e   :  { %v3745_v6 = vpop.eup %3744  ;;  %2485 = vrot.lane.b32.xlu0 %v3743_v52, %s3948_s10 }
0x132f   :  { %2483 = vrot.lane.b32.xlu1 %v3745_v6, %s3948_s10 }
0x1330   :  { %v3747_v3 = vpop.eup %3746 }
0x1333   :  { %2487 = vrot.lane.b32.xlu1 %v3747_v3, %s3948_s10 }
0x1394   :  { %v2474_v14 = vpop.permute.xlu0 %2473 }
0x1395   :  { %v2497_v4 = vmul.f32 %v4769_v29, %v2474_v14  ;;  %v2881_v29 = vld [vmem:[#allocation5 + $0xf] sm:$0x1] }
0x1396   :  { %v2907_v36 = vrot.slane %v2881_v29, 7 }
0x1398   :  { %v2476_v16 = vpop.permute.xlu0 %2475  ;;  %v2908_v23 = vsel %vm595_vm4, %v2907_v36, %v2880_v22 }
0x1399   :  { %v2478_v45 = vpop.permute.xlu1 %2477  ;;  %v2498_v21 = vmul.f32 %v4773_v10, %v2476_v16  ;;  %v2910_v38 = vsel %vm598_vm5, %v2909_v40, %v2908_v23 }
0x139a   :  { %v2499_v46 = vmul.f32 %v4775_v8, %v2478_v45  ;;  %v2891_v8 = vld [vmem:[#allocation11 + $0x18] sm:$0xff] }
0x139b   :  { %v2521_v63 = vrot.slane %v2498_v21, 7 }
0x139c   :  { %v2482_v28 = vpop.permute.xlu0 %2481  ;;  %v2523_v24 = vrot.slane %v2499_v46, 6  ;;  %v2505_v46 = vld [vmem:[#allocation2 + $0x7] sm:$0x1] }
0x139d   :  { %v2522_v53 = vsel %vm595_vm4, %v2521_v63, %v2497_v4  ;;  %v2480_v27 = vpop.permute.xlu1 %2479  ;;  %v2501_v13 = vmul.f32 %v4780_v57, %v2482_v28 }
0x139e   :  { %v2500_v58 = vmul.f32 %v4783_v15, %v2480_v27  ;;  %v2524_v62 = vsel %vm598_vm5, %v2523_v24, %v2522_v53  ;;  %v3283_v15 = vpack.c.bf16 %v2891_v8, %v2890_v59  ;;  %v2506_v53 = vld [vmem:[#allocation2 + $0xf] sm:$0x1]  ;;  %v2507_v27 = vld [vmem:[#allocation2 + $0x17] sm:$0x1]  ;;  %v2509_v59 = vld [vmem:[#allocation2 + $0x27] sm:$0x1] }
0x139f   :  { %v2527_v10 = vrot.slane %v2501_v13, 4 }
0x13a0   :  { %v2525_v49 = vrot.slane %v2500_v58, 5  ;;  %v2486_v25 = vpop.permute.xlu0 %2485  ;;  %3284 = vmatpush3.bf16.msra.mxu1 %v3283_v15  ;;  %v2512_v15 = vld [vmem:[#allocation2 + $0x3f] sm:$0x1] }
0x13a1   :  { %v2484_v55 = vpop.permute.xlu1 %2483  ;;  %v2503_v57 = vmul.f32 %v4788_v1, %v2486_v25  ;;  %v2913_v1 = vrot.slane %v2884_v32, 4 }
0x13a2   :  { %v2526_v44 = vsel %vm601_vm6, %v2525_v49, %v2524_v62  ;;  %v2502_v39 = vmul.f32 %v4791_v18, %v2484_v55  ;;  %v2912_v18 = vsel %vm601_vm6, %v2911_v56, %v2910_v38  ;;  %v2508_v62 = vld [vmem:[#allocation2 + $0x1f] sm:$0x1] }
0x13a3   :  { %v2528_v11 = vsel %vm604_vm7, %v2527_v10, %v2526_v44  ;;  %v2531_v54 = vrot.slane %v2503_v57, 2  ;;  %v2914_v2 = vsel %vm604_vm7, %v2913_v1, %v2912_v18 }
0x13a4   :  { %v2529_v5 = vrot.slane %v2502_v39, 3  ;;  %v2916_v6 = vsel %vm607_vm8, %v2915_v48, %v2914_v2 }
0x13a5   :  { %v2488_v20 = vpop.permute.xlu1 %2487  ;;  %v2918_v14 = vsel %vm610_vm9, %v2917_v60, %v2916_v6 }
0x13a6   :  { %v2530_v0 = vsel %vm607_vm8, %v2529_v5, %v2528_v11  ;;  %v2504_v19 = vmul.f32 %v4797_v7, %v2488_v20  ;;  %v2920_v16 = vsel %vm613_vm10, %v2919_v33, %v2918_v14 }
0x13a7   :  { %v2532_v52 = vsel %vm610_vm9, %v2531_v54, %v2530_v0  ;;  %3245 = vmatmul.mubr.msk.f32.vlgmr.msra.gmra.mrb[12].mxu1 %vm105_vm2, %v2920_v16 }
0x13a8   :  { %v2533_v3 = vrot.slane %v2504_v19, 1 }
0x13aa   :  { %v2534_v45 = vsel %vm613_vm10, %v2533_v3, %v2532_v52 }
0x13ab   :  { %2535 = vrot.lane.b32.xlu0 %v2534_v45, %s3949_s21 }
0x141d   :  { %v2536_v21 = vpop.permute.xlu0 %2535 }
0x141e   :  { %3234 = vmatmul.mubr.msk.f32.vlgmr.msra.gmra.mrb[10].mxu0 %vm83_vm1, %v2536_v21 }
0x147a   :  { %v4875_v49 = vpop.f32.mrb[12].mxu1 }
0x147b   :  { %v3246_v25 = vpop.f32.mrb[13].mxu1 }
0x14f1   :  { %v2605_v7 = vpop.f32.mrb[10].mxu0 }
0x14f2   :  { %v3235_v4 = vpop.f32.mrb[11].mxu0  ;;  %v2625_v63 = vadd.f32 %v2605_v7, %v2505_v46  ;;  %v2610_v28 = vrot.slane %v2605_v7, 1  ;;  %v2611_v24 = vrot.slane %v2605_v7, 2  ;;  %v2613_v13 = vrot.slane %v2605_v7, 4 }
0x14f3   :  { %v2612_v61 = vrot.slane %v2605_v7, 3  ;;  %v2615_v10 = vrot.slane %v2605_v7, 6  ;;  %v2614_v22 = vrot.slane %v2605_v7, 5  ;;  %v2616_v55 = vrot.slane %v2605_v7, 7 }
0x14f4   :  { %3748 = vtanh.f32 %v2625_v63  ;;  %v2626_v58 = vadd.f32 %v2610_v28, %v2506_v53  ;;  %v2627_v35 = vadd.f32 %v2611_v24, %v2507_v27  ;;  %v2629_v43 = vadd.f32 %v2613_v13, %v2509_v59 }
0x14f5   :  { %v2628_v29 = vadd.f32 %v2612_v61, %v2508_v62  ;;  %v2631_v36 = vadd.f32 %v2615_v10, %v2511_v51  ;;  %v2630_v57 = vadd.f32 %v2614_v22, %v2510_v30  ;;  %v2632_v32 = vadd.f32 %v2616_v55, %v2512_v15 }
0x14f6   :  { %3750 = vtanh.f32 %v2626_v58  ;;  %v3108_v11 = vmul.f32 -1.442695, %v2625_v63  ;;  %v3109_v54 = vmul.f32 -1.442695, %v2626_v58  ;;  %v3110_v56 = vmul.f32 -1.442695, %v2627_v35 }
0x14f7   :  { %3752 = vtanh.f32 %v2627_v35  ;;  %v3112_v1 = vmul.f32 -1.442695, %v2629_v43  ;;  %v3111_v38 = vmul.f32 -1.442695, %v2628_v29  ;;  %v3114_v48 = vmul.f32 -1.442695, %v2631_v36 }
0x14f8   :  { %3754 = vtanh.f32 %v2629_v43  ;;  %v3113_v20 = vmul.f32 -1.442695, %v2630_v57  ;;  %v3115_v18 = vmul.f32 -1.442695, %v2632_v32  ;;  %v3116_v63 = vld [vmem:[%s4989_s5] ss:$0 sm:$0xff] }
0x14f9   :  { %3756 = vtanh.f32 %v2628_v29  ;;  %v2990_v53 = vadd.f32 %v3116_v63, %v4875_v49  ;;  %s3950_s5 = smov 32  }
0x14fa   :  { %3758 = vtanh.f32 %v2631_v36 }
0x14fb   :  { %3760 = vtanh.f32 %v2630_v57 }
0x14fc   :  { %3762 = vtanh.f32 %v2632_v32 }
0x14fd   :  { %3764 = vpow2.f32 %v3108_v11 }
0x14fe   :  { %v3749_v8 = vpop.eup %3748  ;;  %3766 = vpow2.f32 %v3109_v54 }
0x14ff   :  { %2705 = vrot.lane.b32.xlu1 %v3749_v8, %s3947_s3  ;;  %3768 = vpow2.f32 %v3110_v56 }
0x1500   :  { %v3751_v37 = vpop.eup %3750  ;;  %3770 = vpow2.f32 %v3112_v1 }
0x1501   :  { %v3753_v42 = vpop.eup %3752  ;;  %3772 = vpow2.f32 %v3111_v38 }
0x1502   :  { %2709 = vrot.lane.b32.xlu0 %v3753_v42, %s3947_s3  ;;  %v3755_v44 = vpop.eup %3754  ;;  %3774 = vpow2.f32 %v3114_v48 }
0x1503   :  { %2707 = vrot.lane.b32.xlu1 %v3751_v37, %s3947_s3  ;;  %v3757_v39 = vpop.eup %3756 }
0x1504   :  { %v3759_v50 = vpop.eup %3758 }
0x1505   :  { %v3761_v23 = vpop.eup %3760 }
0x1506   :  { %2711 = vrot.lane.b32.xlu0 %v3757_v39, %s3947_s3  ;;  %v3763_v40 = vpop.eup %3762 }
0x1507   :  { %2713 = vrot.lane.b32.xlu1 %v3755_v44, %s3947_s3  ;;  %v3765_v5 = vpop.eup %3764  ;;  %v3118_v44 = vmul.f32 -1.442695, %v2990_v53 }
0x1508   :  { %v2657_v60 = vadd.f32 1.0, %v3765_v5  ;;  %v3767_v33 = vpop.eup %3766 }
0x1509   :  { %v3769_v0 = vpop.eup %3768  ;;  %v2658_v19 = vadd.f32 1.0, %v3767_v33 }
0x150a   :  { %2715 = vrot.lane.b32.xlu0 %v3761_v23, %s3947_s3  ;;  %3776 = vrcp.f32 %v2657_v60  ;;  %v3771_v2 = vpop.eup %3770  ;;  %v2659_v52 = vadd.f32 1.0, %v3769_v0 }
0x150b   :  { %2717 = vrot.lane.b32.xlu1 %v3759_v50, %s3947_s3  ;;  %3778 = vpow2.f32 %v3113_v20  ;;  %v3773_v6 = vpop.eup %3772  ;;  %v2661_v14 = vadd.f32 1.0, %v3771_v2 }
0x150c   :  { %3780 = vpow2.f32 %v3115_v18  ;;  %v3775_v3 = vpop.eup %3774  ;;  %v2660_v21 = vadd.f32 1.0, %v3773_v6 }
0x150d   :  { %3782 = vrcp.f32 %v2658_v19  ;;  %v2663_v4 = vadd.f32 1.0, %v3775_v3 }
0x150e   :  { %2719 = vrot.lane.b32.xlu0 %v3763_v40, %s3947_s3  ;;  %3784 = vrcp.f32 %v2659_v52 }
0x150f   :  { %3786 = vrcp.f32 %v2661_v14 }
0x1510   :  { %3788 = vrcp.f32 %v2660_v21 }
0x1511   :  { %3790 = vrcp.f32 %v2663_v4 }
0x1514   :  { %v4885_v16 = vpop.eup %3776 }
0x1515   :  { %v3779_v7 = vpop.eup %3778  ;;  %v2689_v39 = vmul.f32 %v4885_v16, %v4803_v34 }
0x1516   :  { %v2662_v28 = vadd.f32 1.0, %v3779_v7  ;;  %v3781_v24 = vpop.eup %3780 }
0x1517   :  { %v2664_v27 = vadd.f32 1.0, %v3781_v24  ;;  %v4893_v13 = vpop.eup %3782 }
0x1518   :  { %3792 = vrcp.f32 %v2662_v28  ;;  %v4895_v61 = vpop.eup %3784  ;;  %v2690_v54 = vmul.f32 %v4893_v13, %v4810_v31 }
0x1519   :  { %3794 = vtanh.f32 %v2990_v53  ;;  %v4900_v10 = vpop.eup %3786  ;;  %v2691_v56 = vmul.f32 %v4895_v61, %v4812_v41 }
0x151a   :  { %3796 = vrcp.f32 %v2664_v27  ;;  %v4903_v8 = vpop.eup %3788  ;;  %v2693_v34 = vmul.f32 %v4900_v10, %v4820_v9 }
0x151b   :  { %v4908_v25 = vpop.eup %3790  ;;  %3798 = vpow2.f32 %v3118_v44  ;;  %v2692_v33 = vmul.f32 %v4903_v8, %v4823_v17 }
0x151c   :  { %v2695_v9 = vmul.f32 %v4908_v25, %v4831_v26 }
0x1522   :  { %v4911_v30 = vpop.eup %3792 }
0x1523   :  { %v3795_v15 = vpop.eup %3794  ;;  %v2694_v17 = vmul.f32 %v4911_v30, %v4833_v47 }
0x1524   :  { %v4917_v32 = vpop.eup %3796 }
0x1525   :  { %v3799_v40 = vpop.eup %3798  ;;  %v2696_v26 = vmul.f32 %v4917_v32, %v4839_v12 }
0x1526   :  { %v2996_v11 = vadd.f32 1.0, %v3799_v40 }
0x1571   :  { %v2706_v45 = vpop.permute.xlu1 %2705 }
0x1572   :  { %v2729_v46 = vmul.f32 %v4885_v16, %v2706_v45 }
0x1574   :  { %2745 = vrot.lane.b32.xlu1 %v2729_v46, %s3948_s10  ;;  %v2710_v35 = vpop.permute.xlu0 %2709 }
0x1575   :  { %v2708_v58 = vpop.permute.xlu1 %2707  ;;  %v2731_v62 = vmul.f32 %v4895_v61, %v2710_v35 }
0x1576   :  { %v2730_v59 = vmul.f32 %v4893_v13, %v2708_v58 }
0x1577   :  { %2749 = vrot.lane.b32.xlu0 %v2731_v62, %s3948_s10 }
0x1578   :  { %2747 = vrot.lane.b32.xlu1 %v2730_v59, %s3948_s10  ;;  %v2712_v22 = vpop.permute.xlu0 %2711 }
0x1579   :  { %v2714_v43 = vpop.permute.xlu1 %2713  ;;  %v2732_v49 = vmul.f32 %v4903_v8, %v2712_v22 }
0x157a   :  { %v2733_v29 = vmul.f32 %v4900_v10, %v2714_v43 }
0x157b   :  { %2751 = vrot.lane.b32.xlu0 %v2732_v49, %s3948_s10 }
0x157c   :  { %2753 = vrot.lane.b32.xlu1 %v2733_v29, %s3948_s10  ;;  %v2716_v36 = vpop.permute.xlu0 %2715 }
0x157d   :  { %v2718_v51 = vpop.permute.xlu1 %2717  ;;  %v2734_v57 = vmul.f32 %v4911_v30, %v2716_v36 }
0x157e   :  { %v2735_v55 = vmul.f32 %v4908_v25, %v2718_v51 }
0x157f   :  { %2755 = vrot.lane.b32.xlu0 %v2734_v57, %s3948_s10 }
0x1580   :  { %2757 = vrot.lane.b32.xlu1 %v2735_v55, %s3948_s10  ;;  %v2720_v37 = vpop.permute.xlu0 %2719 }
0x1581   :  { %v2736_v42 = vmul.f32 %v4917_v32, %v2720_v37 }
0x1583   :  { %2759 = vrot.lane.b32.xlu0 %v2736_v42, %s3948_s10 }
0x1584   :  { %3001 = vrot.lane.b32.xlu1 %v3795_v15, %s3947_s3 }
0x15e6   :  { %v2746_v50 = vpop.permute.xlu1 %2745 }
0x15e7   :  { %v2769_v23 = vadd.f32 %v2746_v50, %v2689_v39 }
0x15e9   :  { %3800 = vtanh.f32 %v2769_v23  ;;  %v2750_v5 = vpop.permute.xlu0 %2749 }
0x15ea   :  { %v2748_v1 = vpop.permute.xlu1 %2747  ;;  %3802 = vrcp.f32 %v2996_v11  ;;  %v2771_v48 = vadd.f32 %v2750_v5, %v2691_v56 }
0x15eb   :  { %v2770_v38 = vadd.f32 %v2748_v1, %v2690_v54 }
0x15ec   :  { %v2861_v18 = vrot.slane %v2771_v48, 6 }
0x15ed   :  { %3804 = vtanh.f32 %v2770_v38  ;;  %v2859_v60 = vrot.slane %v2770_v38, 7  ;;  %v2752_v41 = vpop.permute.xlu0 %2751 }
0x15ee   :  { %3806 = vtanh.f32 %v2771_v48  ;;  %v2754_v31 = vpop.permute.xlu1 %2753  ;;  %v2772_v2 = vadd.f32 %v2752_v41, %v2692_v33 }
0x15ef   :  { %v2860_v0 = vsel %vm595_vm4, %v2859_v60, %v2769_v23  ;;  %v2773_v19 = vadd.f32 %v2754_v31, %v2693_v34 }
0x15f0   :  { %v2862_v52 = vsel %vm598_vm5, %v2861_v18, %v2860_v0  ;;  %v2863_v3 = vrot.slane %v2772_v2, 5 }
0x15f1   :  { %3808 = vtanh.f32 %v2773_v19  ;;  %v2865_v6 = vrot.slane %v2773_v19, 4  ;;  %v2756_v45 = vpop.permute.xlu0 %2755 }
0x15f2   :  { %3810 = vtanh.f32 %v2772_v2  ;;  %v2758_v14 = vpop.permute.xlu1 %2757  ;;  %v2864_v7 = vsel %vm601_vm6, %v2863_v3, %v2862_v52  ;;  %v2774_v46 = vadd.f32 %v2756_v45, %v2694_v17 }
0x15f3   :  { %v3801_v20 = vpop.eup %3800  ;;  %v2775_v21 = vadd.f32 %v2758_v14, %v2695_v9  ;;  %v2866_v4 = vsel %vm604_vm7, %v2865_v6, %v2864_v7 }
0x15f4   :  { %2793 = vrot.lane.b32.xlu0 %v3801_v20, %s3948_s10  ;;  %v3803_v28 = vpop.eup %3802  ;;  %v2867_v24 = vrot.slane %v2774_v46, 3 }
0x15f5   :  { %3812 = vtanh.f32 %v2775_v21  ;;  %v2869_v63 = vrot.slane %v2775_v21, 2  ;;  %v2760_v58 = vpop.permute.xlu0 %2759 }
0x15f6   :  { %3814 = vtanh.f32 %v2774_v46  ;;  %v3002_v53 = vpop.permute.xlu1 %3001  ;;  %v2868_v59 = vsel %vm607_vm8, %v2867_v24, %v2866_v4  ;;  %v2776_v62 = vadd.f32 %v2760_v58, %v2696_v26 }
0x15f7   :  { %v3805_v27 = vpop.eup %3804  ;;  %v3004_v47 = vmul.f32 %v3803_v28, %v3002_v53  ;;  %v2870_v43 = vsel %vm610_vm9, %v2869_v63, %v2868_v59 }
0x15f8   :  { %v3807_v35 = vpop.eup %3806  ;;  %2795 = vrot.lane.b32.xlu0 %v3805_v27, %s3948_s10  ;;  %v2871_v22 = vrot.slane %v2776_v62, 1 }
0x15f9   :  { %2797 = vrot.lane.b32.xlu1 %v3807_v35, %s3948_s10  ;;  %3816 = vtanh.f32 %v3004_v47 }
0x15fa   :  { %3818 = vtanh.f32 %v2776_v62  ;;  %v2872_v12 = vsel %vm613_vm10, %v2871_v22, %v2870_v43 }
0x15fb   :  { %v3809_v29 = vpop.eup %3808 }
0x15fc   :  { %v3811_v49 = vpop.eup %3810  ;;  %2801 = vrot.lane.b32.xlu0 %v3809_v29, %s3948_s10 }
0x15fd   :  { %2799 = vrot.lane.b32.xlu1 %v3811_v49, %s3948_s10 }
0x15ff   :  { %v3813_v51 = vpop.eup %3812 }
0x1600   :  { %v3815_v36 = vpop.eup %3814  ;;  %2805 = vrot.lane.b32.xlu0 %v3813_v51, %s3948_s10 }
0x1601   :  { %2803 = vrot.lane.b32.xlu1 %v3815_v36, %s3948_s10 }
0x1603   :  { %v3817_v55 = vpop.eup %3816 }
0x1604   :  { %v3819_v57 = vpop.eup %3818  ;;  %3007 = vrot.lane.b32.xlu0 %v3817_v55, %s3950_s5 }
0x1605   :  { %2807 = vrot.lane.b32.xlu1 %v3819_v57, %s3948_s10 }
0x1666   :  { %v2794_v15 = vpop.permute.xlu0 %2793 }
0x1667   :  { %v2817_v50 = vmul.f32 %v4885_v16, %v2794_v15 }
0x166a   :  { %v2796_v37 = vpop.permute.xlu0 %2795 }
0x166b   :  { %v2798_v42 = vpop.permute.xlu1 %2797  ;;  %v2818_v44 = vmul.f32 %v4893_v13, %v2796_v37 }
0x166c   :  { %v2819_v39 = vmul.f32 %v4895_v61, %v2798_v42 }
0x166d   :  { %v2833_v23 = vrot.slane %v2818_v44, 7 }
0x166e   :  { %v2802_v40 = vpop.permute.xlu0 %2801  ;;  %v2835_v11 = vrot.slane %v2819_v39, 6 }
0x166f   :  { %v2834_v54 = vsel %vm595_vm4, %v2833_v23, %v2817_v50  ;;  %v2800_v56 = vpop.permute.xlu1 %2799  ;;  %v2821_v1 = vmul.f32 %v4900_v10, %v2802_v40 }
0x1670   :  { %v2820_v5 = vmul.f32 %v4903_v8, %v2800_v56  ;;  %v2836_v38 = vsel %vm598_vm5, %v2835_v11, %v2834_v54 }
0x1671   :  { %v2839_v48 = vrot.slane %v2821_v1, 4 }
0x1672   :  { %v2837_v60 = vrot.slane %v2820_v5, 5  ;;  %v2806_v34 = vpop.permute.xlu0 %2805 }
0x1673   :  { %v2804_v13 = vpop.permute.xlu1 %2803  ;;  %v2823_v61 = vmul.f32 %v4908_v25, %v2806_v34 }
0x1674   :  { %v2838_v16 = vsel %vm601_vm6, %v2837_v60, %v2836_v38  ;;  %v2822_v20 = vmul.f32 %v4911_v30, %v2804_v13 }
0x1675   :  { %v2840_v18 = vsel %vm604_vm7, %v2839_v48, %v2838_v16  ;;  %v2843_v33 = vrot.slane %v2823_v61, 2 }
0x1676   :  { %v2841_v31 = vrot.slane %v2822_v20, 3  ;;  %v3008_v0 = vpop.permute.xlu0 %3007 }
0x1677   :  { %v2808_v10 = vpop.permute.xlu1 %2807  ;;  %v3010_v41 = vmul.f32 %v3803_v28, %v3008_v0 }
0x1678   :  { %v2842_v8 = vsel %vm607_vm8, %v2841_v31, %v2840_v18  ;;  %v2824_v19 = vmul.f32 %v4917_v32, %v2808_v10 }
0x1679   :  { %v2844_v2 = vsel %vm610_vm9, %v2843_v33, %v2842_v8  ;;  %3013 = vrot.lane.b32.xlu0 %v3010_v41, %s3951_s25 }
0x167a   :  { %v2845_v25 = vrot.slane %v2824_v19, 1 }
0x167c   :  { %v2846_v52 = vsel %vm613_vm10, %v2845_v25, %v2844_v2 }
0x167d   :  { %2847 = vrot.lane.b32.xlu1 %v2846_v52, %s3949_s21 }
0x1681   :  { %2873 = vrot.lane.b32.xlu1 %v2872_v12, %s3951_s25 }
0x16eb   :  { %v3014_v6 = vpop.permute.xlu0 %3013 }
0x16ef   :  { %v2848_v30 = vpop.permute.xlu1 %2847 }
0x16f0   :  { %2850 = vst.msk [vmem:[#allocation3] sm:$0xff] %vm83_vm1, %v2848_v30  ;;  %3011 = vst.msk [vmem:[#allocation13] sm:$0xff] %vm83_vm1, %v2848_v30 }
0x16f1   :  { %3017 = vst.msk [vmem:[#allocation13] sm:$0xff] %vm3016_vm11, %v3014_v6 }
0x16f2   :  { %3919 = shalt.err (!%p3916_p8)
}
0x16f3   :  { %s3920_s7 = scalar_lea.hbm %s4990_s6, 128 }
0x16f4   :  { %p3921_p9 = scmp.ne.s32.totalorder %s4990_s6, %s3920_s7  ;;  %p3924_p10 = scmp.lt.u32.totalorder %s3920_s7, %s4990_s6 }
0x16f6   :  { %p3926_p11 = pnand %p3924_p10, %p3921_p9 }
0x16f8   :  { %3929 = shalt.err (!%p3926_p11)
}
0x16f9   :  { %3027 = dma.vmem_to_hbm [thread:$0]  %s3025_s27, 128, %s4990_s6, [#allocation7]   ;;  %v2874_v32 = vpop.permute.xlu1 %2873 }
0x16fa   :  { %2876 = vst.msk [vmem:[#allocation4] sm:$0xff] %vm83_vm1, %v2874_v32 }
0x16fb   :  { %3936 = dma.done.wait [#allocation7], 128  }
0x16fc   :  { %3937 = vsyncadd [#allocation7], 4294967168 }
0x16fd   :  { %3031 = vsyncpa [#allocation6], 1 }
0x16fe   :  { %3032 = vsyncpa [#allocation9], 1 }
0x16ff   :  { %3033 = vsyncpa [#allocation12], 1 }
0x1700   :  { %3034 = vsyncpa [#allocation7], 1 }

</bundles_post_ra>
